<compile_context>
chip_gen: v6e
topology: v6e:2x2x1
jax: 0.10.0
libtpu: 0.0.40
codegen_flags: <defaults>
</compile_context>

<pallas_src>
import functools

import numpy as np
import jax
import jax.numpy as jnp
from jax import lax
from jax.experimental import pallas as pl
from jax.experimental.pallas import tpu as pltpu


def _bilinear_matrix(in_size, out_size):
    """1D interpolation matrix matching torch Upsample(bilinear, align_corners=False)."""
    m = np.zeros((out_size, in_size), np.float32)
    scale = in_size / out_size
    for o in range(out_size):
        src = (o + 0.5) * scale - 0.5
        src = max(src, 0.0)
        i0 = min(int(np.floor(src)), in_size - 1)
        i1 = min(i0 + 1, in_size - 1)
        f = src - i0
        m[o, i0] += 1.0 - f
        m[o, i1] += f
    return m


@functools.lru_cache(maxsize=None)
def _upsample4x_matrix(size):
    # 2x bilinear upsample applied twice == composed matrix (linearity).
    return _bilinear_matrix(2 * size, 4 * size) @ _bilinear_matrix(size, 2 * size)  # (4s, s)


def make_segnet_kernel(N, Cin, Cout, H, W):
    Hp, Wp = H + 2, W + 2
    H4, W4 = 4 * H, 4 * W

    def kernel(w_ref, b_ref, xpad_ref, uh_ref, uwt_ref, out_ref):
        # w_ref:    (Cout*Cin*9,) f32 SMEM (scalar prefetch), row-major (c, ci, kh, kw)
        # b_ref:    (Cout,)       f32 SMEM (scalar prefetch)
        # xpad_ref: (Cin, H+2, W+2) f32  zero-padded input, this batch element
        # uh_ref:   (4H, H) f32  composed 4x bilinear map along H
        # uwt_ref:  (W, 4W) f32  composed 4x bilinear map along W (transposed)
        # out_ref:  (Cout, 4H, 4W) f32

        # --- 3x3 conv (padding already applied): 36 scalar-weight shifted MACs.
        planes = []
        for c in range(Cout):
            acc = jnp.full((H, W), b_ref[c], dtype=jnp.float32)
            for ci in range(Cin):
                for kh in range(3):
                    for kw in range(3):
                        w = w_ref[((c * Cin + ci) * 3 + kh) * 3 + kw]
                        acc = acc + w * xpad_ref[ci, kh:kh + H, kw:kw + W]
            planes.append(acc)
        conv = jnp.stack(planes, axis=0)                        # (Cout, H, W)

        # --- Separable 4x bilinear upsample: two batched MXU matmuls (batch = Cout).
        uh_b = jnp.broadcast_to(uh_ref[...], (Cout, H4, H))
        uwt_b = jnp.broadcast_to(uwt_ref[...], (Cout, W, W4))
        a = jnp.einsum("cHh,chw->cHw", uh_b, conv,
                       preferred_element_type=jnp.float32)      # (Cout, 4H, W)
        out = jnp.einsum("cHw,cwW->cHW", a, uwt_b,
                         preferred_element_type=jnp.float32)    # (Cout, 4H, 4W)
        out_ref[...] = out.astype(out_ref.dtype)

    grid_spec = pltpu.PrefetchScalarGridSpec(
        num_scalar_prefetch=2,                                   # weights + bias -> SMEM
        grid=(N,),
        in_specs=[
            pl.BlockSpec((None, Cin, Hp, Wp), lambda n, w, b: (n, 0, 0, 0)),
            pl.BlockSpec((H4, H), lambda n, w, b: (0, 0)),       # constant, tiny
            pl.BlockSpec((W, W4), lambda n, w, b: (0, 0)),       # constant, tiny
        ],
        out_specs=pl.BlockSpec((None, Cout, H4, W4), lambda n, w, b: (n, 0, 0, 0)),
    )

    return pl.pallas_call(
        kernel,
        grid_spec=grid_spec,
        out_shape=jax.ShapeDtypeStruct((N, Cout, H4, W4), jnp.float32),
        compiler_params=pltpu.CompilerParams(
            dimension_semantics=("parallel",),   # v7x: one batch element per TensorCore
            vmem_limit_bytes=32 * 1024 * 1024),
    )


@jax.jit
def segnet_forward(x, weight, bias):
    N, Cin, H, W = x.shape
    Cout = weight.shape[0]

    xpad = jnp.pad(x.astype(jnp.float32), ((0, 0), (0, 0), (1, 1), (1, 1)))
    w_flat = weight.reshape(-1).astype(jnp.float32)              # (Cout*Cin*9,)
    b = bias.astype(jnp.float32)

    # Constants built once per compile (traced under jit; lru_cache avoids rework).
    uh = jnp.asarray(_upsample4x_matrix(H), jnp.float32)         # (4H, H)
    uwt = jnp.asarray(_upsample4x_matrix(W).T, jnp.float32)      # (W, 4W)

    fn = make_segnet_kernel(N, Cin, Cout, H, W)
    return fn(w_flat, b, xpad, uh, uwt)                          # (N, Cout, 4H, 4W)


def reference(x, weight, bias):
    conv = lax.conv_general_dilated(
        x, weight, window_strides=(1, 1), padding="SAME",
        dimension_numbers=("NCHW", "OIHW", "NCHW"),
        precision=lax.Precision.HIGHEST)
    conv = conv + bias[None, :, None, None]
    _, _, H, W = conv.shape
    uh = jnp.asarray(_upsample4x_matrix(H))
    uw = jnp.asarray(_upsample4x_matrix(W))
    return jnp.einsum("Hh,nchw,Ww->ncHW", uh, conv, uw,
                      precision=lax.Precision.HIGHEST)


if __name__ == "__main__":
    key = jax.random.PRNGKey(0)
    k1, k2, k3 = jax.random.split(key, 3)
    N, Cin, Cout, H, W = 2, 4, 3, 16, 16   # inchannel=4, nclass=3

    x = jax.random.normal(k1, (N, Cin, H, W), jnp.float32)
    fan_in = Cin * 3 * 3
    bound = 1.0 / np.sqrt(fan_in)
    weight = jax.random.uniform(k2, (Cout, Cin, 3, 3), jnp.float32, -bound, bound)
    bias = jax.random.uniform(k3, (Cout,), jnp.float32, -bound, bound)

    out = jax.block_until_ready(segnet_forward(x, weight, bias))
    assert out.shape == (N, Cout, 4 * H, 4 * W)

    ref = reference(x, weight, bias)
    # f32 end-to-end now -> tight tolerance (previous bf16 path needed 1e-2).
    np.testing.assert_allclose(np.asarray(out), np.asarray(ref), atol=1e-4, rtol=1e-4)
    print("KERNEL_OK")
</pallas_src>

<mosaic_0001>
module attributes {stable_mosaic.version = 11 : i64} {
  func.func @kernel(%arg0: i32, %arg1: memref<108xf32, #tpu.memory_space<smem>>, %arg2: memref<3xf32, #tpu.memory_space<smem>>, %arg3: memref<1x4x18x18xf32, #tpu.memory_space<vmem>>, %arg4: memref<64x16xf32, #tpu.memory_space<vmem>>, %arg5: memref<16x64xf32, #tpu.memory_space<vmem>>, %arg6: memref<1x3x64x64xf32, #tpu.memory_space<vmem>>) attributes {dimension_semantics = [#tpu.dimension_semantics<parallel>], iteration_bounds = array<i64: 2>, scalar_prefetch = 2 : i64, scratch_operands = 0 : i64, tpu.core_type = #tpu.core_type<tc>, window_params = [{transform_indices = @transform_0, window_bounds = array<i64: 1, 4, 18, 18>}, {pipeline_mode = #tpu.pipeline_mode<synchronous>, transform_indices = @transform_1, window_bounds = array<i64: 64, 16>}, {pipeline_mode = #tpu.pipeline_mode<synchronous>, transform_indices = @transform_2, window_bounds = array<i64: 16, 64>}, {transform_indices = @transform_3, window_bounds = array<i64: 1, 3, 64, 64>}]} {
    %c0 = arith.constant 0 : index
    %0 = memref.load %arg2[%c0] : memref<3xf32, #tpu.memory_space<smem>>
    %1 = vector.broadcast %0 : f32 to vector<16x16xf32>
    %c0_0 = arith.constant 0 : index
    %2 = memref.load %arg1[%c0_0] : memref<108xf32, #tpu.memory_space<smem>>
    %c0_1 = arith.constant 0 : index
    %c0_2 = arith.constant 0 : index
    %c0_3 = arith.constant 0 : index
    %c0_4 = arith.constant 0 : index
    %3 = vector.load %arg3[%c0_1, %c0_2, %c0_3, %c0_4] : memref<1x4x18x18xf32, #tpu.memory_space<vmem>>, vector<1x1x16x16xf32>
    %4 = vector.shape_cast %3 : vector<1x1x16x16xf32> to vector<16x16xf32>
    %5 = vector.broadcast %2 : f32 to vector<16x16xf32>
    %6 = arith.mulf %5, %4 : vector<16x16xf32>
    %7 = arith.addf %1, %6 : vector<16x16xf32>
    %c1 = arith.constant 1 : index
    %8 = memref.load %arg1[%c1] : memref<108xf32, #tpu.memory_space<smem>>
    %c0_5 = arith.constant 0 : index
    %c0_6 = arith.constant 0 : index
    %c0_7 = arith.constant 0 : index
    %c1_8 = arith.constant 1 : index
    %9 = vector.load %arg3[%c0_5, %c0_6, %c0_7, %c1_8] : memref<1x4x18x18xf32, #tpu.memory_space<vmem>>, vector<1x1x16x16xf32>
    %10 = vector.shape_cast %9 : vector<1x1x16x16xf32> to vector<16x16xf32>
    %11 = vector.broadcast %8 : f32 to vector<16x16xf32>
    %12 = arith.mulf %11, %10 : vector<16x16xf32>
    %13 = arith.addf %7, %12 : vector<16x16xf32>
    %c2 = arith.constant 2 : index
    %14 = memref.load %arg1[%c2] : memref<108xf32, #tpu.memory_space<smem>>
    %c0_9 = arith.constant 0 : index
    %c0_10 = arith.constant 0 : index
    %c0_11 = arith.constant 0 : index
    %c2_12 = arith.constant 2 : index
    %15 = vector.load %arg3[%c0_9, %c0_10, %c0_11, %c2_12] : memref<1x4x18x18xf32, #tpu.memory_space<vmem>>, vector<1x1x16x16xf32>
    %16 = vector.shape_cast %15 : vector<1x1x16x16xf32> to vector<16x16xf32>
    %17 = vector.broadcast %14 : f32 to vector<16x16xf32>
    %18 = arith.mulf %17, %16 : vector<16x16xf32>
    %19 = arith.addf %13, %18 : vector<16x16xf32>
    %c3 = arith.constant 3 : index
    %20 = memref.load %arg1[%c3] : memref<108xf32, #tpu.memory_space<smem>>
    %c0_13 = arith.constant 0 : index
    %c0_14 = arith.constant 0 : index
    %c1_15 = arith.constant 1 : index
    %c0_16 = arith.constant 0 : index
    %21 = vector.load %arg3[%c0_13, %c0_14, %c1_15, %c0_16] : memref<1x4x18x18xf32, #tpu.memory_space<vmem>>, vector<1x1x16x16xf32>
    %22 = vector.shape_cast %21 : vector<1x1x16x16xf32> to vector<16x16xf32>
    %23 = vector.broadcast %20 : f32 to vector<16x16xf32>
    %24 = arith.mulf %23, %22 : vector<16x16xf32>
    %25 = arith.addf %19, %24 : vector<16x16xf32>
    %c4 = arith.constant 4 : index
    %26 = memref.load %arg1[%c4] : memref<108xf32, #tpu.memory_space<smem>>
    %c0_17 = arith.constant 0 : index
    %c0_18 = arith.constant 0 : index
    %c1_19 = arith.constant 1 : index
    %c1_20 = arith.constant 1 : index
    %27 = vector.load %arg3[%c0_17, %c0_18, %c1_19, %c1_20] : memref<1x4x18x18xf32, #tpu.memory_space<vmem>>, vector<1x1x16x16xf32>
    %28 = vector.shape_cast %27 : vector<1x1x16x16xf32> to vector<16x16xf32>
    %29 = vector.broadcast %26 : f32 to vector<16x16xf32>
    %30 = arith.mulf %29, %28 : vector<16x16xf32>
    %31 = arith.addf %25, %30 : vector<16x16xf32>
    %c5 = arith.constant 5 : index
    %32 = memref.load %arg1[%c5] : memref<108xf32, #tpu.memory_space<smem>>
    %c0_21 = arith.constant 0 : index
    %c0_22 = arith.constant 0 : index
    %c1_23 = arith.constant 1 : index
    %c2_24 = arith.constant 2 : index
    %33 = vector.load %arg3[%c0_21, %c0_22, %c1_23, %c2_24] : memref<1x4x18x18xf32, #tpu.memory_space<vmem>>, vector<1x1x16x16xf32>
    %34 = vector.shape_cast %33 : vector<1x1x16x16xf32> to vector<16x16xf32>
    %35 = vector.broadcast %32 : f32 to vector<16x16xf32>
    %36 = arith.mulf %35, %34 : vector<16x16xf32>
    %37 = arith.addf %31, %36 : vector<16x16xf32>
    %c6 = arith.constant 6 : index
    %38 = memref.load %arg1[%c6] : memref<108xf32, #tpu.memory_space<smem>>
    %c0_25 = arith.constant 0 : index
    %c0_26 = arith.constant 0 : index
    %c2_27 = arith.constant 2 : index
    %c0_28 = arith.constant 0 : index
    %39 = vector.load %arg3[%c0_25, %c0_26, %c2_27, %c0_28] : memref<1x4x18x18xf32, #tpu.memory_space<vmem>>, vector<1x1x16x16xf32>
    %40 = vector.shape_cast %39 : vector<1x1x16x16xf32> to vector<16x16xf32>
    %41 = vector.broadcast %38 : f32 to vector<16x16xf32>
    %42 = arith.mulf %41, %40 : vector<16x16xf32>
    %43 = arith.addf %37, %42 : vector<16x16xf32>
    %c7 = arith.constant 7 : index
    %44 = memref.load %arg1[%c7] : memref<108xf32, #tpu.memory_space<smem>>
    %c0_29 = arith.constant 0 : index
    %c0_30 = arith.constant 0 : index
    %c2_31 = arith.constant 2 : index
    %c1_32 = arith.constant 1 : index
    %45 = vector.load %arg3[%c0_29, %c0_30, %c2_31, %c1_32] : memref<1x4x18x18xf32, #tpu.memory_space<vmem>>, vector<1x1x16x16xf32>
    %46 = vector.shape_cast %45 : vector<1x1x16x16xf32> to vector<16x16xf32>
    %47 = vector.broadcast %44 : f32 to vector<16x16xf32>
    %48 = arith.mulf %47, %46 : vector<16x16xf32>
    %49 = arith.addf %43, %48 : vector<16x16xf32>
    %c8 = arith.constant 8 : index
    %50 = memref.load %arg1[%c8] : memref<108xf32, #tpu.memory_space<smem>>
    %c0_33 = arith.constant 0 : index
    %c0_34 = arith.constant 0 : index
    %c2_35 = arith.constant 2 : index
    %c2_36 = arith.constant 2 : index
    %51 = vector.load %arg3[%c0_33, %c0_34, %c2_35, %c2_36] : memref<1x4x18x18xf32, #tpu.memory_space<vmem>>, vector<1x1x16x16xf32>
    %52 = vector.shape_cast %51 : vector<1x1x16x16xf32> to vector<16x16xf32>
    %53 = vector.broadcast %50 : f32 to vector<16x16xf32>
    %54 = arith.mulf %53, %52 : vector<16x16xf32>
    %55 = arith.addf %49, %54 : vector<16x16xf32>
    %c9 = arith.constant 9 : index
    %56 = memref.load %arg1[%c9] : memref<108xf32, #tpu.memory_space<smem>>
    %c0_37 = arith.constant 0 : index
    %c1_38 = arith.constant 1 : index
    %c0_39 = arith.constant 0 : index
    %c0_40 = arith.constant 0 : index
    %57 = vector.load %arg3[%c0_37, %c1_38, %c0_39, %c0_40] : memref<1x4x18x18xf32, #tpu.memory_space<vmem>>, vector<1x1x16x16xf32>
    %58 = vector.shape_cast %57 : vector<1x1x16x16xf32> to vector<16x16xf32>
    %59 = vector.broadcast %56 : f32 to vector<16x16xf32>
    %60 = arith.mulf %59, %58 : vector<16x16xf32>
    %61 = arith.addf %55, %60 : vector<16x16xf32>
    %c10 = arith.constant 10 : index
    %62 = memref.load %arg1[%c10] : memref<108xf32, #tpu.memory_space<smem>>
    %c0_41 = arith.constant 0 : index
    %c1_42 = arith.constant 1 : index
    %c0_43 = arith.constant 0 : index
    %c1_44 = arith.constant 1 : index
    %63 = vector.load %arg3[%c0_41, %c1_42, %c0_43, %c1_44] : memref<1x4x18x18xf32, #tpu.memory_space<vmem>>, vector<1x1x16x16xf32>
    %64 = vector.shape_cast %63 : vector<1x1x16x16xf32> to vector<16x16xf32>
    %65 = vector.broadcast %62 : f32 to vector<16x16xf32>
    %66 = arith.mulf %65, %64 : vector<16x16xf32>
    %67 = arith.addf %61, %66 : vector<16x16xf32>
    %c11 = arith.constant 11 : index
    %68 = memref.load %arg1[%c11] : memref<108xf32, #tpu.memory_space<smem>>
    %c0_45 = arith.constant 0 : index
    %c1_46 = arith.constant 1 : index
    %c0_47 = arith.constant 0 : index
    %c2_48 = arith.constant 2 : index
    %69 = vector.load %arg3[%c0_45, %c1_46, %c0_47, %c2_48] : memref<1x4x18x18xf32, #tpu.memory_space<vmem>>, vector<1x1x16x16xf32>
    %70 = vector.shape_cast %69 : vector<1x1x16x16xf32> to vector<16x16xf32>
    %71 = vector.broadcast %68 : f32 to vector<16x16xf32>
    %72 = arith.mulf %71, %70 : vector<16x16xf32>
    %73 = arith.addf %67, %72 : vector<16x16xf32>
    %c12 = arith.constant 12 : index
    %74 = memref.load %arg1[%c12] : memref<108xf32, #tpu.memory_space<smem>>
    %c0_49 = arith.constant 0 : index
    %c1_50 = arith.constant 1 : index
    %c1_51 = arith.constant 1 : index
    %c0_52 = arith.constant 0 : index
    %75 = vector.load %arg3[%c0_49, %c1_50, %c1_51, %c0_52] : memref<1x4x18x18xf32, #tpu.memory_space<vmem>>, vector<1x1x16x16xf32>
    %76 = vector.shape_cast %75 : vector<1x1x16x16xf32> to vector<16x16xf32>
    %77 = vector.broadcast %74 : f32 to vector<16x16xf32>
    %78 = arith.mulf %77, %76 : vector<16x16xf32>
    %79 = arith.addf %73, %78 : vector<16x16xf32>
    %c13 = arith.constant 13 : index
    %80 = memref.load %arg1[%c13] : memref<108xf32, #tpu.memory_space<smem>>
    %c0_53 = arith.constant 0 : index
    %c1_54 = arith.constant 1 : index
    %c1_55 = arith.constant 1 : index
    %c1_56 = arith.constant 1 : index
    %81 = vector.load %arg3[%c0_53, %c1_54, %c1_55, %c1_56] : memref<1x4x18x18xf32, #tpu.memory_space<vmem>>, vector<1x1x16x16xf32>
    %82 = vector.shape_cast %81 : vector<1x1x16x16xf32> to vector<16x16xf32>
    %83 = vector.broadcast %80 : f32 to vector<16x16xf32>
    %84 = arith.mulf %83, %82 : vector<16x16xf32>
    %85 = arith.addf %79, %84 : vector<16x16xf32>
    %c14 = arith.constant 14 : index
    %86 = memref.load %arg1[%c14] : memref<108xf32, #tpu.memory_space<smem>>
    %c0_57 = arith.constant 0 : index
    %c1_58 = arith.constant 1 : index
    %c1_59 = arith.constant 1 : index
    %c2_60 = arith.constant 2 : index
    %87 = vector.load %arg3[%c0_57, %c1_58, %c1_59, %c2_60] : memref<1x4x18x18xf32, #tpu.memory_space<vmem>>, vector<1x1x16x16xf32>
    %88 = vector.shape_cast %87 : vector<1x1x16x16xf32> to vector<16x16xf32>
    %89 = vector.broadcast %86 : f32 to vector<16x16xf32>
    %90 = arith.mulf %89, %88 : vector<16x16xf32>
    %91 = arith.addf %85, %90 : vector<16x16xf32>
    %c15 = arith.constant 15 : index
    %92 = memref.load %arg1[%c15] : memref<108xf32, #tpu.memory_space<smem>>
    %c0_61 = arith.constant 0 : index
    %c1_62 = arith.constant 1 : index
    %c2_63 = arith.constant 2 : index
    %c0_64 = arith.constant 0 : index
    %93 = vector.load %arg3[%c0_61, %c1_62, %c2_63, %c0_64] : memref<1x4x18x18xf32, #tpu.memory_space<vmem>>, vector<1x1x16x16xf32>
    %94 = vector.shape_cast %93 : vector<1x1x16x16xf32> to vector<16x16xf32>
    %95 = vector.broadcast %92 : f32 to vector<16x16xf32>
    %96 = arith.mulf %95, %94 : vector<16x16xf32>
    %97 = arith.addf %91, %96 : vector<16x16xf32>
    %c16 = arith.constant 16 : index
    %98 = memref.load %arg1[%c16] : memref<108xf32, #tpu.memory_space<smem>>
    %c0_65 = arith.constant 0 : index
    %c1_66 = arith.constant 1 : index
    %c2_67 = arith.constant 2 : index
    %c1_68 = arith.constant 1 : index
    %99 = vector.load %arg3[%c0_65, %c1_66, %c2_67, %c1_68] : memref<1x4x18x18xf32, #tpu.memory_space<vmem>>, vector<1x1x16x16xf32>
    %100 = vector.shape_cast %99 : vector<1x1x16x16xf32> to vector<16x16xf32>
    %101 = vector.broadcast %98 : f32 to vector<16x16xf32>
    %102 = arith.mulf %101, %100 : vector<16x16xf32>
    %103 = arith.addf %97, %102 : vector<16x16xf32>
    %c17 = arith.constant 17 : index
    %104 = memref.load %arg1[%c17] : memref<108xf32, #tpu.memory_space<smem>>
    %c0_69 = arith.constant 0 : index
    %c1_70 = arith.constant 1 : index
    %c2_71 = arith.constant 2 : index
    %c2_72 = arith.constant 2 : index
    %105 = vector.load %arg3[%c0_69, %c1_70, %c2_71, %c2_72] : memref<1x4x18x18xf32, #tpu.memory_space<vmem>>, vector<1x1x16x16xf32>
    %106 = vector.shape_cast %105 : vector<1x1x16x16xf32> to vector<16x16xf32>
    %107 = vector.broadcast %104 : f32 to vector<16x16xf32>
    %108 = arith.mulf %107, %106 : vector<16x16xf32>
    %109 = arith.addf %103, %108 : vector<16x16xf32>
    %c18 = arith.constant 18 : index
    %110 = memref.load %arg1[%c18] : memref<108xf32, #tpu.memory_space<smem>>
    %c0_73 = arith.constant 0 : index
    %c2_74 = arith.constant 2 : index
    %c0_75 = arith.constant 0 : index
    %c0_76 = arith.constant 0 : index
    %111 = vector.load %arg3[%c0_73, %c2_74, %c0_75, %c0_76] : memref<1x4x18x18xf32, #tpu.memory_space<vmem>>, vector<1x1x16x16xf32>
    %112 = vector.shape_cast %111 : vector<1x1x16x16xf32> to vector<16x16xf32>
    %113 = vector.broadcast %110 : f32 to vector<16x16xf32>
    %114 = arith.mulf %113, %112 : vector<16x16xf32>
    %115 = arith.addf %109, %114 : vector<16x16xf32>
    %c19 = arith.constant 19 : index
    %116 = memref.load %arg1[%c19] : memref<108xf32, #tpu.memory_space<smem>>
    %c0_77 = arith.constant 0 : index
    %c2_78 = arith.constant 2 : index
    %c0_79 = arith.constant 0 : index
    %c1_80 = arith.constant 1 : index
    %117 = vector.load %arg3[%c0_77, %c2_78, %c0_79, %c1_80] : memref<1x4x18x18xf32, #tpu.memory_space<vmem>>, vector<1x1x16x16xf32>
    %118 = vector.shape_cast %117 : vector<1x1x16x16xf32> to vector<16x16xf32>
    %119 = vector.broadcast %116 : f32 to vector<16x16xf32>
    %120 = arith.mulf %119, %118 : vector<16x16xf32>
    %121 = arith.addf %115, %120 : vector<16x16xf32>
    %c20 = arith.constant 20 : index
    %122 = memref.load %arg1[%c20] : memref<108xf32, #tpu.memory_space<smem>>
    %c0_81 = arith.constant 0 : index
    %c2_82 = arith.constant 2 : index
    %c0_83 = arith.constant 0 : index
    %c2_84 = arith.constant 2 : index
    %123 = vector.load %arg3[%c0_81, %c2_82, %c0_83, %c2_84] : memref<1x4x18x18xf32, #tpu.memory_space<vmem>>, vector<1x1x16x16xf32>
    %124 = vector.shape_cast %123 : vector<1x1x16x16xf32> to vector<16x16xf32>
    %125 = vector.broadcast %122 : f32 to vector<16x16xf32>
    %126 = arith.mulf %125, %124 : vector<16x16xf32>
    %127 = arith.addf %121, %126 : vector<16x16xf32>
    %c21 = arith.constant 21 : index
    %128 = memref.load %arg1[%c21] : memref<108xf32, #tpu.memory_space<smem>>
    %c0_85 = arith.constant 0 : index
    %c2_86 = arith.constant 2 : index
    %c1_87 = arith.constant 1 : index
    %c0_88 = arith.constant 0 : index
    %129 = vector.load %arg3[%c0_85, %c2_86, %c1_87, %c0_88] : memref<1x4x18x18xf32, #tpu.memory_space<vmem>>, vector<1x1x16x16xf32>
    %130 = vector.shape_cast %129 : vector<1x1x16x16xf32> to vector<16x16xf32>
    %131 = vector.broadcast %128 : f32 to vector<16x16xf32>
    %132 = arith.mulf %131, %130 : vector<16x16xf32>
    %133 = arith.addf %127, %132 : vector<16x16xf32>
    %c22 = arith.constant 22 : index
    %134 = memref.load %arg1[%c22] : memref<108xf32, #tpu.memory_space<smem>>
    %c0_89 = arith.constant 0 : index
    %c2_90 = arith.constant 2 : index
    %c1_91 = arith.constant 1 : index
    %c1_92 = arith.constant 1 : index
    %135 = vector.load %arg3[%c0_89, %c2_90, %c1_91, %c1_92] : memref<1x4x18x18xf32, #tpu.memory_space<vmem>>, vector<1x1x16x16xf32>
    %136 = vector.shape_cast %135 : vector<1x1x16x16xf32> to vector<16x16xf32>
    %137 = vector.broadcast %134 : f32 to vector<16x16xf32>
    %138 = arith.mulf %137, %136 : vector<16x16xf32>
    %139 = arith.addf %133, %138 : vector<16x16xf32>
    %c23 = arith.constant 23 : index
    %140 = memref.load %arg1[%c23] : memref<108xf32, #tpu.memory_space<smem>>
    %c0_93 = arith.constant 0 : index
    %c2_94 = arith.constant 2 : index
    %c1_95 = arith.constant 1 : index
    %c2_96 = arith.constant 2 : index
    %141 = vector.load %arg3[%c0_93, %c2_94, %c1_95, %c2_96] : memref<1x4x18x18xf32, #tpu.memory_space<vmem>>, vector<1x1x16x16xf32>
    %142 = vector.shape_cast %141 : vector<1x1x16x16xf32> to vector<16x16xf32>
    %143 = vector.broadcast %140 : f32 to vector<16x16xf32>
    %144 = arith.mulf %143, %142 : vector<16x16xf32>
    %145 = arith.addf %139, %144 : vector<16x16xf32>
    %c24 = arith.constant 24 : index
    %146 = memref.load %arg1[%c24] : memref<108xf32, #tpu.memory_space<smem>>
    %c0_97 = arith.constant 0 : index
    %c2_98 = arith.constant 2 : index
    %c2_99 = arith.constant 2 : index
    %c0_100 = arith.constant 0 : index
    %147 = vector.load %arg3[%c0_97, %c2_98, %c2_99, %c0_100] : memref<1x4x18x18xf32, #tpu.memory_space<vmem>>, vector<1x1x16x16xf32>
    %148 = vector.shape_cast %147 : vector<1x1x16x16xf32> to vector<16x16xf32>
    %149 = vector.broadcast %146 : f32 to vector<16x16xf32>
    %150 = arith.mulf %149, %148 : vector<16x16xf32>
    %151 = arith.addf %145, %150 : vector<16x16xf32>
    %c25 = arith.constant 25 : index
    %152 = memref.load %arg1[%c25] : memref<108xf32, #tpu.memory_space<smem>>
    %c0_101 = arith.constant 0 : index
    %c2_102 = arith.constant 2 : index
    %c2_103 = arith.constant 2 : index
    %c1_104 = arith.constant 1 : index
    %153 = vector.load %arg3[%c0_101, %c2_102, %c2_103, %c1_104] : memref<1x4x18x18xf32, #tpu.memory_space<vmem>>, vector<1x1x16x16xf32>
    %154 = vector.shape_cast %153 : vector<1x1x16x16xf32> to vector<16x16xf32>
    %155 = vector.broadcast %152 : f32 to vector<16x16xf32>
    %156 = arith.mulf %155, %154 : vector<16x16xf32>
    %157 = arith.addf %151, %156 : vector<16x16xf32>
    %c26 = arith.constant 26 : index
    %158 = memref.load %arg1[%c26] : memref<108xf32, #tpu.memory_space<smem>>
    %c0_105 = arith.constant 0 : index
    %c2_106 = arith.constant 2 : index
    %c2_107 = arith.constant 2 : index
    %c2_108 = arith.constant 2 : index
    %159 = vector.load %arg3[%c0_105, %c2_106, %c2_107, %c2_108] : memref<1x4x18x18xf32, #tpu.memory_space<vmem>>, vector<1x1x16x16xf32>
    %160 = vector.shape_cast %159 : vector<1x1x16x16xf32> to vector<16x16xf32>
    %161 = vector.broadcast %158 : f32 to vector<16x16xf32>
    %162 = arith.mulf %161, %160 : vector<16x16xf32>
    %163 = arith.addf %157, %162 : vector<16x16xf32>
    %c27 = arith.constant 27 : index
    %164 = memref.load %arg1[%c27] : memref<108xf32, #tpu.memory_space<smem>>
    %c0_109 = arith.constant 0 : index
    %c3_110 = arith.constant 3 : index
    %c0_111 = arith.constant 0 : index
    %c0_112 = arith.constant 0 : index
    %165 = vector.load %arg3[%c0_109, %c3_110, %c0_111, %c0_112] : memref<1x4x18x18xf32, #tpu.memory_space<vmem>>, vector<1x1x16x16xf32>
    %166 = vector.shape_cast %165 : vector<1x1x16x16xf32> to vector<16x16xf32>
    %167 = vector.broadcast %164 : f32 to vector<16x16xf32>
    %168 = arith.mulf %167, %166 : vector<16x16xf32>
    %169 = arith.addf %163, %168 : vector<16x16xf32>
    %c28 = arith.constant 28 : index
    %170 = memref.load %arg1[%c28] : memref<108xf32, #tpu.memory_space<smem>>
    %c0_113 = arith.constant 0 : index
    %c3_114 = arith.constant 3 : index
    %c0_115 = arith.constant 0 : index
    %c1_116 = arith.constant 1 : index
    %171 = vector.load %arg3[%c0_113, %c3_114, %c0_115, %c1_116] : memref<1x4x18x18xf32, #tpu.memory_space<vmem>>, vector<1x1x16x16xf32>
    %172 = vector.shape_cast %171 : vector<1x1x16x16xf32> to vector<16x16xf32>
    %173 = vector.broadcast %170 : f32 to vector<16x16xf32>
    %174 = arith.mulf %173, %172 : vector<16x16xf32>
    %175 = arith.addf %169, %174 : vector<16x16xf32>
    %c29 = arith.constant 29 : index
    %176 = memref.load %arg1[%c29] : memref<108xf32, #tpu.memory_space<smem>>
    %c0_117 = arith.constant 0 : index
    %c3_118 = arith.constant 3 : index
    %c0_119 = arith.constant 0 : index
    %c2_120 = arith.constant 2 : index
    %177 = vector.load %arg3[%c0_117, %c3_118, %c0_119, %c2_120] : memref<1x4x18x18xf32, #tpu.memory_space<vmem>>, vector<1x1x16x16xf32>
    %178 = vector.shape_cast %177 : vector<1x1x16x16xf32> to vector<16x16xf32>
    %179 = vector.broadcast %176 : f32 to vector<16x16xf32>
    %180 = arith.mulf %179, %178 : vector<16x16xf32>
    %181 = arith.addf %175, %180 : vector<16x16xf32>
    %c30 = arith.constant 30 : index
    %182 = memref.load %arg1[%c30] : memref<108xf32, #tpu.memory_space<smem>>
    %c0_121 = arith.constant 0 : index
    %c3_122 = arith.constant 3 : index
    %c1_123 = arith.constant 1 : index
    %c0_124 = arith.constant 0 : index
    %183 = vector.load %arg3[%c0_121, %c3_122, %c1_123, %c0_124] : memref<1x4x18x18xf32, #tpu.memory_space<vmem>>, vector<1x1x16x16xf32>
    %184 = vector.shape_cast %183 : vector<1x1x16x16xf32> to vector<16x16xf32>
    %185 = vector.broadcast %182 : f32 to vector<16x16xf32>
    %186 = arith.mulf %185, %184 : vector<16x16xf32>
    %187 = arith.addf %181, %186 : vector<16x16xf32>
    %c31 = arith.constant 31 : index
    %188 = memref.load %arg1[%c31] : memref<108xf32, #tpu.memory_space<smem>>
    %c0_125 = arith.constant 0 : index
    %c3_126 = arith.constant 3 : index
    %c1_127 = arith.constant 1 : index
    %c1_128 = arith.constant 1 : index
    %189 = vector.load %arg3[%c0_125, %c3_126, %c1_127, %c1_128] : memref<1x4x18x18xf32, #tpu.memory_space<vmem>>, vector<1x1x16x16xf32>
    %190 = vector.shape_cast %189 : vector<1x1x16x16xf32> to vector<16x16xf32>
    %191 = vector.broadcast %188 : f32 to vector<16x16xf32>
    %192 = arith.mulf %191, %190 : vector<16x16xf32>
    %193 = arith.addf %187, %192 : vector<16x16xf32>
    %c32 = arith.constant 32 : index
    %194 = memref.load %arg1[%c32] : memref<108xf32, #tpu.memory_space<smem>>
    %c0_129 = arith.constant 0 : index
    %c3_130 = arith.constant 3 : index
    %c1_131 = arith.constant 1 : index
    %c2_132 = arith.constant 2 : index
    %195 = vector.load %arg3[%c0_129, %c3_130, %c1_131, %c2_132] : memref<1x4x18x18xf32, #tpu.memory_space<vmem>>, vector<1x1x16x16xf32>
    %196 = vector.shape_cast %195 : vector<1x1x16x16xf32> to vector<16x16xf32>
    %197 = vector.broadcast %194 : f32 to vector<16x16xf32>
    %198 = arith.mulf %197, %196 : vector<16x16xf32>
    %199 = arith.addf %193, %198 : vector<16x16xf32>
    %c33 = arith.constant 33 : index
    %200 = memref.load %arg1[%c33] : memref<108xf32, #tpu.memory_space<smem>>
    %c0_133 = arith.constant 0 : index
    %c3_134 = arith.constant 3 : index
    %c2_135 = arith.constant 2 : index
    %c0_136 = arith.constant 0 : index
    %201 = vector.load %arg3[%c0_133, %c3_134, %c2_135, %c0_136] : memref<1x4x18x18xf32, #tpu.memory_space<vmem>>, vector<1x1x16x16xf32>
    %202 = vector.shape_cast %201 : vector<1x1x16x16xf32> to vector<16x16xf32>
    %203 = vector.broadcast %200 : f32 to vector<16x16xf32>
    %204 = arith.mulf %203, %202 : vector<16x16xf32>
    %205 = arith.addf %199, %204 : vector<16x16xf32>
    %c34 = arith.constant 34 : index
    %206 = memref.load %arg1[%c34] : memref<108xf32, #tpu.memory_space<smem>>
    %c0_137 = arith.constant 0 : index
    %c3_138 = arith.constant 3 : index
    %c2_139 = arith.constant 2 : index
    %c1_140 = arith.constant 1 : index
    %207 = vector.load %arg3[%c0_137, %c3_138, %c2_139, %c1_140] : memref<1x4x18x18xf32, #tpu.memory_space<vmem>>, vector<1x1x16x16xf32>
    %208 = vector.shape_cast %207 : vector<1x1x16x16xf32> to vector<16x16xf32>
    %209 = vector.broadcast %206 : f32 to vector<16x16xf32>
    %210 = arith.mulf %209, %208 : vector<16x16xf32>
    %211 = arith.addf %205, %210 : vector<16x16xf32>
    %c35 = arith.constant 35 : index
    %212 = memref.load %arg1[%c35] : memref<108xf32, #tpu.memory_space<smem>>
    %c0_141 = arith.constant 0 : index
    %c3_142 = arith.constant 3 : index
    %c2_143 = arith.constant 2 : index
    %c2_144 = arith.constant 2 : index
    %213 = vector.load %arg3[%c0_141, %c3_142, %c2_143, %c2_144] : memref<1x4x18x18xf32, #tpu.memory_space<vmem>>, vector<1x1x16x16xf32>
    %214 = vector.shape_cast %213 : vector<1x1x16x16xf32> to vector<16x16xf32>
    %215 = vector.broadcast %212 : f32 to vector<16x16xf32>
    %216 = arith.mulf %215, %214 : vector<16x16xf32>
    %217 = arith.addf %211, %216 : vector<16x16xf32>
    %c1_145 = arith.constant 1 : index
    %218 = memref.load %arg2[%c1_145] : memref<3xf32, #tpu.memory_space<smem>>
    %219 = vector.broadcast %218 : f32 to vector<16x16xf32>
    %c36 = arith.constant 36 : index
    %220 = memref.load %arg1[%c36] : memref<108xf32, #tpu.memory_space<smem>>
    %c0_146 = arith.constant 0 : index
    %c0_147 = arith.constant 0 : index
    %c0_148 = arith.constant 0 : index
    %c0_149 = arith.constant 0 : index
    %221 = vector.load %arg3[%c0_146, %c0_147, %c0_148, %c0_149] : memref<1x4x18x18xf32, #tpu.memory_space<vmem>>, vector<1x1x16x16xf32>
    %222 = vector.shape_cast %221 : vector<1x1x16x16xf32> to vector<16x16xf32>
    %223 = vector.broadcast %220 : f32 to vector<16x16xf32>
    %224 = arith.mulf %223, %222 : vector<16x16xf32>
    %225 = arith.addf %219, %224 : vector<16x16xf32>
    %c37 = arith.constant 37 : index
    %226 = memref.load %arg1[%c37] : memref<108xf32, #tpu.memory_space<smem>>
    %c0_150 = arith.constant 0 : index
    %c0_151 = arith.constant 0 : index
    %c0_152 = arith.constant 0 : index
    %c1_153 = arith.constant 1 : index
    %227 = vector.load %arg3[%c0_150, %c0_151, %c0_152, %c1_153] : memref<1x4x18x18xf32, #tpu.memory_space<vmem>>, vector<1x1x16x16xf32>
    %228 = vector.shape_cast %227 : vector<1x1x16x16xf32> to vector<16x16xf32>
    %229 = vector.broadcast %226 : f32 to vector<16x16xf32>
    %230 = arith.mulf %229, %228 : vector<16x16xf32>
    %231 = arith.addf %225, %230 : vector<16x16xf32>
    %c38 = arith.constant 38 : index
    %232 = memref.load %arg1[%c38] : memref<108xf32, #tpu.memory_space<smem>>
    %c0_154 = arith.constant 0 : index
    %c0_155 = arith.constant 0 : index
    %c0_156 = arith.constant 0 : index
    %c2_157 = arith.constant 2 : index
    %233 = vector.load %arg3[%c0_154, %c0_155, %c0_156, %c2_157] : memref<1x4x18x18xf32, #tpu.memory_space<vmem>>, vector<1x1x16x16xf32>
    %234 = vector.shape_cast %233 : vector<1x1x16x16xf32> to vector<16x16xf32>
    %235 = vector.broadcast %232 : f32 to vector<16x16xf32>
    %236 = arith.mulf %235, %234 : vector<16x16xf32>
    %237 = arith.addf %231, %236 : vector<16x16xf32>
    %c39 = arith.constant 39 : index
    %238 = memref.load %arg1[%c39] : memref<108xf32, #tpu.memory_space<smem>>
    %c0_158 = arith.constant 0 : index
    %c0_159 = arith.constant 0 : index
    %c1_160 = arith.constant 1 : index
    %c0_161 = arith.constant 0 : index
    %239 = vector.load %arg3[%c0_158, %c0_159, %c1_160, %c0_161] : memref<1x4x18x18xf32, #tpu.memory_space<vmem>>, vector<1x1x16x16xf32>
    %240 = vector.shape_cast %239 : vector<1x1x16x16xf32> to vector<16x16xf32>
    %241 = vector.broadcast %238 : f32 to vector<16x16xf32>
    %242 = arith.mulf %241, %240 : vector<16x16xf32>
    %243 = arith.addf %237, %242 : vector<16x16xf32>
    %c40 = arith.constant 40 : index
    %244 = memref.load %arg1[%c40] : memref<108xf32, #tpu.memory_space<smem>>
    %c0_162 = arith.constant 0 : index
    %c0_163 = arith.constant 0 : index
    %c1_164 = arith.constant 1 : index
    %c1_165 = arith.constant 1 : index
    %245 = vector.load %arg3[%c0_162, %c0_163, %c1_164, %c1_165] : memref<1x4x18x18xf32, #tpu.memory_space<vmem>>, vector<1x1x16x16xf32>
    %246 = vector.shape_cast %245 : vector<1x1x16x16xf32> to vector<16x16xf32>
    %247 = vector.broadcast %244 : f32 to vector<16x16xf32>
    %248 = arith.mulf %247, %246 : vector<16x16xf32>
    %249 = arith.addf %243, %248 : vector<16x16xf32>
    %c41 = arith.constant 41 : index
    %250 = memref.load %arg1[%c41] : memref<108xf32, #tpu.memory_space<smem>>
    %c0_166 = arith.constant 0 : index
    %c0_167 = arith.constant 0 : index
    %c1_168 = arith.constant 1 : index
    %c2_169 = arith.constant 2 : index
    %251 = vector.load %arg3[%c0_166, %c0_167, %c1_168, %c2_169] : memref<1x4x18x18xf32, #tpu.memory_space<vmem>>, vector<1x1x16x16xf32>
    %252 = vector.shape_cast %251 : vector<1x1x16x16xf32> to vector<16x16xf32>
    %253 = vector.broadcast %250 : f32 to vector<16x16xf32>
    %254 = arith.mulf %253, %252 : vector<16x16xf32>
    %255 = arith.addf %249, %254 : vector<16x16xf32>
    %c42 = arith.constant 42 : index
    %256 = memref.load %arg1[%c42] : memref<108xf32, #tpu.memory_space<smem>>
    %c0_170 = arith.constant 0 : index
    %c0_171 = arith.constant 0 : index
    %c2_172 = arith.constant 2 : index
    %c0_173 = arith.constant 0 : index
    %257 = vector.load %arg3[%c0_170, %c0_171, %c2_172, %c0_173] : memref<1x4x18x18xf32, #tpu.memory_space<vmem>>, vector<1x1x16x16xf32>
    %258 = vector.shape_cast %257 : vector<1x1x16x16xf32> to vector<16x16xf32>
    %259 = vector.broadcast %256 : f32 to vector<16x16xf32>
    %260 = arith.mulf %259, %258 : vector<16x16xf32>
    %261 = arith.addf %255, %260 : vector<16x16xf32>
    %c43 = arith.constant 43 : index
    %262 = memref.load %arg1[%c43] : memref<108xf32, #tpu.memory_space<smem>>
    %c0_174 = arith.constant 0 : index
    %c0_175 = arith.constant 0 : index
    %c2_176 = arith.constant 2 : index
    %c1_177 = arith.constant 1 : index
    %263 = vector.load %arg3[%c0_174, %c0_175, %c2_176, %c1_177] : memref<1x4x18x18xf32, #tpu.memory_space<vmem>>, vector<1x1x16x16xf32>
    %264 = vector.shape_cast %263 : vector<1x1x16x16xf32> to vector<16x16xf32>
    %265 = vector.broadcast %262 : f32 to vector<16x16xf32>
    %266 = arith.mulf %265, %264 : vector<16x16xf32>
    %267 = arith.addf %261, %266 : vector<16x16xf32>
    %c44 = arith.constant 44 : index
    %268 = memref.load %arg1[%c44] : memref<108xf32, #tpu.memory_space<smem>>
    %c0_178 = arith.constant 0 : index
    %c0_179 = arith.constant 0 : index
    %c2_180 = arith.constant 2 : index
    %c2_181 = arith.constant 2 : index
    %269 = vector.load %arg3[%c0_178, %c0_179, %c2_180, %c2_181] : memref<1x4x18x18xf32, #tpu.memory_space<vmem>>, vector<1x1x16x16xf32>
    %270 = vector.shape_cast %269 : vector<1x1x16x16xf32> to vector<16x16xf32>
    %271 = vector.broadcast %268 : f32 to vector<16x16xf32>
    %272 = arith.mulf %271, %270 : vector<16x16xf32>
    %273 = arith.addf %267, %272 : vector<16x16xf32>
    %c45 = arith.constant 45 : index
    %274 = memref.load %arg1[%c45] : memref<108xf32, #tpu.memory_space<smem>>
    %c0_182 = arith.constant 0 : index
    %c1_183 = arith.constant 1 : index
    %c0_184 = arith.constant 0 : index
    %c0_185 = arith.constant 0 : index
    %275 = vector.load %arg3[%c0_182, %c1_183, %c0_184, %c0_185] : memref<1x4x18x18xf32, #tpu.memory_space<vmem>>, vector<1x1x16x16xf32>
    %276 = vector.shape_cast %275 : vector<1x1x16x16xf32> to vector<16x16xf32>
    %277 = vector.broadcast %274 : f32 to vector<16x16xf32>
    %278 = arith.mulf %277, %276 : vector<16x16xf32>
    %279 = arith.addf %273, %278 : vector<16x16xf32>
    %c46 = arith.constant 46 : index
    %280 = memref.load %arg1[%c46] : memref<108xf32, #tpu.memory_space<smem>>
    %c0_186 = arith.constant 0 : index
    %c1_187 = arith.constant 1 : index
    %c0_188 = arith.constant 0 : index
    %c1_189 = arith.constant 1 : index
    %281 = vector.load %arg3[%c0_186, %c1_187, %c0_188, %c1_189] : memref<1x4x18x18xf32, #tpu.memory_space<vmem>>, vector<1x1x16x16xf32>
    %282 = vector.shape_cast %281 : vector<1x1x16x16xf32> to vector<16x16xf32>
    %283 = vector.broadcast %280 : f32 to vector<16x16xf32>
    %284 = arith.mulf %283, %282 : vector<16x16xf32>
    %285 = arith.addf %279, %284 : vector<16x16xf32>
    %c47 = arith.constant 47 : index
    %286 = memref.load %arg1[%c47] : memref<108xf32, #tpu.memory_space<smem>>
    %c0_190 = arith.constant 0 : index
    %c1_191 = arith.constant 1 : index
    %c0_192 = arith.constant 0 : index
    %c2_193 = arith.constant 2 : index
    %287 = vector.load %arg3[%c0_190, %c1_191, %c0_192, %c2_193] : memref<1x4x18x18xf32, #tpu.memory_space<vmem>>, vector<1x1x16x16xf32>
    %288 = vector.shape_cast %287 : vector<1x1x16x16xf32> to vector<16x16xf32>
    %289 = vector.broadcast %286 : f32 to vector<16x16xf32>
    %290 = arith.mulf %289, %288 : vector<16x16xf32>
    %291 = arith.addf %285, %290 : vector<16x16xf32>
    %c48 = arith.constant 48 : index
    %292 = memref.load %arg1[%c48] : memref<108xf32, #tpu.memory_space<smem>>
    %c0_194 = arith.constant 0 : index
    %c1_195 = arith.constant 1 : index
    %c1_196 = arith.constant 1 : index
    %c0_197 = arith.constant 0 : index
    %293 = vector.load %arg3[%c0_194, %c1_195, %c1_196, %c0_197] : memref<1x4x18x18xf32, #tpu.memory_space<vmem>>, vector<1x1x16x16xf32>
    %294 = vector.shape_cast %293 : vector<1x1x16x16xf32> to vector<16x16xf32>
    %295 = vector.broadcast %292 : f32 to vector<16x16xf32>
    %296 = arith.mulf %295, %294 : vector<16x16xf32>
    %297 = arith.addf %291, %296 : vector<16x16xf32>
    %c49 = arith.constant 49 : index
    %298 = memref.load %arg1[%c49] : memref<108xf32, #tpu.memory_space<smem>>
    %c0_198 = arith.constant 0 : index
    %c1_199 = arith.constant 1 : index
    %c1_200 = arith.constant 1 : index
    %c1_201 = arith.constant 1 : index
    %299 = vector.load %arg3[%c0_198, %c1_199, %c1_200, %c1_201] : memref<1x4x18x18xf32, #tpu.memory_space<vmem>>, vector<1x1x16x16xf32>
    %300 = vector.shape_cast %299 : vector<1x1x16x16xf32> to vector<16x16xf32>
    %301 = vector.broadcast %298 : f32 to vector<16x16xf32>
    %302 = arith.mulf %301, %300 : vector<16x16xf32>
    %303 = arith.addf %297, %302 : vector<16x16xf32>
    %c50 = arith.constant 50 : index
    %304 = memref.load %arg1[%c50] : memref<108xf32, #tpu.memory_space<smem>>
    %c0_202 = arith.constant 0 : index
    %c1_203 = arith.constant 1 : index
    %c1_204 = arith.constant 1 : index
    %c2_205 = arith.constant 2 : index
    %305 = vector.load %arg3[%c0_202, %c1_203, %c1_204, %c2_205] : memref<1x4x18x18xf32, #tpu.memory_space<vmem>>, vector<1x1x16x16xf32>
    %306 = vector.shape_cast %305 : vector<1x1x16x16xf32> to vector<16x16xf32>
    %307 = vector.broadcast %304 : f32 to vector<16x16xf32>
    %308 = arith.mulf %307, %306 : vector<16x16xf32>
    %309 = arith.addf %303, %308 : vector<16x16xf32>
    %c51 = arith.constant 51 : index
    %310 = memref.load %arg1[%c51] : memref<108xf32, #tpu.memory_space<smem>>
    %c0_206 = arith.constant 0 : index
    %c1_207 = arith.constant 1 : index
    %c2_208 = arith.constant 2 : index
    %c0_209 = arith.constant 0 : index
    %311 = vector.load %arg3[%c0_206, %c1_207, %c2_208, %c0_209] : memref<1x4x18x18xf32, #tpu.memory_space<vmem>>, vector<1x1x16x16xf32>
    %312 = vector.shape_cast %311 : vector<1x1x16x16xf32> to vector<16x16xf32>
    %313 = vector.broadcast %310 : f32 to vector<16x16xf32>
    %314 = arith.mulf %313, %312 : vector<16x16xf32>
    %315 = arith.addf %309, %314 : vector<16x16xf32>
    %c52 = arith.constant 52 : index
    %316 = memref.load %arg1[%c52] : memref<108xf32, #tpu.memory_space<smem>>
    %c0_210 = arith.constant 0 : index
    %c1_211 = arith.constant 1 : index
    %c2_212 = arith.constant 2 : index
    %c1_213 = arith.constant 1 : index
    %317 = vector.load %arg3[%c0_210, %c1_211, %c2_212, %c1_213] : memref<1x4x18x18xf32, #tpu.memory_space<vmem>>, vector<1x1x16x16xf32>
    %318 = vector.shape_cast %317 : vector<1x1x16x16xf32> to vector<16x16xf32>
    %319 = vector.broadcast %316 : f32 to vector<16x16xf32>
    %320 = arith.mulf %319, %318 : vector<16x16xf32>
    %321 = arith.addf %315, %320 : vector<16x16xf32>
    %c53 = arith.constant 53 : index
    %322 = memref.load %arg1[%c53] : memref<108xf32, #tpu.memory_space<smem>>
    %c0_214 = arith.constant 0 : index
    %c1_215 = arith.constant 1 : index
    %c2_216 = arith.constant 2 : index
    %c2_217 = arith.constant 2 : index
    %323 = vector.load %arg3[%c0_214, %c1_215, %c2_216, %c2_217] : memref<1x4x18x18xf32, #tpu.memory_space<vmem>>, vector<1x1x16x16xf32>
    %324 = vector.shape_cast %323 : vector<1x1x16x16xf32> to vector<16x16xf32>
    %325 = vector.broadcast %322 : f32 to vector<16x16xf32>
    %326 = arith.mulf %325, %324 : vector<16x16xf32>
    %327 = arith.addf %321, %326 : vector<16x16xf32>
    %c54 = arith.constant 54 : index
    %328 = memref.load %arg1[%c54] : memref<108xf32, #tpu.memory_space<smem>>
    %c0_218 = arith.constant 0 : index
    %c2_219 = arith.constant 2 : index
    %c0_220 = arith.constant 0 : index
    %c0_221 = arith.constant 0 : index
    %329 = vector.load %arg3[%c0_218, %c2_219, %c0_220, %c0_221] : memref<1x4x18x18xf32, #tpu.memory_space<vmem>>, vector<1x1x16x16xf32>
    %330 = vector.shape_cast %329 : vector<1x1x16x16xf32> to vector<16x16xf32>
    %331 = vector.broadcast %328 : f32 to vector<16x16xf32>
    %332 = arith.mulf %331, %330 : vector<16x16xf32>
    %333 = arith.addf %327, %332 : vector<16x16xf32>
    %c55 = arith.constant 55 : index
    %334 = memref.load %arg1[%c55] : memref<108xf32, #tpu.memory_space<smem>>
    %c0_222 = arith.constant 0 : index
    %c2_223 = arith.constant 2 : index
    %c0_224 = arith.constant 0 : index
    %c1_225 = arith.constant 1 : index
    %335 = vector.load %arg3[%c0_222, %c2_223, %c0_224, %c1_225] : memref<1x4x18x18xf32, #tpu.memory_space<vmem>>, vector<1x1x16x16xf32>
    %336 = vector.shape_cast %335 : vector<1x1x16x16xf32> to vector<16x16xf32>
    %337 = vector.broadcast %334 : f32 to vector<16x16xf32>
    %338 = arith.mulf %337, %336 : vector<16x16xf32>
    %339 = arith.addf %333, %338 : vector<16x16xf32>
    %c56 = arith.constant 56 : index
    %340 = memref.load %arg1[%c56] : memref<108xf32, #tpu.memory_space<smem>>
    %c0_226 = arith.constant 0 : index
    %c2_227 = arith.constant 2 : index
    %c0_228 = arith.constant 0 : index
    %c2_229 = arith.constant 2 : index
    %341 = vector.load %arg3[%c0_226, %c2_227, %c0_228, %c2_229] : memref<1x4x18x18xf32, #tpu.memory_space<vmem>>, vector<1x1x16x16xf32>
    %342 = vector.shape_cast %341 : vector<1x1x16x16xf32> to vector<16x16xf32>
    %343 = vector.broadcast %340 : f32 to vector<16x16xf32>
    %344 = arith.mulf %343, %342 : vector<16x16xf32>
    %345 = arith.addf %339, %344 : vector<16x16xf32>
    %c57 = arith.constant 57 : index
    %346 = memref.load %arg1[%c57] : memref<108xf32, #tpu.memory_space<smem>>
    %c0_230 = arith.constant 0 : index
    %c2_231 = arith.constant 2 : index
    %c1_232 = arith.constant 1 : index
    %c0_233 = arith.constant 0 : index
    %347 = vector.load %arg3[%c0_230, %c2_231, %c1_232, %c0_233] : memref<1x4x18x18xf32, #tpu.memory_space<vmem>>, vector<1x1x16x16xf32>
    %348 = vector.shape_cast %347 : vector<1x1x16x16xf32> to vector<16x16xf32>
    %349 = vector.broadcast %346 : f32 to vector<16x16xf32>
    %350 = arith.mulf %349, %348 : vector<16x16xf32>
    %351 = arith.addf %345, %350 : vector<16x16xf32>
    %c58 = arith.constant 58 : index
    %352 = memref.load %arg1[%c58] : memref<108xf32, #tpu.memory_space<smem>>
    %c0_234 = arith.constant 0 : index
    %c2_235 = arith.constant 2 : index
    %c1_236 = arith.constant 1 : index
    %c1_237 = arith.constant 1 : index
    %353 = vector.load %arg3[%c0_234, %c2_235, %c1_236, %c1_237] : memref<1x4x18x18xf32, #tpu.memory_space<vmem>>, vector<1x1x16x16xf32>
    %354 = vector.shape_cast %353 : vector<1x1x16x16xf32> to vector<16x16xf32>
    %355 = vector.broadcast %352 : f32 to vector<16x16xf32>
    %356 = arith.mulf %355, %354 : vector<16x16xf32>
    %357 = arith.addf %351, %356 : vector<16x16xf32>
    %c59 = arith.constant 59 : index
    %358 = memref.load %arg1[%c59] : memref<108xf32, #tpu.memory_space<smem>>
    %c0_238 = arith.constant 0 : index
    %c2_239 = arith.constant 2 : index
    %c1_240 = arith.constant 1 : index
    %c2_241 = arith.constant 2 : index
    %359 = vector.load %arg3[%c0_238, %c2_239, %c1_240, %c2_241] : memref<1x4x18x18xf32, #tpu.memory_space<vmem>>, vector<1x1x16x16xf32>
    %360 = vector.shape_cast %359 : vector<1x1x16x16xf32> to vector<16x16xf32>
    %361 = vector.broadcast %358 : f32 to vector<16x16xf32>
    %362 = arith.mulf %361, %360 : vector<16x16xf32>
    %363 = arith.addf %357, %362 : vector<16x16xf32>
    %c60 = arith.constant 60 : index
    %364 = memref.load %arg1[%c60] : memref<108xf32, #tpu.memory_space<smem>>
    %c0_242 = arith.constant 0 : index
    %c2_243 = arith.constant 2 : index
    %c2_244 = arith.constant 2 : index
    %c0_245 = arith.constant 0 : index
    %365 = vector.load %arg3[%c0_242, %c2_243, %c2_244, %c0_245] : memref<1x4x18x18xf32, #tpu.memory_space<vmem>>, vector<1x1x16x16xf32>
    %366 = vector.shape_cast %365 : vector<1x1x16x16xf32> to vector<16x16xf32>
    %367 = vector.broadcast %364 : f32 to vector<16x16xf32>
    %368 = arith.mulf %367, %366 : vector<16x16xf32>
    %369 = arith.addf %363, %368 : vector<16x16xf32>
    %c61 = arith.constant 61 : index
    %370 = memref.load %arg1[%c61] : memref<108xf32, #tpu.memory_space<smem>>
    %c0_246 = arith.constant 0 : index
    %c2_247 = arith.constant 2 : index
    %c2_248 = arith.constant 2 : index
    %c1_249 = arith.constant 1 : index
    %371 = vector.load %arg3[%c0_246, %c2_247, %c2_248, %c1_249] : memref<1x4x18x18xf32, #tpu.memory_space<vmem>>, vector<1x1x16x16xf32>
    %372 = vector.shape_cast %371 : vector<1x1x16x16xf32> to vector<16x16xf32>
    %373 = vector.broadcast %370 : f32 to vector<16x16xf32>
    %374 = arith.mulf %373, %372 : vector<16x16xf32>
    %375 = arith.addf %369, %374 : vector<16x16xf32>
    %c62 = arith.constant 62 : index
    %376 = memref.load %arg1[%c62] : memref<108xf32, #tpu.memory_space<smem>>
    %c0_250 = arith.constant 0 : index
    %c2_251 = arith.constant 2 : index
    %c2_252 = arith.constant 2 : index
    %c2_253 = arith.constant 2 : index
    %377 = vector.load %arg3[%c0_250, %c2_251, %c2_252, %c2_253] : memref<1x4x18x18xf32, #tpu.memory_space<vmem>>, vector<1x1x16x16xf32>
    %378 = vector.shape_cast %377 : vector<1x1x16x16xf32> to vector<16x16xf32>
    %379 = vector.broadcast %376 : f32 to vector<16x16xf32>
    %380 = arith.mulf %379, %378 : vector<16x16xf32>
    %381 = arith.addf %375, %380 : vector<16x16xf32>
    %c63 = arith.constant 63 : index
    %382 = memref.load %arg1[%c63] : memref<108xf32, #tpu.memory_space<smem>>
    %c0_254 = arith.constant 0 : index
    %c3_255 = arith.constant 3 : index
    %c0_256 = arith.constant 0 : index
    %c0_257 = arith.constant 0 : index
    %383 = vector.load %arg3[%c0_254, %c3_255, %c0_256, %c0_257] : memref<1x4x18x18xf32, #tpu.memory_space<vmem>>, vector<1x1x16x16xf32>
    %384 = vector.shape_cast %383 : vector<1x1x16x16xf32> to vector<16x16xf32>
    %385 = vector.broadcast %382 : f32 to vector<16x16xf32>
    %386 = arith.mulf %385, %384 : vector<16x16xf32>
    %387 = arith.addf %381, %386 : vector<16x16xf32>
    %c64 = arith.constant 64 : index
    %388 = memref.load %arg1[%c64] : memref<108xf32, #tpu.memory_space<smem>>
    %c0_258 = arith.constant 0 : index
    %c3_259 = arith.constant 3 : index
    %c0_260 = arith.constant 0 : index
    %c1_261 = arith.constant 1 : index
    %389 = vector.load %arg3[%c0_258, %c3_259, %c0_260, %c1_261] : memref<1x4x18x18xf32, #tpu.memory_space<vmem>>, vector<1x1x16x16xf32>
    %390 = vector.shape_cast %389 : vector<1x1x16x16xf32> to vector<16x16xf32>
    %391 = vector.broadcast %388 : f32 to vector<16x16xf32>
    %392 = arith.mulf %391, %390 : vector<16x16xf32>
    %393 = arith.addf %387, %392 : vector<16x16xf32>
    %c65 = arith.constant 65 : index
    %394 = memref.load %arg1[%c65] : memref<108xf32, #tpu.memory_space<smem>>
    %c0_262 = arith.constant 0 : index
    %c3_263 = arith.constant 3 : index
    %c0_264 = arith.constant 0 : index
    %c2_265 = arith.constant 2 : index
    %395 = vector.load %arg3[%c0_262, %c3_263, %c0_264, %c2_265] : memref<1x4x18x18xf32, #tpu.memory_space<vmem>>, vector<1x1x16x16xf32>
    %396 = vector.shape_cast %395 : vector<1x1x16x16xf32> to vector<16x16xf32>
    %397 = vector.broadcast %394 : f32 to vector<16x16xf32>
    %398 = arith.mulf %397, %396 : vector<16x16xf32>
    %399 = arith.addf %393, %398 : vector<16x16xf32>
    %c66 = arith.constant 66 : index
    %400 = memref.load %arg1[%c66] : memref<108xf32, #tpu.memory_space<smem>>
    %c0_266 = arith.constant 0 : index
    %c3_267 = arith.constant 3 : index
    %c1_268 = arith.constant 1 : index
    %c0_269 = arith.constant 0 : index
    %401 = vector.load %arg3[%c0_266, %c3_267, %c1_268, %c0_269] : memref<1x4x18x18xf32, #tpu.memory_space<vmem>>, vector<1x1x16x16xf32>
    %402 = vector.shape_cast %401 : vector<1x1x16x16xf32> to vector<16x16xf32>
    %403 = vector.broadcast %400 : f32 to vector<16x16xf32>
    %404 = arith.mulf %403, %402 : vector<16x16xf32>
    %405 = arith.addf %399, %404 : vector<16x16xf32>
    %c67 = arith.constant 67 : index
    %406 = memref.load %arg1[%c67] : memref<108xf32, #tpu.memory_space<smem>>
    %c0_270 = arith.constant 0 : index
    %c3_271 = arith.constant 3 : index
    %c1_272 = arith.constant 1 : index
    %c1_273 = arith.constant 1 : index
    %407 = vector.load %arg3[%c0_270, %c3_271, %c1_272, %c1_273] : memref<1x4x18x18xf32, #tpu.memory_space<vmem>>, vector<1x1x16x16xf32>
    %408 = vector.shape_cast %407 : vector<1x1x16x16xf32> to vector<16x16xf32>
    %409 = vector.broadcast %406 : f32 to vector<16x16xf32>
    %410 = arith.mulf %409, %408 : vector<16x16xf32>
    %411 = arith.addf %405, %410 : vector<16x16xf32>
    %c68 = arith.constant 68 : index
    %412 = memref.load %arg1[%c68] : memref<108xf32, #tpu.memory_space<smem>>
    %c0_274 = arith.constant 0 : index
    %c3_275 = arith.constant 3 : index
    %c1_276 = arith.constant 1 : index
    %c2_277 = arith.constant 2 : index
    %413 = vector.load %arg3[%c0_274, %c3_275, %c1_276, %c2_277] : memref<1x4x18x18xf32, #tpu.memory_space<vmem>>, vector<1x1x16x16xf32>
    %414 = vector.shape_cast %413 : vector<1x1x16x16xf32> to vector<16x16xf32>
    %415 = vector.broadcast %412 : f32 to vector<16x16xf32>
    %416 = arith.mulf %415, %414 : vector<16x16xf32>
    %417 = arith.addf %411, %416 : vector<16x16xf32>
    %c69 = arith.constant 69 : index
    %418 = memref.load %arg1[%c69] : memref<108xf32, #tpu.memory_space<smem>>
    %c0_278 = arith.constant 0 : index
    %c3_279 = arith.constant 3 : index
    %c2_280 = arith.constant 2 : index
    %c0_281 = arith.constant 0 : index
    %419 = vector.load %arg3[%c0_278, %c3_279, %c2_280, %c0_281] : memref<1x4x18x18xf32, #tpu.memory_space<vmem>>, vector<1x1x16x16xf32>
    %420 = vector.shape_cast %419 : vector<1x1x16x16xf32> to vector<16x16xf32>
    %421 = vector.broadcast %418 : f32 to vector<16x16xf32>
    %422 = arith.mulf %421, %420 : vector<16x16xf32>
    %423 = arith.addf %417, %422 : vector<16x16xf32>
    %c70 = arith.constant 70 : index
    %424 = memref.load %arg1[%c70] : memref<108xf32, #tpu.memory_space<smem>>
    %c0_282 = arith.constant 0 : index
    %c3_283 = arith.constant 3 : index
    %c2_284 = arith.constant 2 : index
    %c1_285 = arith.constant 1 : index
    %425 = vector.load %arg3[%c0_282, %c3_283, %c2_284, %c1_285] : memref<1x4x18x18xf32, #tpu.memory_space<vmem>>, vector<1x1x16x16xf32>
    %426 = vector.shape_cast %425 : vector<1x1x16x16xf32> to vector<16x16xf32>
    %427 = vector.broadcast %424 : f32 to vector<16x16xf32>
    %428 = arith.mulf %427, %426 : vector<16x16xf32>
    %429 = arith.addf %423, %428 : vector<16x16xf32>
    %c71 = arith.constant 71 : index
    %430 = memref.load %arg1[%c71] : memref<108xf32, #tpu.memory_space<smem>>
    %c0_286 = arith.constant 0 : index
    %c3_287 = arith.constant 3 : index
    %c2_288 = arith.constant 2 : index
    %c2_289 = arith.constant 2 : index
    %431 = vector.load %arg3[%c0_286, %c3_287, %c2_288, %c2_289] : memref<1x4x18x18xf32, #tpu.memory_space<vmem>>, vector<1x1x16x16xf32>
    %432 = vector.shape_cast %431 : vector<1x1x16x16xf32> to vector<16x16xf32>
    %433 = vector.broadcast %430 : f32 to vector<16x16xf32>
    %434 = arith.mulf %433, %432 : vector<16x16xf32>
    %435 = arith.addf %429, %434 : vector<16x16xf32>
    %c2_290 = arith.constant 2 : index
    %436 = memref.load %arg2[%c2_290] : memref<3xf32, #tpu.memory_space<smem>>
    %437 = vector.broadcast %436 : f32 to vector<16x16xf32>
    %c72 = arith.constant 72 : index
    %438 = memref.load %arg1[%c72] : memref<108xf32, #tpu.memory_space<smem>>
    %c0_291 = arith.constant 0 : index
    %c0_292 = arith.constant 0 : index
    %c0_293 = arith.constant 0 : index
    %c0_294 = arith.constant 0 : index
    %439 = vector.load %arg3[%c0_291, %c0_292, %c0_293, %c0_294] : memref<1x4x18x18xf32, #tpu.memory_space<vmem>>, vector<1x1x16x16xf32>
    %440 = vector.shape_cast %439 : vector<1x1x16x16xf32> to vector<16x16xf32>
    %441 = vector.broadcast %438 : f32 to vector<16x16xf32>
    %442 = arith.mulf %441, %440 : vector<16x16xf32>
    %443 = arith.addf %437, %442 : vector<16x16xf32>
    %c73 = arith.constant 73 : index
    %444 = memref.load %arg1[%c73] : memref<108xf32, #tpu.memory_space<smem>>
    %c0_295 = arith.constant 0 : index
    %c0_296 = arith.constant 0 : index
    %c0_297 = arith.constant 0 : index
    %c1_298 = arith.constant 1 : index
    %445 = vector.load %arg3[%c0_295, %c0_296, %c0_297, %c1_298] : memref<1x4x18x18xf32, #tpu.memory_space<vmem>>, vector<1x1x16x16xf32>
    %446 = vector.shape_cast %445 : vector<1x1x16x16xf32> to vector<16x16xf32>
    %447 = vector.broadcast %444 : f32 to vector<16x16xf32>
    %448 = arith.mulf %447, %446 : vector<16x16xf32>
    %449 = arith.addf %443, %448 : vector<16x16xf32>
    %c74 = arith.constant 74 : index
    %450 = memref.load %arg1[%c74] : memref<108xf32, #tpu.memory_space<smem>>
    %c0_299 = arith.constant 0 : index
    %c0_300 = arith.constant 0 : index
    %c0_301 = arith.constant 0 : index
    %c2_302 = arith.constant 2 : index
    %451 = vector.load %arg3[%c0_299, %c0_300, %c0_301, %c2_302] : memref<1x4x18x18xf32, #tpu.memory_space<vmem>>, vector<1x1x16x16xf32>
    %452 = vector.shape_cast %451 : vector<1x1x16x16xf32> to vector<16x16xf32>
    %453 = vector.broadcast %450 : f32 to vector<16x16xf32>
    %454 = arith.mulf %453, %452 : vector<16x16xf32>
    %455 = arith.addf %449, %454 : vector<16x16xf32>
    %c75 = arith.constant 75 : index
    %456 = memref.load %arg1[%c75] : memref<108xf32, #tpu.memory_space<smem>>
    %c0_303 = arith.constant 0 : index
    %c0_304 = arith.constant 0 : index
    %c1_305 = arith.constant 1 : index
    %c0_306 = arith.constant 0 : index
    %457 = vector.load %arg3[%c0_303, %c0_304, %c1_305, %c0_306] : memref<1x4x18x18xf32, #tpu.memory_space<vmem>>, vector<1x1x16x16xf32>
    %458 = vector.shape_cast %457 : vector<1x1x16x16xf32> to vector<16x16xf32>
    %459 = vector.broadcast %456 : f32 to vector<16x16xf32>
    %460 = arith.mulf %459, %458 : vector<16x16xf32>
    %461 = arith.addf %455, %460 : vector<16x16xf32>
    %c76 = arith.constant 76 : index
    %462 = memref.load %arg1[%c76] : memref<108xf32, #tpu.memory_space<smem>>
    %c0_307 = arith.constant 0 : index
    %c0_308 = arith.constant 0 : index
    %c1_309 = arith.constant 1 : index
    %c1_310 = arith.constant 1 : index
    %463 = vector.load %arg3[%c0_307, %c0_308, %c1_309, %c1_310] : memref<1x4x18x18xf32, #tpu.memory_space<vmem>>, vector<1x1x16x16xf32>
    %464 = vector.shape_cast %463 : vector<1x1x16x16xf32> to vector<16x16xf32>
    %465 = vector.broadcast %462 : f32 to vector<16x16xf32>
    %466 = arith.mulf %465, %464 : vector<16x16xf32>
    %467 = arith.addf %461, %466 : vector<16x16xf32>
    %c77 = arith.constant 77 : index
    %468 = memref.load %arg1[%c77] : memref<108xf32, #tpu.memory_space<smem>>
    %c0_311 = arith.constant 0 : index
    %c0_312 = arith.constant 0 : index
    %c1_313 = arith.constant 1 : index
    %c2_314 = arith.constant 2 : index
    %469 = vector.load %arg3[%c0_311, %c0_312, %c1_313, %c2_314] : memref<1x4x18x18xf32, #tpu.memory_space<vmem>>, vector<1x1x16x16xf32>
    %470 = vector.shape_cast %469 : vector<1x1x16x16xf32> to vector<16x16xf32>
    %471 = vector.broadcast %468 : f32 to vector<16x16xf32>
    %472 = arith.mulf %471, %470 : vector<16x16xf32>
    %473 = arith.addf %467, %472 : vector<16x16xf32>
    %c78 = arith.constant 78 : index
    %474 = memref.load %arg1[%c78] : memref<108xf32, #tpu.memory_space<smem>>
    %c0_315 = arith.constant 0 : index
    %c0_316 = arith.constant 0 : index
    %c2_317 = arith.constant 2 : index
    %c0_318 = arith.constant 0 : index
    %475 = vector.load %arg3[%c0_315, %c0_316, %c2_317, %c0_318] : memref<1x4x18x18xf32, #tpu.memory_space<vmem>>, vector<1x1x16x16xf32>
    %476 = vector.shape_cast %475 : vector<1x1x16x16xf32> to vector<16x16xf32>
    %477 = vector.broadcast %474 : f32 to vector<16x16xf32>
    %478 = arith.mulf %477, %476 : vector<16x16xf32>
    %479 = arith.addf %473, %478 : vector<16x16xf32>
    %c79 = arith.constant 79 : index
    %480 = memref.load %arg1[%c79] : memref<108xf32, #tpu.memory_space<smem>>
    %c0_319 = arith.constant 0 : index
    %c0_320 = arith.constant 0 : index
    %c2_321 = arith.constant 2 : index
    %c1_322 = arith.constant 1 : index
    %481 = vector.load %arg3[%c0_319, %c0_320, %c2_321, %c1_322] : memref<1x4x18x18xf32, #tpu.memory_space<vmem>>, vector<1x1x16x16xf32>
    %482 = vector.shape_cast %481 : vector<1x1x16x16xf32> to vector<16x16xf32>
    %483 = vector.broadcast %480 : f32 to vector<16x16xf32>
    %484 = arith.mulf %483, %482 : vector<16x16xf32>
    %485 = arith.addf %479, %484 : vector<16x16xf32>
    %c80 = arith.constant 80 : index
    %486 = memref.load %arg1[%c80] : memref<108xf32, #tpu.memory_space<smem>>
    %c0_323 = arith.constant 0 : index
    %c0_324 = arith.constant 0 : index
    %c2_325 = arith.constant 2 : index
    %c2_326 = arith.constant 2 : index
    %487 = vector.load %arg3[%c0_323, %c0_324, %c2_325, %c2_326] : memref<1x4x18x18xf32, #tpu.memory_space<vmem>>, vector<1x1x16x16xf32>
    %488 = vector.shape_cast %487 : vector<1x1x16x16xf32> to vector<16x16xf32>
    %489 = vector.broadcast %486 : f32 to vector<16x16xf32>
    %490 = arith.mulf %489, %488 : vector<16x16xf32>
    %491 = arith.addf %485, %490 : vector<16x16xf32>
    %c81 = arith.constant 81 : index
    %492 = memref.load %arg1[%c81] : memref<108xf32, #tpu.memory_space<smem>>
    %c0_327 = arith.constant 0 : index
    %c1_328 = arith.constant 1 : index
    %c0_329 = arith.constant 0 : index
    %c0_330 = arith.constant 0 : index
    %493 = vector.load %arg3[%c0_327, %c1_328, %c0_329, %c0_330] : memref<1x4x18x18xf32, #tpu.memory_space<vmem>>, vector<1x1x16x16xf32>
    %494 = vector.shape_cast %493 : vector<1x1x16x16xf32> to vector<16x16xf32>
    %495 = vector.broadcast %492 : f32 to vector<16x16xf32>
    %496 = arith.mulf %495, %494 : vector<16x16xf32>
    %497 = arith.addf %491, %496 : vector<16x16xf32>
    %c82 = arith.constant 82 : index
    %498 = memref.load %arg1[%c82] : memref<108xf32, #tpu.memory_space<smem>>
    %c0_331 = arith.constant 0 : index
    %c1_332 = arith.constant 1 : index
    %c0_333 = arith.constant 0 : index
    %c1_334 = arith.constant 1 : index
    %499 = vector.load %arg3[%c0_331, %c1_332, %c0_333, %c1_334] : memref<1x4x18x18xf32, #tpu.memory_space<vmem>>, vector<1x1x16x16xf32>
    %500 = vector.shape_cast %499 : vector<1x1x16x16xf32> to vector<16x16xf32>
    %501 = vector.broadcast %498 : f32 to vector<16x16xf32>
    %502 = arith.mulf %501, %500 : vector<16x16xf32>
    %503 = arith.addf %497, %502 : vector<16x16xf32>
    %c83 = arith.constant 83 : index
    %504 = memref.load %arg1[%c83] : memref<108xf32, #tpu.memory_space<smem>>
    %c0_335 = arith.constant 0 : index
    %c1_336 = arith.constant 1 : index
    %c0_337 = arith.constant 0 : index
    %c2_338 = arith.constant 2 : index
    %505 = vector.load %arg3[%c0_335, %c1_336, %c0_337, %c2_338] : memref<1x4x18x18xf32, #tpu.memory_space<vmem>>, vector<1x1x16x16xf32>
    %506 = vector.shape_cast %505 : vector<1x1x16x16xf32> to vector<16x16xf32>
    %507 = vector.broadcast %504 : f32 to vector<16x16xf32>
    %508 = arith.mulf %507, %506 : vector<16x16xf32>
    %509 = arith.addf %503, %508 : vector<16x16xf32>
    %c84 = arith.constant 84 : index
    %510 = memref.load %arg1[%c84] : memref<108xf32, #tpu.memory_space<smem>>
    %c0_339 = arith.constant 0 : index
    %c1_340 = arith.constant 1 : index
    %c1_341 = arith.constant 1 : index
    %c0_342 = arith.constant 0 : index
    %511 = vector.load %arg3[%c0_339, %c1_340, %c1_341, %c0_342] : memref<1x4x18x18xf32, #tpu.memory_space<vmem>>, vector<1x1x16x16xf32>
    %512 = vector.shape_cast %511 : vector<1x1x16x16xf32> to vector<16x16xf32>
    %513 = vector.broadcast %510 : f32 to vector<16x16xf32>
    %514 = arith.mulf %513, %512 : vector<16x16xf32>
    %515 = arith.addf %509, %514 : vector<16x16xf32>
    %c85 = arith.constant 85 : index
    %516 = memref.load %arg1[%c85] : memref<108xf32, #tpu.memory_space<smem>>
    %c0_343 = arith.constant 0 : index
    %c1_344 = arith.constant 1 : index
    %c1_345 = arith.constant 1 : index
    %c1_346 = arith.constant 1 : index
    %517 = vector.load %arg3[%c0_343, %c1_344, %c1_345, %c1_346] : memref<1x4x18x18xf32, #tpu.memory_space<vmem>>, vector<1x1x16x16xf32>
    %518 = vector.shape_cast %517 : vector<1x1x16x16xf32> to vector<16x16xf32>
    %519 = vector.broadcast %516 : f32 to vector<16x16xf32>
    %520 = arith.mulf %519, %518 : vector<16x16xf32>
    %521 = arith.addf %515, %520 : vector<16x16xf32>
    %c86 = arith.constant 86 : index
    %522 = memref.load %arg1[%c86] : memref<108xf32, #tpu.memory_space<smem>>
    %c0_347 = arith.constant 0 : index
    %c1_348 = arith.constant 1 : index
    %c1_349 = arith.constant 1 : index
    %c2_350 = arith.constant 2 : index
    %523 = vector.load %arg3[%c0_347, %c1_348, %c1_349, %c2_350] : memref<1x4x18x18xf32, #tpu.memory_space<vmem>>, vector<1x1x16x16xf32>
    %524 = vector.shape_cast %523 : vector<1x1x16x16xf32> to vector<16x16xf32>
    %525 = vector.broadcast %522 : f32 to vector<16x16xf32>
    %526 = arith.mulf %525, %524 : vector<16x16xf32>
    %527 = arith.addf %521, %526 : vector<16x16xf32>
    %c87 = arith.constant 87 : index
    %528 = memref.load %arg1[%c87] : memref<108xf32, #tpu.memory_space<smem>>
    %c0_351 = arith.constant 0 : index
    %c1_352 = arith.constant 1 : index
    %c2_353 = arith.constant 2 : index
    %c0_354 = arith.constant 0 : index
    %529 = vector.load %arg3[%c0_351, %c1_352, %c2_353, %c0_354] : memref<1x4x18x18xf32, #tpu.memory_space<vmem>>, vector<1x1x16x16xf32>
    %530 = vector.shape_cast %529 : vector<1x1x16x16xf32> to vector<16x16xf32>
    %531 = vector.broadcast %528 : f32 to vector<16x16xf32>
    %532 = arith.mulf %531, %530 : vector<16x16xf32>
    %533 = arith.addf %527, %532 : vector<16x16xf32>
    %c88 = arith.constant 88 : index
    %534 = memref.load %arg1[%c88] : memref<108xf32, #tpu.memory_space<smem>>
    %c0_355 = arith.constant 0 : index
    %c1_356 = arith.constant 1 : index
    %c2_357 = arith.constant 2 : index
    %c1_358 = arith.constant 1 : index
    %535 = vector.load %arg3[%c0_355, %c1_356, %c2_357, %c1_358] : memref<1x4x18x18xf32, #tpu.memory_space<vmem>>, vector<1x1x16x16xf32>
    %536 = vector.shape_cast %535 : vector<1x1x16x16xf32> to vector<16x16xf32>
    %537 = vector.broadcast %534 : f32 to vector<16x16xf32>
    %538 = arith.mulf %537, %536 : vector<16x16xf32>
    %539 = arith.addf %533, %538 : vector<16x16xf32>
    %c89 = arith.constant 89 : index
    %540 = memref.load %arg1[%c89] : memref<108xf32, #tpu.memory_space<smem>>
    %c0_359 = arith.constant 0 : index
    %c1_360 = arith.constant 1 : index
    %c2_361 = arith.constant 2 : index
    %c2_362 = arith.constant 2 : index
    %541 = vector.load %arg3[%c0_359, %c1_360, %c2_361, %c2_362] : memref<1x4x18x18xf32, #tpu.memory_space<vmem>>, vector<1x1x16x16xf32>
    %542 = vector.shape_cast %541 : vector<1x1x16x16xf32> to vector<16x16xf32>
    %543 = vector.broadcast %540 : f32 to vector<16x16xf32>
    %544 = arith.mulf %543, %542 : vector<16x16xf32>
    %545 = arith.addf %539, %544 : vector<16x16xf32>
    %c90 = arith.constant 90 : index
    %546 = memref.load %arg1[%c90] : memref<108xf32, #tpu.memory_space<smem>>
    %c0_363 = arith.constant 0 : index
    %c2_364 = arith.constant 2 : index
    %c0_365 = arith.constant 0 : index
    %c0_366 = arith.constant 0 : index
    %547 = vector.load %arg3[%c0_363, %c2_364, %c0_365, %c0_366] : memref<1x4x18x18xf32, #tpu.memory_space<vmem>>, vector<1x1x16x16xf32>
    %548 = vector.shape_cast %547 : vector<1x1x16x16xf32> to vector<16x16xf32>
    %549 = vector.broadcast %546 : f32 to vector<16x16xf32>
    %550 = arith.mulf %549, %548 : vector<16x16xf32>
    %551 = arith.addf %545, %550 : vector<16x16xf32>
    %c91 = arith.constant 91 : index
    %552 = memref.load %arg1[%c91] : memref<108xf32, #tpu.memory_space<smem>>
    %c0_367 = arith.constant 0 : index
    %c2_368 = arith.constant 2 : index
    %c0_369 = arith.constant 0 : index
    %c1_370 = arith.constant 1 : index
    %553 = vector.load %arg3[%c0_367, %c2_368, %c0_369, %c1_370] : memref<1x4x18x18xf32, #tpu.memory_space<vmem>>, vector<1x1x16x16xf32>
    %554 = vector.shape_cast %553 : vector<1x1x16x16xf32> to vector<16x16xf32>
    %555 = vector.broadcast %552 : f32 to vector<16x16xf32>
    %556 = arith.mulf %555, %554 : vector<16x16xf32>
    %557 = arith.addf %551, %556 : vector<16x16xf32>
    %c92 = arith.constant 92 : index
    %558 = memref.load %arg1[%c92] : memref<108xf32, #tpu.memory_space<smem>>
    %c0_371 = arith.constant 0 : index
    %c2_372 = arith.constant 2 : index
    %c0_373 = arith.constant 0 : index
    %c2_374 = arith.constant 2 : index
    %559 = vector.load %arg3[%c0_371, %c2_372, %c0_373, %c2_374] : memref<1x4x18x18xf32, #tpu.memory_space<vmem>>, vector<1x1x16x16xf32>
    %560 = vector.shape_cast %559 : vector<1x1x16x16xf32> to vector<16x16xf32>
    %561 = vector.broadcast %558 : f32 to vector<16x16xf32>
    %562 = arith.mulf %561, %560 : vector<16x16xf32>
    %563 = arith.addf %557, %562 : vector<16x16xf32>
    %c93 = arith.constant 93 : index
    %564 = memref.load %arg1[%c93] : memref<108xf32, #tpu.memory_space<smem>>
    %c0_375 = arith.constant 0 : index
    %c2_376 = arith.constant 2 : index
    %c1_377 = arith.constant 1 : index
    %c0_378 = arith.constant 0 : index
    %565 = vector.load %arg3[%c0_375, %c2_376, %c1_377, %c0_378] : memref<1x4x18x18xf32, #tpu.memory_space<vmem>>, vector<1x1x16x16xf32>
    %566 = vector.shape_cast %565 : vector<1x1x16x16xf32> to vector<16x16xf32>
    %567 = vector.broadcast %564 : f32 to vector<16x16xf32>
    %568 = arith.mulf %567, %566 : vector<16x16xf32>
    %569 = arith.addf %563, %568 : vector<16x16xf32>
    %c94 = arith.constant 94 : index
    %570 = memref.load %arg1[%c94] : memref<108xf32, #tpu.memory_space<smem>>
    %c0_379 = arith.constant 0 : index
    %c2_380 = arith.constant 2 : index
    %c1_381 = arith.constant 1 : index
    %c1_382 = arith.constant 1 : index
    %571 = vector.load %arg3[%c0_379, %c2_380, %c1_381, %c1_382] : memref<1x4x18x18xf32, #tpu.memory_space<vmem>>, vector<1x1x16x16xf32>
    %572 = vector.shape_cast %571 : vector<1x1x16x16xf32> to vector<16x16xf32>
    %573 = vector.broadcast %570 : f32 to vector<16x16xf32>
    %574 = arith.mulf %573, %572 : vector<16x16xf32>
    %575 = arith.addf %569, %574 : vector<16x16xf32>
    %c95 = arith.constant 95 : index
    %576 = memref.load %arg1[%c95] : memref<108xf32, #tpu.memory_space<smem>>
    %c0_383 = arith.constant 0 : index
    %c2_384 = arith.constant 2 : index
    %c1_385 = arith.constant 1 : index
    %c2_386 = arith.constant 2 : index
    %577 = vector.load %arg3[%c0_383, %c2_384, %c1_385, %c2_386] : memref<1x4x18x18xf32, #tpu.memory_space<vmem>>, vector<1x1x16x16xf32>
    %578 = vector.shape_cast %577 : vector<1x1x16x16xf32> to vector<16x16xf32>
    %579 = vector.broadcast %576 : f32 to vector<16x16xf32>
    %580 = arith.mulf %579, %578 : vector<16x16xf32>
    %581 = arith.addf %575, %580 : vector<16x16xf32>
    %c96 = arith.constant 96 : index
    %582 = memref.load %arg1[%c96] : memref<108xf32, #tpu.memory_space<smem>>
    %c0_387 = arith.constant 0 : index
    %c2_388 = arith.constant 2 : index
    %c2_389 = arith.constant 2 : index
    %c0_390 = arith.constant 0 : index
    %583 = vector.load %arg3[%c0_387, %c2_388, %c2_389, %c0_390] : memref<1x4x18x18xf32, #tpu.memory_space<vmem>>, vector<1x1x16x16xf32>
    %584 = vector.shape_cast %583 : vector<1x1x16x16xf32> to vector<16x16xf32>
    %585 = vector.broadcast %582 : f32 to vector<16x16xf32>
    %586 = arith.mulf %585, %584 : vector<16x16xf32>
    %587 = arith.addf %581, %586 : vector<16x16xf32>
    %c97 = arith.constant 97 : index
    %588 = memref.load %arg1[%c97] : memref<108xf32, #tpu.memory_space<smem>>
    %c0_391 = arith.constant 0 : index
    %c2_392 = arith.constant 2 : index
    %c2_393 = arith.constant 2 : index
    %c1_394 = arith.constant 1 : index
    %589 = vector.load %arg3[%c0_391, %c2_392, %c2_393, %c1_394] : memref<1x4x18x18xf32, #tpu.memory_space<vmem>>, vector<1x1x16x16xf32>
    %590 = vector.shape_cast %589 : vector<1x1x16x16xf32> to vector<16x16xf32>
    %591 = vector.broadcast %588 : f32 to vector<16x16xf32>
    %592 = arith.mulf %591, %590 : vector<16x16xf32>
    %593 = arith.addf %587, %592 : vector<16x16xf32>
    %c98 = arith.constant 98 : index
    %594 = memref.load %arg1[%c98] : memref<108xf32, #tpu.memory_space<smem>>
    %c0_395 = arith.constant 0 : index
    %c2_396 = arith.constant 2 : index
    %c2_397 = arith.constant 2 : index
    %c2_398 = arith.constant 2 : index
    %595 = vector.load %arg3[%c0_395, %c2_396, %c2_397, %c2_398] : memref<1x4x18x18xf32, #tpu.memory_space<vmem>>, vector<1x1x16x16xf32>
    %596 = vector.shape_cast %595 : vector<1x1x16x16xf32> to vector<16x16xf32>
    %597 = vector.broadcast %594 : f32 to vector<16x16xf32>
    %598 = arith.mulf %597, %596 : vector<16x16xf32>
    %599 = arith.addf %593, %598 : vector<16x16xf32>
    %c99 = arith.constant 99 : index
    %600 = memref.load %arg1[%c99] : memref<108xf32, #tpu.memory_space<smem>>
    %c0_399 = arith.constant 0 : index
    %c3_400 = arith.constant 3 : index
    %c0_401 = arith.constant 0 : index
    %c0_402 = arith.constant 0 : index
    %601 = vector.load %arg3[%c0_399, %c3_400, %c0_401, %c0_402] : memref<1x4x18x18xf32, #tpu.memory_space<vmem>>, vector<1x1x16x16xf32>
    %602 = vector.shape_cast %601 : vector<1x1x16x16xf32> to vector<16x16xf32>
    %603 = vector.broadcast %600 : f32 to vector<16x16xf32>
    %604 = arith.mulf %603, %602 : vector<16x16xf32>
    %605 = arith.addf %599, %604 : vector<16x16xf32>
    %c100 = arith.constant 100 : index
    %606 = memref.load %arg1[%c100] : memref<108xf32, #tpu.memory_space<smem>>
    %c0_403 = arith.constant 0 : index
    %c3_404 = arith.constant 3 : index
    %c0_405 = arith.constant 0 : index
    %c1_406 = arith.constant 1 : index
    %607 = vector.load %arg3[%c0_403, %c3_404, %c0_405, %c1_406] : memref<1x4x18x18xf32, #tpu.memory_space<vmem>>, vector<1x1x16x16xf32>
    %608 = vector.shape_cast %607 : vector<1x1x16x16xf32> to vector<16x16xf32>
    %609 = vector.broadcast %606 : f32 to vector<16x16xf32>
    %610 = arith.mulf %609, %608 : vector<16x16xf32>
    %611 = arith.addf %605, %610 : vector<16x16xf32>
    %c101 = arith.constant 101 : index
    %612 = memref.load %arg1[%c101] : memref<108xf32, #tpu.memory_space<smem>>
    %c0_407 = arith.constant 0 : index
    %c3_408 = arith.constant 3 : index
    %c0_409 = arith.constant 0 : index
    %c2_410 = arith.constant 2 : index
    %613 = vector.load %arg3[%c0_407, %c3_408, %c0_409, %c2_410] : memref<1x4x18x18xf32, #tpu.memory_space<vmem>>, vector<1x1x16x16xf32>
    %614 = vector.shape_cast %613 : vector<1x1x16x16xf32> to vector<16x16xf32>
    %615 = vector.broadcast %612 : f32 to vector<16x16xf32>
    %616 = arith.mulf %615, %614 : vector<16x16xf32>
    %617 = arith.addf %611, %616 : vector<16x16xf32>
    %c102 = arith.constant 102 : index
    %618 = memref.load %arg1[%c102] : memref<108xf32, #tpu.memory_space<smem>>
    %c0_411 = arith.constant 0 : index
    %c3_412 = arith.constant 3 : index
    %c1_413 = arith.constant 1 : index
    %c0_414 = arith.constant 0 : index
    %619 = vector.load %arg3[%c0_411, %c3_412, %c1_413, %c0_414] : memref<1x4x18x18xf32, #tpu.memory_space<vmem>>, vector<1x1x16x16xf32>
    %620 = vector.shape_cast %619 : vector<1x1x16x16xf32> to vector<16x16xf32>
    %621 = vector.broadcast %618 : f32 to vector<16x16xf32>
    %622 = arith.mulf %621, %620 : vector<16x16xf32>
    %623 = arith.addf %617, %622 : vector<16x16xf32>
    %c103 = arith.constant 103 : index
    %624 = memref.load %arg1[%c103] : memref<108xf32, #tpu.memory_space<smem>>
    %c0_415 = arith.constant 0 : index
    %c3_416 = arith.constant 3 : index
    %c1_417 = arith.constant 1 : index
    %c1_418 = arith.constant 1 : index
    %625 = vector.load %arg3[%c0_415, %c3_416, %c1_417, %c1_418] : memref<1x4x18x18xf32, #tpu.memory_space<vmem>>, vector<1x1x16x16xf32>
    %626 = vector.shape_cast %625 : vector<1x1x16x16xf32> to vector<16x16xf32>
    %627 = vector.broadcast %624 : f32 to vector<16x16xf32>
    %628 = arith.mulf %627, %626 : vector<16x16xf32>
    %629 = arith.addf %623, %628 : vector<16x16xf32>
    %c104 = arith.constant 104 : index
    %630 = memref.load %arg1[%c104] : memref<108xf32, #tpu.memory_space<smem>>
    %c0_419 = arith.constant 0 : index
    %c3_420 = arith.constant 3 : index
    %c1_421 = arith.constant 1 : index
    %c2_422 = arith.constant 2 : index
    %631 = vector.load %arg3[%c0_419, %c3_420, %c1_421, %c2_422] : memref<1x4x18x18xf32, #tpu.memory_space<vmem>>, vector<1x1x16x16xf32>
    %632 = vector.shape_cast %631 : vector<1x1x16x16xf32> to vector<16x16xf32>
    %633 = vector.broadcast %630 : f32 to vector<16x16xf32>
    %634 = arith.mulf %633, %632 : vector<16x16xf32>
    %635 = arith.addf %629, %634 : vector<16x16xf32>
    %c105 = arith.constant 105 : index
    %636 = memref.load %arg1[%c105] : memref<108xf32, #tpu.memory_space<smem>>
    %c0_423 = arith.constant 0 : index
    %c3_424 = arith.constant 3 : index
    %c2_425 = arith.constant 2 : index
    %c0_426 = arith.constant 0 : index
    %637 = vector.load %arg3[%c0_423, %c3_424, %c2_425, %c0_426] : memref<1x4x18x18xf32, #tpu.memory_space<vmem>>, vector<1x1x16x16xf32>
    %638 = vector.shape_cast %637 : vector<1x1x16x16xf32> to vector<16x16xf32>
    %639 = vector.broadcast %636 : f32 to vector<16x16xf32>
    %640 = arith.mulf %639, %638 : vector<16x16xf32>
    %641 = arith.addf %635, %640 : vector<16x16xf32>
    %c106 = arith.constant 106 : index
    %642 = memref.load %arg1[%c106] : memref<108xf32, #tpu.memory_space<smem>>
    %c0_427 = arith.constant 0 : index
    %c3_428 = arith.constant 3 : index
    %c2_429 = arith.constant 2 : index
    %c1_430 = arith.constant 1 : index
    %643 = vector.load %arg3[%c0_427, %c3_428, %c2_429, %c1_430] : memref<1x4x18x18xf32, #tpu.memory_space<vmem>>, vector<1x1x16x16xf32>
    %644 = vector.shape_cast %643 : vector<1x1x16x16xf32> to vector<16x16xf32>
    %645 = vector.broadcast %642 : f32 to vector<16x16xf32>
    %646 = arith.mulf %645, %644 : vector<16x16xf32>
    %647 = arith.addf %641, %646 : vector<16x16xf32>
    %c107 = arith.constant 107 : index
    %648 = memref.load %arg1[%c107] : memref<108xf32, #tpu.memory_space<smem>>
    %c0_431 = arith.constant 0 : index
    %c3_432 = arith.constant 3 : index
    %c2_433 = arith.constant 2 : index
    %c2_434 = arith.constant 2 : index
    %649 = vector.load %arg3[%c0_431, %c3_432, %c2_433, %c2_434] : memref<1x4x18x18xf32, #tpu.memory_space<vmem>>, vector<1x1x16x16xf32>
    %650 = vector.shape_cast %649 : vector<1x1x16x16xf32> to vector<16x16xf32>
    %651 = vector.broadcast %648 : f32 to vector<16x16xf32>
    %652 = arith.mulf %651, %650 : vector<16x16xf32>
    %653 = arith.addf %647, %652 : vector<16x16xf32>
    %654 = vector.shape_cast %217 : vector<16x16xf32> to vector<1x16x16xf32>
    %655 = vector.shape_cast %435 : vector<16x16xf32> to vector<1x16x16xf32>
    %656 = vector.shape_cast %653 : vector<16x16xf32> to vector<1x16x16xf32>
    %657 = tpu.concatenate %654, %655, %656 in 0 : vector<1x16x16xf32>, vector<1x16x16xf32>, vector<1x16x16xf32> -> vector<3x16x16xf32>
    %c0_435 = arith.constant 0 : index
    %c0_436 = arith.constant 0 : index
    %658 = vector.load %arg4[%c0_435, %c0_436] : memref<64x16xf32, #tpu.memory_space<vmem>>, vector<64x16xf32>
    %659 = vector.shape_cast %658 : vector<64x16xf32> to vector<1x64x16xf32>
    %660 = vector.broadcast %659 : vector<1x64x16xf32> to vector<3x64x16xf32>
    %c0_437 = arith.constant 0 : index
    %c0_438 = arith.constant 0 : index
    %661 = vector.load %arg5[%c0_437, %c0_438] : memref<16x64xf32, #tpu.memory_space<vmem>>, vector<16x64xf32>
    %662 = vector.shape_cast %661 : vector<16x64xf32> to vector<1x16x64xf32>
    %663 = vector.broadcast %662 : vector<1x16x64xf32> to vector<3x16x64xf32>
    "tpu.trace_start"() <{level = 10 : i32, message = "cHh,chw->cHw"}> : () -> ()
    %cst = arith.constant dense<0.000000e+00> : vector<3x64x16xf32>
    %664 = tpu.matmul %660, %657, %cst {dimension_numbers = #tpu.dot_dimension_numbers<[2], [1], [1], [2], [0, 0, 0, 1, 1, 2], [0], [0]>} : vector<3x64x16xf32>, vector<3x16x16xf32>, vector<3x64x16xf32> -> vector<3x64x16xf32>
    "tpu.trace_stop"() : () -> ()
    "tpu.trace_start"() <{level = 10 : i32, message = "cHw,cwW->cHW"}> : () -> ()
    %cst_439 = arith.constant dense<0.000000e+00> : vector<3x64x64xf32>
    %665 = tpu.matmul %664, %663, %cst_439 {dimension_numbers = #tpu.dot_dimension_numbers<[2], [1], [1], [2], [0, 0, 0, 1, 1, 2], [0], [0]>} : vector<3x64x16xf32>, vector<3x16x64xf32>, vector<3x64x64xf32> -> vector<3x64x64xf32>
    "tpu.trace_stop"() : () -> ()
    %c0_440 = arith.constant 0 : index
    %c0_441 = arith.constant 0 : index
    %c0_442 = arith.constant 0 : index
    %c0_443 = arith.constant 0 : index
    %666 = vector.load %arg6[%c0_440, %c0_441, %c0_442, %c0_443] : memref<1x3x64x64xf32, #tpu.memory_space<vmem>>, vector<1x3x64x64xf32>
    %667 = vector.shape_cast %666 : vector<1x3x64x64xf32> to vector<3x64x64xf32>
    %668 = vector.shape_cast %665 : vector<3x64x64xf32> to vector<1x3x64x64xf32>
    tpu.vector_store %arg6[%c0_440, %c0_441, %c0_442, %c0_443], %668 {strides = array<i32>} : memref<1x3x64x64xf32, #tpu.memory_space<vmem>>, vector<1x3x64x64xf32>,
    return
  }
  func.func @transform_0(%arg0: i32, %arg1: memref<108xf32, #tpu.memory_space<smem>>, %arg2: memref<3xf32, #tpu.memory_space<smem>>) -> (i32, i32, i32, i32) {
    %c0_i32 = arith.constant 0 : i32
    %c0_i32_0 = arith.constant 0 : i32
    %c0_i32_1 = arith.constant 0 : i32
    %c0_i32_2 = arith.constant 0 : i32
    return %arg0, %c0_i32, %c0_i32_0, %c0_i32_1 : i32, i32, i32, i32
  }
  func.func @transform_1(%arg0: i32, %arg1: memref<108xf32, #tpu.memory_space<smem>>, %arg2: memref<3xf32, #tpu.memory_space<smem>>) -> (i32, i32) {
    %c0_i32 = arith.constant 0 : i32
    %c0_i32_0 = arith.constant 0 : i32
    %c0_i32_1 = arith.constant 0 : i32
    return %c0_i32, %c0_i32_0 : i32, i32
  }
  func.func @transform_2(%arg0: i32, %arg1: memref<108xf32, #tpu.memory_space<smem>>, %arg2: memref<3xf32, #tpu.memory_space<smem>>) -> (i32, i32) {
    %c0_i32 = arith.constant 0 : i32
    %c0_i32_0 = arith.constant 0 : i32
    %c0_i32_1 = arith.constant 0 : i32
    return %c0_i32, %c0_i32_0 : i32, i32
  }
  func.func @transform_3(%arg0: i32, %arg1: memref<108xf32, #tpu.memory_space<smem>>, %arg2: memref<3xf32, #tpu.memory_space<smem>>) -> (i32, i32, i32, i32) {
    %c0_i32 = arith.constant 0 : i32
    %c0_i32_0 = arith.constant 0 : i32
    %c0_i32_1 = arith.constant 0 : i32
    %c0_i32_2 = arith.constant 0 : i32
    return %arg0, %c0_i32, %c0_i32_0, %c0_i32_1 : i32, i32, i32, i32
  }
}

</mosaic_0001>

<bundles_post_ra>
// kernel: segnet_forward.1
= control target key start
LH: loop header
LB: loop body
LE: loop exit
PB: predicated region body
PF: predicated region fallthrough
CT: control target
= control target key end

     0   :  { %s3898_s0 = inlined_call_operand.vmem [shape: f32[108], index: 0, kind: input, shape index: {}]   ;;  %s3899_s2 = inlined_call_operand.vmem [shape: f32[2,4,18,18], index: 2, kind: input, shape index: {}]   ;;  %s3900_s3 = inlined_call_operand.vmem [shape: f32[64,16], index: 3, kind: input, shape index: {}]   ;;  %s3901_s4 = inlined_call_operand.vmem [shape: f32[16,64], index: 4, kind: input, shape index: {}]   ;;  %s3902_s5 = inlined_call_operand.hbm [shape: f32[2,3,64,64], index: 5, kind: output, shape index: {}]   ;;  %s3903_s1 = inlined_call_operand.vmem [shape: f32[3], index: 1, kind: input, shape index: {}]  }
   0x1   :  { %s10_s20 = sshll.u32 %s3898_s0, 4  ;;  %s14_s23 = sshll.u32 %s3903_s1, 4  ;;  %s11_s20 = int_to_ptr.vmem [resolvable:$true] %s10_s20  ;;  %s15_s23 = int_to_ptr.vmem [resolvable:$true] %s14_s23 }
   0x2   :  { %s2674_s24 = scalar_lea.vmem %s11_s20, 16  ;;  %p2679_p1 = scmp.lt.s32.totalorder %s11_s20, %s11_s20 }
   0x3   :  { %p2675_p0 = scmp.ne.s32.totalorder %s11_s20, %s2674_s24  ;;  %p2680_p2 = scmp.lt.s32.totalorder %s2674_s24, %s2674_s24 }
   0x5   :  { %p2681_p3 = por %p2680_p2, %p2679_p1 }
   0x7   :  { %p2682_p4 = pnand %p2681_p3, %p2675_p0 }
   0x9   :  { %2685 = shalt.err (!%p2682_p4)  }
   0xa   :  { %s2762_s25 = smov [#allocation3]   ;;  %s2686_s26 = scalar_lea.vmem %s15_s23, 16 }
   0xb   :  { %13 = dma.vmem_to_smem %s11_s20, 16, %s2762_s25, [#allocation2] }
   0xc   :  { %p2687_p5 = scmp.ne.s32.totalorder %s15_s23, %s2686_s26  ;;  %p2691_p6 = scmp.lt.s32.totalorder %s15_s23, %s15_s23 }
   0xd   :  { %p2692_p7 = scmp.lt.s32.totalorder %s2686_s26, %s2686_s26 }
   0xf   :  { %p2693_p8 = por %p2692_p7, %p2691_p6 }
  0x11   :  { %p2694_p9 = pnand %p2693_p8, %p2687_p5 }
  0x13   :  { %2697 = shalt.err (!%p2694_p9)  }
  0x14   :  { %s2763_s0 = smov [#allocation4]  }
  0x15   :  { %17 = dma.vmem_to_smem %s15_s23, 16, %s2763_s0, [#allocation2] }
  0x16   :  { %2740 = dma.done.wait [#allocation2], 32 }
  0x17   :  { %2741 = vsyncadd [#allocation2], 4294967264 }
  0x18   :  { %19 = sfence }
  0x19   :  { %20 = vsyncpa [#allocation6], 0 }
  0x1a   :  { %22 = vsyncpa [#allocation6 + $0x1], 0  ;;  %s2805_s1 = smov 0   ;;  %s2807_s27 = smov 0  }
  0x1b   :  { %s2809_s28 = smov 0   ;;  %s2811_s29 = smov 0  }
  0x1c LB: > { %s2826_s30 = sadd.s32 4294967295, %s2760_s29   ;;  %s2276_s6 = sadd.s32 4294967294, %s2760_s29   ;;  %s2760_s29 = sphi %s2811_s29, %s3909_s29   ;;  %s2756_s28 = sphi %s2809_s28, %s3908_s28   ;;  %s2752_s27 = sphi %s2807_s27, %s3907_s27   ;;  %s2748_s1 = sphi %s2805_s1, %s3906_s1  }
  0x1d   : > { %s2830_s7 = sadd.s32 1, %s2760_s29   ;;  %s103_s8 = sadd.s32 1, %s2756_s28 }
  0x1e   : > { %s100_s9 = ssub.s32 %s2760_s29, %s2830_s7  ;;  %p113_p10 = scmp.ne.s32.totalorder %s2756_s28, %s2752_s27 }
  0x1f   : > { %p101_p11 = scmp.eq.s32.totalorder %s100_s9, 0  ;;  %p114_p12 = scmp.eq.s32.totalorder %s2826_s30, 1 }
  0x20   : > { %p119_p13 = scmp.ne.s32.totalorder %s2752_s27, %s2748_s1  ;;  %p120_p0 = scmp.eq.s32.totalorder %s2276_s6, 1 }
  0x21   : > { %s2841_s10 = scalar_select %p101_p11, %s2756_s28, %s103_s8  }
  0x22   : > { %p2843_p1 = por %p114_p12, %p113_p10  ;;  %p2847_p2 = por %p120_p0, %p119_p13 }
  0x23   : > { %p2279_p3 = scmp.ge.s32.totalorder %s2760_s29, 1  ;;  %p152_p4 = scmp.lt.s32.totalorder %s2760_s29, 3 }
  0x25   : > { %p153_p5 = pnand %p2279_p3, %p152_p4 }
  0x26   : > { %p176_p6 = scmp.lt.s32.totalorder (!%p153_p5), %s2826_s30, 1  ;;  %s2282_s13 = sld [smem:[#allocation3 + $0x2]] (!%p153_p5) }
  0x27   : > { %156 = sbr.rel (%p153_p5) target bundleno = 872 (0x368), region = 32  ;;  %s2281_s14 = sld [smem:[#allocation3 + $0x1]] (!%p153_p5) }
  0x28   : > { %s2284_s16 = sld [smem:[#allocation3 + $0x4]] (!%p153_p5)  ;;  %s2764_s22 = smov (!%p153_p5), 126  }
  0x29   : > { %s2285_s21 = sld [smem:[#allocation3 + $0x5]] (!%p153_p5)  ;;  %s2765_s23 = smov (!%p153_p5), 127  }
  0x2a   : > { %s2287_s24 = sld [smem:[#allocation3 + $0x7]] (!%p153_p5) }
  0x2b   : > { %s2288_s25 = sld [smem:[#allocation3 + $0x8]] (!%p153_p5) }
  0x2c   : > { %s177_s15 = scalar_select %p176_p6, %s2826_s30, 1  ;;  %v206_v0 = vstv %s2282_s13  ;;  %vm1448_vm0 = vcmask 130048   ;;  %vm2175_vm1 = vcmask 523264  }
  0x2d   : > { %v192_v3 = vstv %s2281_s14  ;;  %s2886_s26 = sld [smem:[#allocation3 + $0x49]] }
  0x2e   : > { %s2616_s17 = smul.u32 96, %s177_s15  ;;  %v228_v9 = vstv %s2284_s16  ;;  %s2336_s0 = sld [smem:[#allocation3 + $0x25]] }
  0x2f   : > { %v242_v13 = vstv %s2285_s21  ;;  %s2292_s6 = sld [smem:[#allocation3 + $0xa]] }
  0x30   : > { %s2858_s20 = scalar_lea.vmem %s3899_s2, %s2616_s17  ;;  %v264_v17 = vstv %s2287_s24  ;;  %s2337_s8 = sld [smem:[#allocation3 + $0x26]] }
  0x31   : > { %v2861_v1 = vld [vmem:[%s2858_s20 + $0x8] sm:$0xff]  ;;  %v2864_v2 = vld [vmem:[%s2858_s20] sm:$0xff]  ;;  %v278_v21 = vstv %s2288_s25  ;;  %s2374_s9 = sld [smem:[#allocation3 + $0x4a]]  ;;  %v2919_v35 = vld [vmem:[%s2858_s20 + $0x18] sm:$0xff] }
  0x32   : > { %v208_v4 = vmul.f32 %v206_v0, %v2861_v1  ;;  %v194_v5 = vmul.f32 %v192_v3, %v2861_v1  ;;  %v207_v6 = vmul.f32 %v206_v0, %v2864_v2  ;;  %v193_v7 = vmul.f32 %v192_v3, %v2864_v2  ;;  %v2873_v8 = vld [vmem:[%s2858_s20 + $0x1] sm:$0xff]  ;;  %v2876_v10 = vld [vmem:[%s2858_s20 + $0x9] sm:$0xff]  ;;  %s2293_s13 = sld [smem:[#allocation3 + $0xb]]  ;;  %v2952_v55 = vld [vmem:[%s2858_s20 + $0x19] sm:$0xff] }
  0x33   : > { %v229_v11 = vmul.f32 %v228_v9, %v2873_v8  ;;  %v230_v12 = vmul.f32 %v228_v9, %v2876_v10  ;;  %v243_v14 = vmul.f32 %v242_v13, %v2873_v8  ;;  %v244_v15 = vmul.f32 %v242_v13, %v2876_v10  ;;  %v2889_v16 = vld [vmem:[%s2858_s20 + $0x2] sm:$0xff]  ;;  %v2892_v18 = vld [vmem:[%s2858_s20 + $0xa] sm:$0xff]  ;;  %s2925_s14 = sld [smem:[#allocation3 + $0x4c]] }
  0x34   : > { %213 = vrot.lane.b32.xlu1 %v208_v4, %s2764_s22  ;;  %199 = vrot.lane.b32.xlu0 %v194_v5, %s2765_s23  ;;  %v265_v19 = vmul.f32 %v264_v17, %v2889_v16  ;;  %v266_v20 = vmul.f32 %v264_v17, %v2892_v18  ;;  %v279_v22 = vmul.f32 %v278_v21, %v2889_v16  ;;  %v1037_v24 = vstv %s2886_s26  ;;  %v2908_v28 = vld [vmem:[%s2858_s20 + $0x20] sm:$0xff]  ;;  %s2339_s15 = sld [smem:[#allocation3 + $0x28]] }
  0x35   : > { %v280_v23 = vmul.f32 %v278_v21, %v2892_v18  ;;  %v627_v25 = vstv %s2336_s0  ;;  %v1039_v26 = vmul.f32 %v1037_v24, %v2861_v1  ;;  %v301_v29 = vstv %s2292_s6  ;;  %s2297_s16 = sld [smem:[#allocation3 + $0xd]]  ;;  %v2941_v48 = vld [vmem:[%s2858_s20 + $0x21] sm:$0xff] }
  0x36   : > { %v629_v27 = vmul.f32 %v627_v25, %v2861_v1  ;;  %v628_v30 = vmul.f32 %v627_v25, %v2864_v2  ;;  %v303_v31 = vmul.f32 %v2908_v28, %v301_v29  ;;  %v641_v32 = vstv %s2337_s8  ;;  %s2340_s17 = sld [smem:[#allocation3 + $0x29]] }
  0x37   : > { %v1038_v33 = vmul.f32 %v1037_v24, %v2864_v2  ;;  %v643_v34 = vmul.f32 %v641_v32, %v2861_v1  ;;  %v1051_v36 = vstv %s2374_s9  ;;  %v302_v37 = vmul.f32 %v2919_v35, %v301_v29  ;;  %s2377_s18 = sld [smem:[#allocation3 + $0x4d]] }
  0x38   : > { %211 = vrot.lane.b32.xlu1 %v207_v6, %s2764_s22  ;;  %197 = vrot.lane.b32.xlu0 %v193_v7, %s2765_s23  ;;  %v1053_v38 = vmul.f32 %v1051_v36, %v2861_v1  ;;  %v315_v39 = vstv %s2293_s13  ;;  %v642_v40 = vmul.f32 %v641_v32, %v2864_v2  ;;  %v1052_v43 = vmul.f32 %v1051_v36, %v2864_v2  ;;  %s2298_s19 = sld [smem:[#allocation3 + $0xe]]  ;;  %v2974_v6 = vld [vmem:[%s2858_s20 + $0x22] sm:$0xff] }
  0x39   : > { %v317_v41 = vmul.f32 %v2908_v28, %v315_v39  ;;  %v316_v42 = vmul.f32 %v2919_v35, %v315_v39  ;;  %v1071_v44 = vstv %s2925_s14  ;;  %s2958_s21 = sld [smem:[#allocation3 + $0x4f]]  ;;  %v3028_v39 = vld [vmem:[%s2858_s20 + $0x30] sm:$0xff] }
  0x3a   : > { %v661_v45 = vstv %s2339_s15  ;;  %v1073_v46 = vmul.f32 %v1071_v44, %v2876_v10  ;;  %v1072_v53 = vmul.f32 %v1071_v44, %v2873_v8  ;;  %s2342_s24 = sld [smem:[#allocation3 + $0x2b]] }
  0x3b   : > { %v663_v47 = vmul.f32 %v661_v45, %v2876_v10  ;;  %v337_v49 = vstv %s2297_s16  ;;  %v662_v50 = vmul.f32 %v661_v45, %v2873_v8  ;;  %s2302_s25 = sld [smem:[#allocation3 + $0x10]] }
  0x3c   : > { %233 = vrot.lane.b32.xlu1 %v229_v11, %s2765_s23  ;;  %235 = vrot.lane.b32.xlu0 %v230_v12, %s2765_s23  ;;  %v339_v51 = vmul.f32 %v2941_v48, %v337_v49  ;;  %v675_v52 = vstv %s2340_s17  ;;  %v338_v57 = vmul.f32 %v2952_v55, %v337_v49  ;;  %s2343_s26 = sld [smem:[#allocation3 + $0x2c]] }
  0x3d   : > { %v677_v54 = vmul.f32 %v675_v52, %v2876_v10  ;;  %v1085_v56 = vstv %s2377_s18  ;;  %v676_v60 = vmul.f32 %v675_v52, %v2873_v8  ;;  %s2380_s0 = sld [smem:[#allocation3 + $0x50]] }
  0x3e   : > { %v1087_v58 = vmul.f32 %v1085_v56, %v2876_v10  ;;  %v351_v59 = vstv %s2298_s19  ;;  %v1086_v63 = vmul.f32 %v1085_v56, %v2873_v8  ;;  %s2303_s6 = sld [smem:[#allocation3 + $0x11]] }
  0x3f   : > { %v353_v61 = vmul.f32 %v2941_v48, %v351_v59  ;;  %v352_v62 = vmul.f32 %v2952_v55, %v351_v59  ;;  %v1105_v0 = vstv %s2958_s21  ;;  %s2991_s8 = sld [smem:[#allocation3 + $0x52]] }
  0x40   : > { %247 = vrot.lane.b32.xlu1 %v243_v14, %s2764_s22  ;;  %249 = vrot.lane.b32.xlu0 %v244_v15, %s2764_s22  ;;  %v695_v3 = vstv %s2342_s24  ;;  %v1107_v4 = vmul.f32 %v1105_v0, %v2892_v18  ;;  %v1106_v13 = vmul.f32 %v1105_v0, %v2889_v16  ;;  %v2985_v15 = vld [vmem:[%s2858_s20 + $0x1a] sm:$0xff]  ;;  %s2345_s9 = sld [smem:[#allocation3 + $0x2e]] }
  0x41   : > { %v697_v5 = vmul.f32 %v695_v3, %v2892_v18  ;;  %v373_v7 = vstv %s2302_s25  ;;  %v696_v9 = vmul.f32 %v695_v3, %v2889_v16  ;;  %s2997_s13 = sld [smem:[#allocation3 + $0x13]] }
  0x42   : > { %v375_v11 = vmul.f32 %v2974_v6, %v373_v7  ;;  %v709_v12 = vstv %s2343_s26  ;;  %s3004_s14 = sld [smem:[#allocation3 + $0x2f]] }
  0x43   : > { %v711_v14 = vmul.f32 %v709_v12, %v2892_v18  ;;  %v1119_v17 = vstv %s2380_s0  ;;  %s3014_s15 = sld [smem:[#allocation3 + $0x53]] }
  0x44   : > { %269 = vrot.lane.b32.xlu1 %v265_v19, %s2765_s23  ;;  %271 = vrot.lane.b32.xlu0 %v266_v20, %s2765_s23  ;;  %v374_v19 = vmul.f32 %v2985_v15, %v373_v7  ;;  %v1121_v20 = vmul.f32 %v1119_v17, %v2892_v18  ;;  %v387_v21 = vstv %s2303_s6  ;;  %v1120_v25 = vmul.f32 %v1119_v17, %v2889_v16  ;;  %s183_s16 = sld [smem:[#allocation3]] }
  0x45   : > { %v388_v24 = vmul.f32 %v2985_v15, %v387_v21  ;;  %s2308_s17 = sld [smem:[#allocation3 + $0x14]] }
  0x46   : > { %s3025_s18 = sld [smem:[#allocation4]] }
  0x47   : > { %v410_v32 = vstv %s2997_s13  ;;  %s3031_s19 = sld [smem:[#allocation3 + $0x55]] }
  0x48   : > { %283 = vrot.lane.b32.xlu1 %v279_v22, %s2764_s22  ;;  %285 = vrot.lane.b32.xlu0 %v280_v23, %s2764_s22  ;;  %v710_v22 = vmul.f32 %v709_v12, %v2889_v16  ;;  %v389_v23 = vmul.f32 %v2974_v6, %v387_v21  ;;  %v743_v36 = vstv %s3004_s14  ;;  %s3037_s21 = sld [smem:[#allocation3 + $0x3]] }
  0x49   : > { %s3039_s24 = sld [smem:[#allocation3 + $0x31]] }
  0x4a   : > { %s3047_s25 = sld [smem:[#allocation3 + $0x16]] }
  0x4b   : > { %v424_v44 = vstv %s2308_s17  ;;  %s3055_s26 = sld [smem:[#allocation3 + $0x32]] }
  0x4c   : > { %1044 = vrot.lane.b32.xlu1 %v1039_v26, %s2765_s23  ;;  %634 = vrot.lane.b32.xlu0 %v629_v27, %s2765_s23  ;;  %v1139_v26 = vstv %s2991_s8  ;;  %v729_v27 = vstv %s2345_s9  ;;  %v425_v52 = vmul.f32 %v3028_v39, %v424_v44  ;;  %s3059_s0 = sld [smem:[#allocation3 + $0x6]] }
  0x4d   : > { %v1141_v29 = vmul.f32 %v2908_v28, %v1139_v26  ;;  %v182_v49 = vstv %s3025_s18  ;;  %v1173_v56 = vstv %s3031_s19  ;;  %s3070_s6 = sld [smem:[#allocation3 + $0x56]] }
  0x4e   : > { %s3079_s8 = sld [smem:[#allocation3 + $0x17]] }
  0x4f   : > { %s3091_s9 = sld [smem:[#allocation3 + $0x24]] }
  0x50   : > { %632 = vrot.lane.b32.xlu1 %v628_v30, %s2765_s23  ;;  %308 = vrot.lane.b32.xlu0 %v303_v31, %s2765_s23  ;;  %v731_v30 = vmul.f32 %v2908_v28, %v729_v27  ;;  %v3011_v31 = vld [vmem:[%s2858_s20 + $0x38] sm:$0xff]  ;;  %s3093_s13 = sld [smem:[#allocation3 + $0x48]] }
  0x51   : > { %s3099_s14 = sld [smem:[#allocation3 + $0x58]] }
  0x52   : > { %v258_v21 = vstv %s3059_s0  ;;  %s3118_s17 = sld [smem:[#allocation4 + $0x2]] }
  0x53   : > { %s3120_s18 = sld [smem:[#allocation3 + $0x19]] }
  0x54   : > { %1042 = vrot.lane.b32.xlu1 %v1038_v33, %s2765_s23  ;;  %648 = vrot.lane.b32.xlu0 %v643_v34, %s2764_s22  ;;  %v730_v33 = vmul.f32 %v2919_v35, %v729_v27  ;;  %v412_v34 = vmul.f32 %v3011_v31, %v410_v32  ;;  %v259_v27 = vmul.f32 %v258_v21, %v2889_v16  ;;  %s3127_s19 = sld [smem:[#allocation3 + $0x27]] }
  0x55   : > { %s3183_s0 = sld [smem:[#allocation3 + $0x5b]] }
  0x58   : > { %306 = vrot.lane.b32.xlu1 %v302_v37, %s2765_s23  ;;  %1058 = vrot.lane.b32.xlu0 %v1053_v38, %s2764_s22  ;;  %v1140_v37 = vmul.f32 %v2919_v35, %v1139_v26  ;;  %v745_v38 = vmul.f32 %v2908_v28, %v743_v36 }
  0x5c   : > { %646 = vrot.lane.b32.xlu1 %v642_v40, %s2764_s22  ;;  %322 = vrot.lane.b32.xlu0 %v317_v41, %s2764_s22  ;;  %v1153_v40 = vstv %s3014_s15  ;;  %v411_v41 = vmul.f32 %v3028_v39, %v410_v32  ;;  %v260_v32 = vmul.f32 %v258_v21, %v2892_v18  ;;  %s3106_s15 = sld [smem:[#allocation3 + $0x34]] }
  0x60   : > { %320 = vrot.lane.b32.xlu1 %v316_v42, %s2764_s22  ;;  %1056 = vrot.lane.b32.xlu0 %v1052_v43, %s2764_s22  ;;  %v1155_v42 = vmul.f32 %v2908_v28, %v1153_v40  ;;  %v186_v43 = vstv %s183_s16  ;;  %s3112_s16 = sld [smem:[#allocation4 + $0x1]] }
  0x61   : > { %v188_v45 = vmul.f32 %v186_v43, %v2861_v1 }
  0x64   : > { %1078 = vrot.lane.b32.xlu1 %v1073_v46, %s2765_s23  ;;  %668 = vrot.lane.b32.xlu0 %v663_v47, %s2765_s23  ;;  %v744_v46 = vmul.f32 %v2919_v35, %v743_v36  ;;  %v426_v47 = vmul.f32 %v3011_v31, %v424_v44 }
  0x68   : > { %666 = vrot.lane.b32.xlu1 %v662_v50, %s2765_s23  ;;  %344 = vrot.lane.b32.xlu0 %v339_v51, %s2765_s23  ;;  %v190_v50 = vadd.f32 %v188_v45, %v182_v49  ;;  %v187_v51 = vmul.f32 %v186_v43, %v2864_v2  ;;  %v460_v45 = vstv %s3079_s8  ;;  %s3196_s8 = sld [smem:[#allocation3 + $0x1c]] }
  0x6c   : > { %1076 = vrot.lane.b32.xlu1 %v1072_v53, %s2765_s23  ;;  %682 = vrot.lane.b32.xlu0 %v677_v54, %s2764_s22  ;;  %v1154_v53 = vmul.f32 %v2919_v35, %v1153_v40  ;;  %v222_v54 = vstv %s3037_s21  ;;  %s3136_s21 = sld [smem:[#allocation3 + $0x35]] }
  0x6d   : > { %v223_v12 = vmul.f32 %v222_v54, %v2873_v8 }
  0x70   : > { %342 = vrot.lane.b32.xlu1 %v338_v57, %s2765_s23  ;;  %1092 = vrot.lane.b32.xlu0 %v1087_v58, %s2764_s22  ;;  %v763_v57 = vstv %s3039_s24  ;;  %s3140_s24 = sld [smem:[#allocation3 + $0x4b]] }
  0x71   : > { %v765_v0 = vmul.f32 %v2941_v48, %v763_v57 }
  0x74   : > { %680 = vrot.lane.b32.xlu1 %v676_v60, %s2764_s22  ;;  %358 = vrot.lane.b32.xlu0 %v353_v61, %s2764_s22  ;;  %v189_v61 = vadd.f32 %v187_v51, %v182_v49 }
  0x78   : > { %356 = vrot.lane.b32.xlu1 %v352_v62, %s2764_s22  ;;  %1090 = vrot.lane.b32.xlu0 %v1086_v63, %s2764_s22  ;;  %v224_v62 = vmul.f32 %v222_v54, %v2876_v10  ;;  %v1175_v63 = vmul.f32 %v2941_v48, %v1173_v56 }
  0x7c   : > { %1112 = vrot.lane.b32.xlu1 %v1107_v4, %s2765_s23  ;;  %702 = vrot.lane.b32.xlu0 %v697_v5, %s2765_s23  ;;  %v3067_v4 = vld [vmem:[%s2858_s20 + $0x39] sm:$0xff]  ;;  %v446_v5 = vstv %s3047_s25  ;;  %s3151_s25 = sld [smem:[#allocation3 + $0x59]] }
  0x7d   : > { %v448_v17 = vmul.f32 %v3067_v4, %v446_v5 }
  0x80   : > { %700 = vrot.lane.b32.xlu1 %v696_v9, %s2765_s23  ;;  %380 = vrot.lane.b32.xlu0 %v375_v11, %s2765_s23 }
  0x84   : > { %1110 = vrot.lane.b32.xlu1 %v1106_v13, %s2765_s23  ;;  %716 = vrot.lane.b32.xlu0 %v711_v14, %s2764_s22  ;;  %v764_v14 = vmul.f32 %v2952_v55, %v763_v57 }
  0x88   : > { %378 = vrot.lane.b32.xlu1 %v374_v19, %s2765_s23  ;;  %1126 = vrot.lane.b32.xlu0 %v1121_v20, %s2764_s22  ;;  %v777_v20 = vstv %s3055_s26  ;;  %s3163_s26 = sld [smem:[#allocation3 + $0x1a]] }
  0x89   : > { %v779_v26 = vmul.f32 %v2941_v48, %v777_v20  ;;  %v778_v49 = vmul.f32 %v2952_v55, %v777_v20 }
  0x8c   : > { %714 = vrot.lane.b32.xlu1 %v710_v22, %s2764_s22  ;;  %394 = vrot.lane.b32.xlu0 %v389_v23, %s2764_s22 }
  0x90   : > { %392 = vrot.lane.b32.xlu1 %v388_v24, %s2764_s22  ;;  %1124 = vrot.lane.b32.xlu0 %v1120_v25, %s2764_s22  ;;  %v1174_v25 = vmul.f32 %v2952_v55, %v1173_v56 }
  0x94   : > { %1146 = vrot.lane.b32.xlu1 %v1141_v29, %s2765_s23  ;;  %736 = vrot.lane.b32.xlu0 %v731_v30, %s2765_s23 }
  0x98   : > { %734 = vrot.lane.b32.xlu1 %v730_v33, %s2765_s23  ;;  %417 = vrot.lane.b32.xlu0 %v412_v34, %s2765_s23  ;;  %v3088_v33 = vld [vmem:[%s2858_s20 + $0x31] sm:$0xff]  ;;  %v1187_v34 = vstv %s3070_s6  ;;  %s3187_s6 = sld [smem:[#allocation3 + $0x37]] }
  0x99   : > { %v461_v54 = vmul.f32 %v3088_v33, %v460_v45  ;;  %v1188_v56 = vmul.f32 %v2952_v55, %v1187_v34 }
  0x9c   : > { %1144 = vrot.lane.b32.xlu1 %v1140_v37, %s2765_s23  ;;  %750 = vrot.lane.b32.xlu0 %v745_v38, %s2764_s22 }
  0xa0   : > { %415 = vrot.lane.b32.xlu1 %v411_v41, %s2765_s23  ;;  %1160 = vrot.lane.b32.xlu0 %v1155_v42, %s2764_s22  ;;  %v447_v41 = vmul.f32 %v3088_v33, %v446_v5  ;;  %v1189_v42 = vmul.f32 %v2941_v48, %v1187_v34 }
  0xa4   : > { %748 = vrot.lane.b32.xlu1 %v744_v46, %s2764_s22  ;;  %431 = vrot.lane.b32.xlu0 %v426_v47, %s2764_s22 }
  0xa6   : > { %v214_v58 = vpop.permute.xlu1 %213  ;;  %v200_v59 = vpop.permute.xlu0 %199 }
  0xa7   : > { %v204_v60 = vadd.f32 %v200_v59, %v190_v50  ;;  %v462_v50 = vmul.f32 %v3067_v4, %v460_v45  ;;  %v797_v59 = vstv %s3106_s15  ;;  %s3220_s15 = sld [smem:[#allocation3 + $0x5c]] }
  0xa8   : > { %429 = vrot.lane.b32.xlu1 %v425_v52, %s2764_s22  ;;  %1158 = vrot.lane.b32.xlu0 %v1154_v53, %s2764_s22  ;;  %v621_v53 = vstv %s3091_s9  ;;  %s3200_s9 = sld [smem:[#allocation3 + $0x2a]] }
  0xa9   : > { %v218_v3 = vadd.f32 %v214_v58, %v204_v60  ;;  %v623_v57 = vmul.f32 %v621_v53, %v2861_v1  ;;  %v1207_v58 = vstv %s3099_s14  ;;  %v1031_v60 = vstv %s3093_s13  ;;  %s3208_s13 = sld [smem:[#allocation3 + $0x38]] }
  0xaa   : > { %v212_v7 = vpop.permute.xlu1 %211  ;;  %v198_v9 = vpop.permute.xlu0 %197  ;;  %v1033_v5 = vmul.f32 %v1031_v60, %v2861_v1  ;;  %v798_v1 = vmul.f32 %v2985_v15, %v797_v59  ;;  %v1208_v34 = vmul.f32 %v2985_v15, %v1207_v58  ;;  %s3210_s14 = sld [smem:[#allocation3 + $0x4e]] }
  0xab   : > { %v203_v11 = vadd.f32 %v198_v9, %v189_v61  ;;  %v226_v13 = vadd.f32 %v224_v62, %v218_v3  ;;  %v619_v62 = vstv %s3112_s16  ;;  %v799_v3 = vmul.f32 %v2974_v6, %v797_v59  ;;  %v3148_v9 = vld [vmem:[%s2858_s20 + $0x3a] sm:$0xff]  ;;  %s3230_s16 = sld [smem:[#allocation3 + $0x1d]] }
  0xac   : > { %1180 = vrot.lane.b32.xlu1 %v1175_v63, %s2765_s23  ;;  %770 = vrot.lane.b32.xlu0 %v765_v0, %s2765_s23  ;;  %v1209_v0 = vmul.f32 %v2974_v6, %v1207_v58 }
  0xad   : > { %v217_v19 = vadd.f32 %v212_v7, %v203_v11  ;;  %v625_v7 = vadd.f32 %v623_v57, %v619_v62  ;;  %v482_v11 = vstv %s3120_s18  ;;  %v496_v57 = vstv %s3163_s26  ;;  %s3253_s18 = sld [smem:[#allocation3 + $0x5e]] }
  0xae   : > { %v234_v22 = vpop.permute.xlu1 %233  ;;  %v236_v23 = vpop.permute.xlu0 %235  ;;  %v484_v20 = vmul.f32 %v3148_v9, %v482_v11  ;;  %s3293_s26 = sld [smem:[#allocation3 + $0xf]] }
  0xaf   : > { %v225_v24 = vadd.f32 %v223_v12, %v217_v19  ;;  %v240_v30 = vadd.f32 %v236_v23, %v226_v13  ;;  %v1029_v12 = vstv %s3118_s17  ;;  %v622_v19 = vmul.f32 %v621_v53, %v2864_v2  ;;  %s3234_s17 = sld [smem:[#allocation3 + $0x9]] }
  0xb0   : > { %768 = vrot.lane.b32.xlu1 %v764_v14, %s2765_s23  ;;  %453 = vrot.lane.b32.xlu0 %v448_v17, %s2765_s23  ;;  %v655_v17 = vstv %s3127_s19  ;;  %v1035_v21 = vadd.f32 %v1033_v5, %v1029_v12  ;;  %v811_v23 = vstv %s3136_s21  ;;  %s3259_s19 = sld [smem:[#allocation3 + $0x3a]] }
  0xb1   : > { %v239_v29 = vadd.f32 %v234_v22, %v225_v24  ;;  %v657_v24 = vmul.f32 %v655_v17, %v2876_v10  ;;  %s3264_s21 = sld [smem:[#allocation3 + $0xc]] }
  0xb2   : > { %v248_v36 = vpop.permute.xlu1 %247  ;;  %v250_v37 = vpop.permute.xlu0 %249 }
  0xb3   : > { %v253_v38 = vadd.f32 %v248_v36, %v239_v29  ;;  %v254_v40 = vadd.f32 %v250_v37, %v240_v30  ;;  %v1032_v29 = vmul.f32 %v1031_v60, %v2864_v2  ;;  %v813_v36 = vmul.f32 %v2974_v6, %v811_v23 }
  0xb4   : > { %1178 = vrot.lane.b32.xlu1 %v1174_v25, %s2765_s23  ;;  %784 = vrot.lane.b32.xlu0 %v779_v26, %s2764_s22 }
  0xb5   : > { %v3101_v43 = vadd.f32 %v259_v27, %v253_v38  ;;  %v3103_v44 = vadd.f32 %v260_v32, %v254_v40  ;;  %v1065_v27 = vstv %s3140_s24  ;;  %v624_v32 = vadd.f32 %v622_v19, %v619_v62  ;;  %v3173_v38 = vld [vmem:[%s2858_s20 + $0x32] sm:$0xff]  ;;  %s3275_s24 = sld [smem:[#allocation3 + $0x1f]] }
  0xb6   : > { %v3108_v46 = vpop.permute.xlu1 %269  ;;  %v3110_v47 = vpop.permute.xlu0 %271  ;;  %v1221_v40 = vstv %s3151_s25  ;;  %v483_v53 = vmul.f32 %v3173_v38, %v482_v11  ;;  %v812_v62 = vmul.f32 %v2985_v15, %v811_v23  ;;  %v1066_v5 = vmul.f32 %v1065_v27, %v2873_v8  ;;  %s3291_s25 = sld [smem:[#allocation3 + $0x3b]] }
  0xb7   : > { %v1241_v19 = vstv %s3183_s0  ;;  %s3305_s0 = sld [smem:[#allocation3 + $0x5f]] }
  0xb8   : > { %451 = vrot.lane.b32.xlu1 %v447_v41, %s2765_s23  ;;  %1194 = vrot.lane.b32.xlu0 %v1189_v42, %s2764_s22  ;;  %v1067_v41 = vmul.f32 %v1065_v27, %v2876_v10  ;;  %v656_v10 = vmul.f32 %v655_v17, %v2873_v8  ;;  %v1222_v17 = vmul.f32 %v2985_v15, %v1221_v40  ;;  %v831_v8 = vstv %s3187_s6  ;;  %s3312_s6 = sld [smem:[#allocation3 + $0x2d]] }
  0xb9   : > { %v833_v23 = vmul.f32 %v3011_v31, %v831_v8 }
  0xba   : > { %v3122_v51 = vpop.permute.xlu1 %283  ;;  %v3124_v52 = vpop.permute.xlu0 %285 }
  0xbc   : > { %782 = vrot.lane.b32.xlu1 %v778_v49, %s2764_s22  ;;  %467 = vrot.lane.b32.xlu0 %v462_v50, %s2764_s22  ;;  %v1034_v50 = vadd.f32 %v1032_v29, %v1029_v12  ;;  %v689_v29 = vstv %s3200_s9  ;;  %s3325_s9 = sld [smem:[#allocation3 + $0x20]] }
  0xbe   : > { %v1045_v61 = vpop.permute.xlu1 %1044  ;;  %v635_v63 = vpop.permute.xlu0 %634 }
  0xbf   : > { %v639_v22 = vadd.f32 %v635_v63, %v625_v7  ;;  %v1049_v37 = vadd.f32 %v1045_v61, %v1035_v21  ;;  %v498_v63 = vmul.f32 %v3148_v9, %v496_v57 }
  0xc0   : > { %465 = vrot.lane.b32.xlu1 %v461_v54, %s2764_s22  ;;  %1192 = vrot.lane.b32.xlu0 %v1188_v56, %s2764_s22  ;;  %v1223_v54 = vmul.f32 %v2974_v6, %v1221_v40 }
  0xc2   : > { %v633_v13 = vpop.permute.xlu1 %632  ;;  %v3154_v14 = vpop.permute.xlu0 %308 }
  0xc3   : > { %v638_v56 = vadd.f32 %v633_v13, %v624_v32  ;;  %v497_v13 = vmul.f32 %v3173_v38, %v496_v57 }
  0xc4   : > { %1214 = vrot.lane.b32.xlu1 %v1209_v0, %s2765_s23  ;;  %804 = vrot.lane.b32.xlu0 %v799_v3, %s2765_s23 }
  0xc6   : > { %v1043_v25 = vpop.permute.xlu1 %1042  ;;  %v649_v26 = vpop.permute.xlu0 %648 }
  0xc7   : > { %v653_v30 = vadd.f32 %v649_v26, %v639_v22  ;;  %v1048_v0 = vadd.f32 %v1043_v25, %v1034_v50  ;;  %v1243_v22 = vmul.f32 %v3011_v31, %v1241_v19  ;;  %v519_v25 = vstv %s3196_s8  ;;  %s3317_s8 = sld [smem:[#allocation3 + $0x51]] }
  0xc8   : > { %802 = vrot.lane.b32.xlu1 %v798_v1, %s2765_s23  ;;  %489 = vrot.lane.b32.xlu0 %v484_v20, %s2765_s23  ;;  %v1242_v50 = vmul.f32 %v3028_v39, %v1241_v19  ;;  %v295_v19 = vstv %s3234_s17  ;;  %s3377_s17 = sld [smem:[#allocation3 + $0x3e]] }
  0xc9   : > { %v659_v42 = vadd.f32 %v657_v24, %v653_v30  ;;  %v3217_v24 = vld [vmem:[%s2858_s20 + $0x50] sm:$0xff]  ;;  %v832_v30 = vmul.f32 %v3028_v39, %v831_v8 }
  0xca   : > { %v3177_v45 = vpop.permute.xlu1 %306  ;;  %v1059_v2 = vpop.permute.xlu0 %1058  ;;  %v521_v32 = vmul.f32 %v3217_v24, %v519_v25 }
  0xcb   : > { %v1063_v49 = vadd.f32 %v1059_v2, %v1049_v37  ;;  %v691_v37 = vmul.f32 %v689_v29, %v2892_v18  ;;  %v1099_v2 = vstv %s3210_s14  ;;  %s3344_s14 = sld [smem:[#allocation3 + $0x61]] }
  0xcc   : > { %1212 = vrot.lane.b32.xlu1 %v1208_v34, %s2765_s23  ;;  %818 = vrot.lane.b32.xlu0 %v813_v36, %s2764_s22  ;;  %v845_v36 = vstv %s3208_s13  ;;  %v1101_v57 = vmul.f32 %v1099_v2, %v2892_v18  ;;  %s3328_s13 = sld [smem:[#allocation3 + $0x12]] }
  0xcd   : > { %v1069_v58 = vadd.f32 %v1067_v41, %v1063_v49 }
  0xce   : > { %v647_v59 = vpop.permute.xlu1 %646  ;;  %v3189_v60 = vpop.permute.xlu0 %322 }
  0xcf   : > { %v652_v61 = vadd.f32 %v647_v59, %v638_v56  ;;  %v1255_v56 = vstv %s3220_s15  ;;  %s3351_s15 = sld [smem:[#allocation3 + $0x3d]] }
  0xd0   : > { %487 = vrot.lane.b32.xlu1 %v483_v53, %s2765_s23  ;;  %1228 = vrot.lane.b32.xlu0 %v1223_v54, %s2764_s22  ;;  %v3241_v54 = vld [vmem:[%s2858_s20 + $0x48] sm:$0xff] }
  0xd1   : > { %v658_v3 = vadd.f32 %v656_v10, %v652_v61 }
  0xd2   : > { %v3198_v7 = vpop.permute.xlu1 %320  ;;  %v1057_v11 = vpop.permute.xlu0 %1056 }
  0xd3   : > { %v1062_v12 = vadd.f32 %v1057_v11, %v1048_v0  ;;  %v690_v11 = vmul.f32 %v689_v29, %v2889_v16 }
  0xd4   : > { %816 = vrot.lane.b32.xlu1 %v812_v62, %s2764_s22  ;;  %503 = vrot.lane.b32.xlu0 %v498_v63, %s2764_s22  ;;  %v520_v63 = vmul.f32 %v3241_v54, %v519_v25  ;;  %v276_v25 = vadd.f32 %v3110_v47, %v3103_v44  ;;  %v1256_v44 = vmul.f32 %v3028_v39, %v1255_v56  ;;  %v1275_v47 = vstv %s3253_s18  ;;  %s3388_s18 = sld [smem:[#allocation3 + $0x62]] }
  0xd5   : > { %v1068_v1 = vadd.f32 %v1066_v5, %v1062_v12  ;;  %v533_v5 = vstv %s3230_s16  ;;  %s3364_s16 = sld [smem:[#allocation3 + $0x22]] }
  0xd6   : > { %v1079_v20 = vpop.permute.xlu1 %1078  ;;  %v669_v21 = vpop.permute.xlu0 %668  ;;  %v535_v8 = vmul.f32 %v3217_v24, %v533_v5 }
  0xd7   : > { %v673_v34 = vadd.f32 %v669_v21, %v659_v42  ;;  %v847_v42 = vmul.f32 %v3011_v31, %v845_v36  ;;  %v1083_v53 = vadd.f32 %v1079_v20, %v1069_v58  ;;  %v1257_v58 = vmul.f32 %v3011_v31, %v1255_v56 }
  0xd8   : > { %501 = vrot.lane.b32.xlu1 %v497_v13, %s2764_s22  ;;  %1226 = vrot.lane.b32.xlu0 %v1222_v17, %s2764_s22  ;;  %v275_v20 = vadd.f32 %v3108_v46, %v3101_v43  ;;  %v296_v43 = vmul.f32 %v2919_v35, %v295_v19 }
  0xda   : > { %v667_v26 = vpop.permute.xlu1 %666  ;;  %v3222_v27 = vpop.permute.xlu0 %344 }
  0xdb   : > { %v672_v0 = vadd.f32 %v667_v26, %v658_v3  ;;  %v846_v3 = vmul.f32 %v3028_v39, %v845_v36 }
  0xdc   : > { %1248 = vrot.lane.b32.xlu1 %v1243_v22, %s2765_s23  ;;  %838 = vrot.lane.b32.xlu0 %v833_v23, %s2765_s23  ;;  %v1100_v23 = vmul.f32 %v1099_v2, %v2889_v16  ;;  %v534_v16 = vmul.f32 %v3241_v54, %v533_v5  ;;  %v1277_v2 = vmul.f32 %v3067_v4, %v1275_v47  ;;  %v879_v5 = vstv %s3291_s25  ;;  %s3410_s25 = sld [smem:[#allocation3 + $0x15]] }
  0xde   : > { %v1077_v40 = vpop.permute.xlu1 %1076  ;;  %v683_v41 = vpop.permute.xlu0 %682 }
  0xdf   : > { %v687_v49 = vadd.f32 %v683_v41, %v673_v34  ;;  %v1082_v21 = vadd.f32 %v1077_v40, %v1068_v1  ;;  %v290_v1 = vadd.f32 %v3124_v52, %v276_v25  ;;  %v331_v41 = vstv %s3264_s21  ;;  %s3398_s21 = sld [smem:[#allocation3 + $0x23]] }
  0xe0   : > { %836 = vrot.lane.b32.xlu1 %v832_v30, %s2765_s23  ;;  %526 = vrot.lane.b32.xlu0 %v521_v32, %s2765_s23  ;;  %v289_v30 = vadd.f32 %v3122_v51, %v275_v20  ;;  %v297_v32 = vmul.f32 %v2908_v28, %v295_v19  ;;  %v865_v51 = vstv %s3259_s19  ;;  %v1276_v19 = vmul.f32 %v3088_v33, %v1275_v47  ;;  %v3336_v20 = vld [vmem:[%s2858_s20 + $0x49] sm:$0xff]  ;;  %s3394_s19 = sld [smem:[#allocation3 + $0x30]] }
  0xe1   : > { %v3245_v10 = vadd.f32 %v691_v37, %v687_v49  ;;  %v867_v49 = vmul.f32 %v3067_v4, %v865_v51 }
  0xe2   : > { %v3247_v59 = vpop.permute.xlu1 %342  ;;  %v1093_v61 = vpop.permute.xlu0 %1092  ;;  %v298_v40 = vadd.f32 %v296_v43, %v289_v30  ;;  %v299_v52 = vadd.f32 %v297_v32, %v290_v1  ;;  %v723_v1 = vstv %s3312_s6  ;;  %s3430_s6 = sld [smem:[#allocation3 + $0x41]] }
  0xe3   : > { %v1097_v62 = vadd.f32 %v1093_v61, %v1083_v53  ;;  %v555_v53 = vstv %s3275_s24  ;;  %v725_v47 = vmul.f32 %v2908_v28, %v723_v1  ;;  %s3400_s24 = sld [smem:[#allocation3 + $0x54]] }
  0xe4   : > { %1246 = vrot.lane.b32.xlu1 %v1242_v50, %s2765_s23  ;;  %852 = vrot.lane.b32.xlu0 %v847_v42, %s2764_s22  ;;  %v312_v50 = vadd.f32 %v3177_v45, %v298_v40  ;;  %v3302_v42 = vld [vmem:[%s2858_s20 + $0x51] sm:$0xff]  ;;  %v313_v56 = vadd.f32 %v3154_v14, %v299_v52  ;;  %v332_v45 = vmul.f32 %v2952_v55, %v331_v41  ;;  %v404_v52 = vstv %s3328_s13  ;;  %s3454_s13 = sld [smem:[#allocation3 + $0x67]] }
  0xe5   : > { %v3256_v18 = vadd.f32 %v1101_v57, %v1097_v62  ;;  %v866_v14 = vmul.f32 %v3088_v33, %v865_v51 }
  0xe6   : > { %v681_v12 = vpop.permute.xlu1 %680  ;;  %v3261_v13 = vpop.permute.xlu0 %358  ;;  %v326_v62 = vadd.f32 %v3198_v7, %v312_v50 }
  0xe7   : > { %v686_v17 = vadd.f32 %v681_v12, %v672_v0  ;;  %v557_v0 = vmul.f32 %v3302_v42, %v555_v53 }
  0xe8   : > { %524 = vrot.lane.b32.xlu1 %v520_v63, %s2765_s23  ;;  %1262 = vrot.lane.b32.xlu0 %v1257_v58, %s2764_s22  ;;  %v333_v63 = vmul.f32 %v2941_v48, %v331_v41  ;;  %v327_v58 = vadd.f32 %v3189_v60, %v313_v56  ;;  %v334_v12 = vadd.f32 %v332_v45, %v326_v62 }
  0xe9   : > { %v3272_v22 = vadd.f32 %v690_v11, %v686_v17  ;;  %v367_v17 = vstv %s3293_s26  ;;  %v406_v56 = vmul.f32 %v3011_v31, %v404_v52  ;;  %s3416_s26 = sld [smem:[#allocation3 + $0x64]] }
  0xea   : > { %v357_v26 = vpop.permute.xlu1 %356  ;;  %v1091_v29 = vpop.permute.xlu0 %1090  ;;  %v335_v60 = vadd.f32 %v333_v63, %v327_v58  ;;  %v369_v25 = vmul.f32 %v2974_v6, %v367_v17  ;;  %v368_v43 = vmul.f32 %v2985_v15, %v367_v17 }
  0xeb   : > { %v1096_v46 = vadd.f32 %v1091_v29, %v1082_v21  ;;  %v1289_v21 = vstv %s3305_s0  ;;  %s3419_s0 = sld [smem:[#allocation3 + $0x40]] }
  0xec   : > { %850 = vrot.lane.b32.xlu1 %v846_v3, %s2764_s22  ;;  %540 = vrot.lane.b32.xlu0 %v535_v8, %s2764_s22  ;;  %v881_v3 = vmul.f32 %v3067_v4, %v879_v5  ;;  %v348_v8 = vadd.f32 %v3247_v59, %v334_v12  ;;  %v1291_v6 = vmul.f32 %v3067_v4, %v1289_v21 }
  0xed   : > { %v3289_v34 = vadd.f32 %v1100_v23, %v1096_v46  ;;  %v349_v23 = vadd.f32 %v3222_v27, %v335_v60  ;;  %v1133_v46 = vstv %s3317_s8  ;;  %v556_v27 = vmul.f32 %v3336_v20, %v555_v53  ;;  %s3440_s8 = sld [smem:[#allocation3 + $0x65]] }
  0xee   : > { %v1113_v36 = vpop.permute.xlu1 %1112  ;;  %v703_v37 = vpop.permute.xlu0 %702  ;;  %v362_v32 = vadd.f32 %v357_v26, %v348_v8  ;;  %v569_v26 = vstv %s3325_s9  ;;  %s3448_s9 = sld [smem:[#allocation3 + $0x33]] }
  0xef   : > { %v363_v59 = vadd.f32 %v3261_v13, %v349_v23  ;;  %v1117_v51 = vadd.f32 %v1113_v36, %v3256_v18  ;;  %v707_v13 = vadd.f32 %v703_v37, %v3245_v10  ;;  %v724_v37 = vmul.f32 %v2919_v35, %v723_v1  ;;  %v3385_v23 = vld [vmem:[%s2858_s20 + $0x52] sm:$0xff] }
  0xf0   : > { %538 = vrot.lane.b32.xlu1 %v534_v16, %s2764_s22  ;;  %1260 = vrot.lane.b32.xlu0 %v1256_v44, %s2764_s22  ;;  %v1135_v44 = vmul.f32 %v2908_v28, %v1133_v46  ;;  %v370_v40 = vadd.f32 %v368_v43, %v362_v32  ;;  %v570_v58 = vmul.f32 %v3336_v20, %v569_v26 }
  0xf1   : > { %v371_v41 = vadd.f32 %v369_v25, %v363_v59  ;;  %v591_v25 = vstv %s3364_s16  ;;  %s3466_s16 = sld [smem:[#allocation3 + $0x44]] }
  0xf2   : > { %v3308_v57 = vpop.permute.xlu1 %700  ;;  %v3310_v61 = vpop.permute.xlu0 %380  ;;  %v593_v59 = vmul.f32 %v3385_v23, %v591_v25 }
  0xf3   : > { %v706_v62 = vadd.f32 %v3308_v57, %v3272_v22  ;;  %v385_v63 = vadd.f32 %v3310_v61, %v371_v41 }
  0xf4   : > { %1282 = vrot.lane.b32.xlu1 %v1277_v2, %s2765_s23  ;;  %872 = vrot.lane.b32.xlu0 %v867_v49, %s2765_s23  ;;  %v880_v2 = vmul.f32 %v3088_v33, %v879_v5  ;;  %v571_v49 = vmul.f32 %v3302_v42, %v569_v26  ;;  %v899_v5 = vstv %s3351_s15  ;;  %s3460_s15 = sld [smem:[#allocation3 + $0x57]] }
  0xf5   : > { %v900_v1 = vmul.f32 %v3173_v38, %v899_v5 }
  0xf6   : > { %v1111_v7 = vpop.permute.xlu1 %1110  ;;  %v717_v11 = vpop.permute.xlu0 %716 }
  0xf7   : > { %v1116_v50 = vadd.f32 %v1111_v7, %v3289_v34  ;;  %v721_v53 = vadd.f32 %v717_v11, %v707_v13  ;;  %v1323_v13 = vstv %s3388_s18  ;;  %s3476_s18 = sld [smem:[#allocation3 + $0x68]] }
  0xf8   : > { %870 = vrot.lane.b32.xlu1 %v866_v14, %s2765_s23  ;;  %562 = vrot.lane.b32.xlu0 %v557_v0, %s2765_s23  ;;  %v1290_v14 = vmul.f32 %v3088_v33, %v1289_v21  ;;  %v1309_v0 = vstv %s3344_s14  ;;  %v1134_v21 = vmul.f32 %v2919_v35, %v1133_v46  ;;  %v405_v46 = vmul.f32 %v3028_v39, %v404_v52  ;;  %v3407_v39 = vld [vmem:[%s2858_s20 + $0x4a] sm:$0xff]  ;;  %s3458_s14 = sld [smem:[#allocation3 + $0x43]] }
  0xf9   : > { %v727_v22 = vadd.f32 %v725_v47, %v721_v53  ;;  %v1311_v60 = vmul.f32 %v3148_v9, %v1309_v0  ;;  %v605_v53 = vstv %s3398_s21 }
  0xfa   : > { %v379_v29 = vpop.permute.xlu1 %378  ;;  %v1127_v30 = vpop.permute.xlu0 %1126 }
  0xfb   : > { %v384_v28 = vadd.f32 %v379_v29, %v370_v40  ;;  %v1131_v18 = vadd.f32 %v1127_v30, %v1117_v51 }
  0xfc   : > { %1280 = vrot.lane.b32.xlu1 %v1276_v19, %s2765_s23  ;;  %886 = vrot.lane.b32.xlu0 %v881_v3, %s2764_s22  ;;  %v901_v19 = vmul.f32 %v3148_v9, %v899_v5 }
  0xfd   : > { %v1137_v11 = vadd.f32 %v1135_v44, %v1131_v18  ;;  %v1310_v44 = vmul.f32 %v3173_v38, %v1309_v0 }
  0xfe   : > { %v715_v16 = vpop.permute.xlu1 %714  ;;  %v395_v15 = vpop.permute.xlu0 %394 }
  0xff   : > { %v720_v7 = vadd.f32 %v715_v16, %v706_v62  ;;  %v399_v31 = vadd.f32 %v395_v15, %v385_v63  ;;  %v607_v63 = vmul.f32 %v3385_v23, %v605_v53 }
 0x100   : > { %560 = vrot.lane.b32.xlu1 %v556_v27, %s2765_s23  ;;  %1296 = vrot.lane.b32.xlu0 %v1291_v6, %s2764_s22  ;;  %v913_v27 = vstv %s3377_s17  ;;  %s3468_s17 = sld [smem:[#allocation3 + $0x18]] }
 0x101   : > { %v726_v3 = vadd.f32 %v724_v37, %v720_v7  ;;  %v408_v8 = vadd.f32 %v406_v56, %v399_v31  ;;  %v915_v47 = vmul.f32 %v3148_v9, %v913_v27  ;;  %v914_v62 = vmul.f32 %v3173_v38, %v913_v27 }
 0x102   : > { %v393_v10 = vpop.permute.xlu1 %392  ;;  %v1125_v36 = vpop.permute.xlu0 %1124 }
 0x103   : > { %v398_v45 = vadd.f32 %v393_v10, %v384_v28  ;;  %v1130_v34 = vadd.f32 %v1125_v36, %v1116_v50  ;;  %v1325_v50 = vmul.f32 %v3148_v9, %v1323_v13  ;;  %v1167_v10 = vstv %s3400_s24  ;;  %s3503_s24 = sld [smem:[#allocation3 + $0x6a]] }
 0x104   : > { %884 = vrot.lane.b32.xlu1 %v880_v2, %s2764_s22  ;;  %576 = vrot.lane.b32.xlu0 %v571_v49, %s2764_s22  ;;  %v592_v49 = vmul.f32 %v3407_v39, %v591_v25  ;;  %v757_v36 = vstv %s3394_s19  ;;  %s3720_s19 = sld [smem:[#allocation3 + $0x69]] }
 0x105   : > { %v1136_v35 = vadd.f32 %v1134_v21, %v1130_v34  ;;  %v407_v51 = vadd.f32 %v405_v46, %v398_v45  ;;  %v1169_v45 = vmul.f32 %v2941_v48, %v1167_v10  ;;  %v759_v34 = vmul.f32 %v2941_v48, %v757_v36 }
 0x106   : > { %v1147_v57 = vpop.permute.xlu1 %1146  ;;  %v737_v61 = vpop.permute.xlu0 %736  ;;  %v758_v31 = vmul.f32 %v2952_v55, %v757_v36 }
 0x107   : > { %v1151_v12 = vadd.f32 %v1147_v57, %v1137_v11  ;;  %v741_v17 = vadd.f32 %v737_v61, %v727_v22  ;;  %v606_v11 = vmul.f32 %v3407_v39, %v605_v53  ;;  %v1324_v22 = vmul.f32 %v3173_v38, %v1323_v13 }
 0x108   : > { %574 = vrot.lane.b32.xlu1 %v570_v58, %s2764_s22  ;;  %1294 = vrot.lane.b32.xlu0 %v1290_v14, %s2764_s22  ;;  %v440_v58 = vstv %s3410_s25  ;;  %s3509_s25 = sld [smem:[#allocation3 + $0x46]] }
 0x109   : > { %v442_v48 = vmul.f32 %v3067_v4, %v440_v58 }
 0x10a   : > { %v735_v29 = vpop.permute.xlu1 %734  ;;  %v418_v30 = vpop.permute.xlu0 %417 }
 0x10b   : > { %v740_v32 = vadd.f32 %v735_v29, %v726_v3  ;;  %v422_v43 = vadd.f32 %v418_v30, %v408_v8  ;;  %v2663_v29 = vld [vmem:[%s2858_s20 + $0x19] sm:$0xff] }
 0x10c   : > { %1316 = vrot.lane.b32.xlu1 %v1311_v60, %s2765_s23  ;;  %906 = vrot.lane.b32.xlu0 %v901_v19, %s2765_s23  ;;  %v1168_v30 = vmul.f32 %v2663_v29, %v1167_v10 }
 0x10e   : > { %v1145_v6 = vpop.permute.xlu1 %1144  ;;  %v751_v26 = vpop.permute.xlu0 %750 }
 0x10f   : > { %v1150_v16 = vadd.f32 %v1145_v6, %v1136_v35  ;;  %v755_v15 = vadd.f32 %v751_v26, %v741_v17  ;;  %v933_v17 = vstv %s3419_s0  ;;  %v441_v26 = vmul.f32 %v3088_v33, %v440_v58  ;;  %v3487_v58 = vld [vmem:[%s3900_s3] sm:$0xff]  ;;  %s3523_s0 = sld [smem:[#allocation3 + $0x36]] }
 0x110   : > { %904 = vrot.lane.b32.xlu1 %v900_v1, %s2765_s23  ;;  %598 = vrot.lane.b32.xlu0 %v593_v59, %s2765_s23  ;;  %v935_v4 = vmul.f32 %v3217_v24, %v933_v17  ;;  %v934_v27 = vmul.f32 %v3241_v54, %v933_v17  ;;  %v2665_v17 = vld [vmem:[%s2858_s20 + $0x1a] sm:$0xff] }
 0x111   : > { %v761_v61 = vadd.f32 %v759_v34, %v755_v15  ;;  %2523 = vmatprep.mubr.msk.f32.mxu0 %vm1448_vm0, %v3487_v58  ;;  %2539 = vmatprep.mubr.msk.f32.mxu1 %vm1448_vm0, %v3487_v58 }
 0x112   : > { %v416_v40 = vpop.permute.xlu1 %415  ;;  %v1161_v52 = vpop.permute.xlu0 %1160 }
 0x113   : > { %v421_v41 = vadd.f32 %v416_v40, %v407_v51  ;;  %v1165_v2 = vadd.f32 %v1161_v52, %v1151_v12  ;;  %v1343_v12 = vstv %s3416_s26  ;;  %s3515_s26 = sld [smem:[#allocation3 + $0x47]] }
 0x114   : > { %1314 = vrot.lane.b32.xlu1 %v1310_v44, %s2765_s23  ;;  %920 = vrot.lane.b32.xlu0 %v915_v47, %s2764_s22  ;;  %v1345_v8 = vmul.f32 %v3217_v24, %v1343_v12  ;;  %v1344_v40 = vmul.f32 %v3241_v54, %v1343_v12 }
 0x115   : > { %v1171_v57 = vadd.f32 %v1169_v45, %v1165_v2 }
 0x116   : > { %v749_v28 = vpop.permute.xlu1 %748  ;;  %v432_v18 = vpop.permute.xlu0 %431 }
 0x117   : > { %v754_v37 = vadd.f32 %v749_v28, %v740_v32  ;;  %v436_v56 = vadd.f32 %v432_v18, %v422_v43  ;;  %v947_v32 = vstv %s3430_s6  ;;  %v1377_v28 = vstv %s3454_s13  ;;  %s3527_s6 = sld [smem:[#allocation3 + $0x6b]] }
 0x118   : > { %596 = vrot.lane.b32.xlu1 %v592_v49, %s2765_s23  ;;  %1330 = vrot.lane.b32.xlu0 %v1325_v50, %s2764_s22  ;;  %v949_v46 = vmul.f32 %v3217_v24, %v947_v32  ;;  %v948_v53 = vmul.f32 %v3241_v54, %v947_v32  ;;  %v967_v18 = vstv %s3458_s14  ;;  %v1379_v45 = vmul.f32 %v3302_v42, %v1377_v28  ;;  %s3602_s13 = sld [smem:[#allocation3 + $0x39]] }
 0x119   : > { %v760_v21 = vadd.f32 %v758_v31, %v754_v37  ;;  %v444_v25 = vadd.f32 %v442_v48, %v436_v56  ;;  %v1201_v37 = vstv %s3460_s15  ;;  %v791_v56 = vstv %s3448_s9  ;;  %s2329_s9 = sld [smem:[#allocation3 + $0x21]] }
 0x11a   : > { %v430_v14 = vpop.permute.xlu1 %429  ;;  %v1159_v0 = vpop.permute.xlu0 %1158  ;;  %v969_v34 = vmul.f32 %v3302_v42, %v967_v18  ;;  %v968_v12 = vmul.f32 %v3336_v20, %v967_v18  ;;  %v1378_v32 = vmul.f32 %v3336_v20, %v1377_v28  ;;  %s3607_s14 = sld [smem:[#allocation3 + $0x5d]] }
 0x11b   : > { %v435_v5 = vadd.f32 %v430_v14, %v421_v41  ;;  %v1164_v7 = vadd.f32 %v1159_v0, %v1150_v16  ;;  %v1357_v16 = vstv %s3440_s8  ;;  %v2664_v14 = vld [vmem:[%s2858_s20 + $0x22] sm:$0xff]  ;;  %s3529_s8 = sld [smem:[#allocation3 + $0x5a]] }
 0x11c   : > { %918 = vrot.lane.b32.xlu1 %v914_v62, %s2764_s22  ;;  %612 = vrot.lane.b32.xlu0 %v607_v63, %s2764_s22  ;;  %v1359_v13 = vmul.f32 %v3217_v24, %v1357_v16  ;;  %v1358_v50 = vmul.f32 %v3241_v54, %v1357_v16  ;;  %v1203_v0 = vmul.f32 %v2664_v14, %v1201_v37  ;;  %s3612_s15 = sld [smem:[#allocation3 + $0x3c]] }
 0x11d   : > { %v1170_v6 = vadd.f32 %v1168_v30, %v1164_v7  ;;  %v443_v33 = vadd.f32 %v441_v26, %v435_v5  ;;  %v793_v5 = vmul.f32 %v2664_v14, %v791_v56  ;;  %v981_v7 = vstv %s3466_s16  ;;  %s3617_s16 = sld [smem:[#allocation3 + $0x60]] }
 0x11e   : > { %v1181_v60 = vpop.permute.xlu1 %1180  ;;  %v771_v55 = vpop.permute.xlu0 %770  ;;  %v982_v26 = vmul.f32 %v3336_v20, %v981_v7  ;;  %v1425_v18 = vstv %s3527_s6 }
 0x11f   : > { %v1185_v19 = vadd.f32 %v1181_v60, %v1171_v57  ;;  %v775_v3 = vadd.f32 %v771_v55, %v761_v61  ;;  %v983_v61 = vmul.f32 %v3302_v42, %v981_v7  ;;  %v792_v60 = vmul.f32 %v2665_v17, %v791_v56 }
 0x120   : > { %610 = vrot.lane.b32.xlu1 %v606_v11, %s2764_s22  ;;  %1328 = vrot.lane.b32.xlu0 %v1324_v22, %s2764_s22  ;;  %v476_v22 = vstv %s3468_s17  ;;  %v825_v56 = vstv %s3523_s0  ;;  %s3700_s17 = sld [smem:[#allocation3 + $0x66]] }
 0x122   : > { %v769_v43 = vpop.permute.xlu1 %768  ;;  %v454_v1 = vpop.permute.xlu0 %453 }
 0x123   : > { %v774_v59 = vadd.f32 %v769_v43, %v760_v21  ;;  %v458_v35 = vadd.f32 %v454_v1, %v444_v25 }
 0x124   : > { %1350 = vrot.lane.b32.xlu1 %v1345_v8, %s2765_s23  ;;  %940 = vrot.lane.b32.xlu0 %v935_v4, %s2765_s23  ;;  %v1391_v8 = vstv %s3476_s18  ;;  %s3711_s18 = sld [smem:[#allocation3 + $0x45]] }
 0x125   : > { %v1393_v30 = vmul.f32 %v3302_v42, %v1391_v8 }
 0x126   : > { %v1179_v15 = vpop.permute.xlu1 %1178  ;;  %v785_v44 = vpop.permute.xlu0 %784 }
 0x127   : > { %v1184_v47 = vadd.f32 %v1179_v15, %v1170_v6  ;;  %v789_v51 = vadd.f32 %v785_v44, %v775_v3  ;;  %v478_v3 = vmul.f32 %v3148_v9, %v476_v22  ;;  %v1202_v9 = vmul.f32 %v2665_v17, %v1201_v37  ;;  %v2667_v17 = vld [vmem:[%s2858_s20 + $0x30] sm:$0xff] }
 0x128   : > { %954 = vrot.lane.b32.xlu1 %v949_v46, %s2764_s22  ;;  %938 = vrot.lane.b32.xlu0 %v934_v27, %s2765_s23  ;;  %v1392_v6 = vmul.f32 %v3336_v20, %v1391_v8  ;;  %v1411_v15 = vstv %s3503_s24  ;;  %v1001_v44 = vstv %s3509_s25  ;;  %s3632_s24 = sld [smem:[#allocation3 + $0x3f]] }
 0x129   : > { %v1002_v28 = vmul.f32 %v3407_v39, %v1001_v44  ;;  %v1235_v37 = vstv %s3529_s8  ;;  %s3654_s8 = sld [smem:[#allocation3 + $0x63]] }
 0x12a   : > { %v452_v52 = vpop.permute.xlu1 %451  ;;  %v1195_v41 = vpop.permute.xlu0 %1194 }
 0x12b   : > { %v457_v2 = vadd.f32 %v452_v52, %v443_v33  ;;  %v1199_v49 = vadd.f32 %v1195_v41, %v1185_v19  ;;  %v795_v19 = vadd.f32 %v793_v5, %v789_v51  ;;  %v1413_v33 = vmul.f32 %v3385_v23, %v1411_v15 }
 0x12c   : > { %1364 = vrot.lane.b32.xlu1 %v1359_v13, %s2764_s22  ;;  %1348 = vrot.lane.b32.xlu0 %v1344_v40, %s2765_s23  ;;  %v1003_v52 = vmul.f32 %v3385_v23, %v1001_v44  ;;  %v1015_v41 = vstv %s3515_s26  ;;  %s173_s26 = sand.u32 1, %s2752_s27  }
 0x12d   : > { %v1205_v55 = vadd.f32 %v1203_v0, %v1199_v49  ;;  %s2615_s0 = smul.u32 192, %s173_s26 }
 0x12e   : > { %v783_v10 = vpop.permute.xlu1 %782  ;;  %v468_v36 = vpop.permute.xlu0 %467 }
 0x12f   : > { %v788_v62 = vadd.f32 %v783_v10, %v774_v59  ;;  %v472_v63 = vadd.f32 %v468_v36, %v458_v35  ;;  %s3797_s6 = scalar_lea.vmem [#allocation5], %s2615_s0 }
 0x130   : > { %1362 = vrot.lane.b32.xlu1 %v1358_v50, %s2764_s22  ;;  %952 = vrot.lane.b32.xlu0 %v948_v53, %s2764_s22  ;;  %v1017_v53 = vmul.f32 %v3385_v23, %v1015_v41 }
 0x131   : > { %v794_v43 = vadd.f32 %v792_v60, %v788_v62  ;;  %v480_v1 = vadd.f32 %v478_v3, %v472_v63  ;;  %v1427_v63 = vmul.f32 %v3385_v23, %v1425_v18  ;;  %v826_v60 = vmul.f32 %v2667_v17, %v825_v56 }
 0x132   : > { %v466_v31 = vpop.permute.xlu1 %465  ;;  %v1193_v11 = vpop.permute.xlu0 %1192 }
 0x133   : > { %v3496_v48 = vadd.f32 %v466_v31, %v457_v2  ;;  %v1198_v57 = vadd.f32 %v1193_v11, %v1184_v47  ;;  %v1426_v11 = vmul.f32 %v3407_v39, %v1425_v18 }
 0x134   : > { %1384 = vrot.lane.b32.xlu1 %v1379_v45, %s2765_s23  ;;  %974 = vrot.lane.b32.xlu0 %v969_v34, %s2765_s23  ;;  %v1412_v45 = vmul.f32 %v3407_v39, %v1411_v15  ;;  %v2666_v34 = vld [vmem:[%s2858_s20 + $0x38] sm:$0xff] }
 0x135   : > { %v1204_v16 = vadd.f32 %v1202_v9, %v1198_v57  ;;  %v1237_v14 = vmul.f32 %v2666_v34, %v1235_v37  ;;  %v827_v0 = vmul.f32 %v2666_v34, %v825_v56  ;;  %v1016_v57 = vmul.f32 %v3407_v39, %v1015_v41 }
 0x136   : > { %v1215_v4 = vpop.permute.xlu1 %1214  ;;  %v805_v21 = vpop.permute.xlu0 %804 }
 0x137   : > { %v1219_v25 = vadd.f32 %v1215_v4, %v1205_v55  ;;  %v809_v29 = vadd.f32 %v805_v21, %v795_v19  ;;  %v1236_v21 = vmul.f32 %v2667_v17, %v1235_v37 }
 0x138   : > { %988 = vrot.lane.b32.xlu1 %v983_v61, %s2764_s22  ;;  %972 = vrot.lane.b32.xlu0 %v968_v12, %s2765_s23 }
 0x13a   : > { %v803_v59 = vpop.permute.xlu1 %802  ;;  %v490_v35 = vpop.permute.xlu0 %489 }
 0x13b   : > { %v808_v46 = vadd.f32 %v803_v59, %v794_v43  ;;  %v3517_v27 = vadd.f32 %v490_v35, %v480_v1 }
 0x13c   : > { %1398 = vrot.lane.b32.xlu1 %v1393_v30, %s2764_s22  ;;  %1382 = vrot.lane.b32.xlu0 %v1378_v32, %s2765_s23 }
 0x13e   : > { %v1213_v47 = vpop.permute.xlu1 %1212  ;;  %v819_v51 = vpop.permute.xlu0 %818 }
 0x13f   : > { %v1218_v13 = vadd.f32 %v1213_v47, %v1204_v16  ;;  %v823_v40 = vadd.f32 %v819_v51, %v809_v29 }
 0x140   : > { %1396 = vrot.lane.b32.xlu1 %v1392_v6, %s2764_s22  ;;  %986 = vrot.lane.b32.xlu0 %v982_v26, %s2764_s22 }
 0x141   : > { %v829_v12 = vadd.f32 %v827_v0, %v823_v40 }
 0x142   : > { %v3536_v2 = vpop.permute.xlu1 %487  ;;  %v1229_v49 = vpop.permute.xlu0 %1228 }
 0x143   : > { %v1233_v50 = vadd.f32 %v1229_v49, %v1219_v25 }
 0x144   : > { %1418 = vrot.lane.b32.xlu1 %v1413_v33, %s2765_s23  ;;  %1008 = vrot.lane.b32.xlu0 %v1003_v52, %s2765_s23 }
 0x145   : > { %v1239_v61 = vadd.f32 %v1237_v14, %v1233_v50 }
 0x146   : > { %v817_v10 = vpop.permute.xlu1 %816  ;;  %v504_v36 = vpop.permute.xlu0 %503 }
 0x147   : > { %v822_v62 = vadd.f32 %v817_v10, %v808_v46 }
 0x148   : > { %1022 = vrot.lane.b32.xlu1 %v1017_v53, %s2764_s22  ;;  %1006 = vrot.lane.b32.xlu0 %v1002_v28, %s2765_s23  ;;  %v477_v28 = vmul.f32 %v3173_v38, %v476_v22 }
 0x149   : > { %v828_v4 = vadd.f32 %v826_v60, %v822_v62  ;;  %v508_v62 = vadd.f32 %v504_v36, %v3517_v27 }
 0x14a   : > { %v502_v5 = vpop.permute.xlu1 %501  ;;  %v1227_v7 = vpop.permute.xlu0 %1226  ;;  %v479_v56 = vadd.f32 %v477_v28, %v3496_v48 }
 0x14b   : > { %v1232_v31 = vadd.f32 %v1227_v7, %v1218_v13 }
 0x14c   : > { %1432 = vrot.lane.b32.xlu1 %v1427_v63, %s2764_s22  ;;  %1416 = vrot.lane.b32.xlu0 %v1412_v45, %s2765_s23  ;;  %s2324_s23 = sld [smem:[#allocation3 + $0x1e]]  ;;  %v493_v45 = vadd.f32 %v3536_v2, %v479_v56  ;;  %v3623_v56 = vld [vmem:[%s3900_s3 + $0x8] sm:$0xff] }
 0x14d   : > { %v1238_v32 = vadd.f32 %v1236_v21, %v1232_v31 }
 0x14e   : > { %v1249_v55 = vpop.permute.xlu1 %1248  ;;  %v839_v19 = vpop.permute.xlu0 %838  ;;  %v507_v0 = vadd.f32 %v502_v5, %v493_v45 }
 0x14f   : > { %v1253_v3 = vadd.f32 %v1249_v55, %v1239_v61  ;;  %v843_v8 = vadd.f32 %v839_v19, %v829_v12 }
 0x150   : > { %1430 = vrot.lane.b32.xlu1 %v1426_v11, %s2764_s22  ;;  %1020 = vrot.lane.b32.xlu0 %v1016_v57, %s2764_s22  ;;  %s2319_s22 = sld [smem:[#allocation3 + $0x1b]] }
 0x152   : > { %v837_v25 = vpop.permute.xlu1 %836  ;;  %v527_v29 = vpop.permute.xlu0 %526  ;;  %v549_v22 = vstv %s2324_s23 }
 0x153   : > { %v842_v30 = vadd.f32 %v837_v25, %v828_v4  ;;  %v550_v17 = vmul.f32 %v3336_v20, %v549_v22 }
 0x156   : > { %v1247_v43 = vpop.permute.xlu1 %1246  ;;  %v853_v1 = vpop.permute.xlu0 %852  ;;  %v513_v18 = vstv %s2319_s22  ;;  %s2214_s22 = sshll.u32 %s3797_s6, 4  ;;  %s3846_s22 = int_to_ptr.vmem [resolvable:$true] %s2214_s22 }
 0x157   : > { %v1252_v9 = vadd.f32 %v1247_v43, %v1238_v32  ;;  %v3557_v59 = vadd.f32 %v853_v1, %v843_v8  ;;  %v515_v63 = vmul.f32 %v3217_v24, %v513_v18  ;;  %v514_v38 = vmul.f32 %v3241_v54, %v513_v18 }
 0x158   : > { %v551_v24 = vmul.f32 %v3302_v42, %v549_v22  ;;  %v585_v54 = vstv %s2329_s9 }
 0x159   : > { %v517_v7 = vadd.f32 %v515_v63, %v508_v62  ;;  %v516_v48 = vadd.f32 %v514_v38, %v507_v0  ;;  %v587_v4 = vmul.f32 %v3385_v23, %v585_v54  ;;  %v586_v43 = vmul.f32 %v3407_v39, %v585_v54  ;;  %v3628_v62 = vld [vmem:[%s3900_s3 + $0x10] sm:$0xff]  ;;  %v3645_v38 = vld [vmem:[%s3900_s3 + $0x18] sm:$0xff]  ;;  %v3671_v54 = vld [vmem:[%s3900_s3 + $0x28] sm:$0xff] }
 0x15a   : > { %v525_v35 = vpop.permute.xlu1 %524  ;;  %v1263_v46 = vpop.permute.xlu0 %1262 }
 0x15b   : > { %v3559_v6 = vadd.f32 %v1263_v46, %v1253_v3  ;;  %v531_v31 = vadd.f32 %v527_v29, %v517_v7  ;;  %v530_v36 = vadd.f32 %v525_v35, %v516_v48  ;;  %v893_v7 = vstv %s3612_s15  ;;  %s2766_s15 = smov [#allocation5]  }
 0x15e   : > { %v851_v26 = vpop.permute.xlu1 %850  ;;  %v541_v16 = vpop.permute.xlu0 %540 }
 0x15f   : > { %v3561_v15 = vadd.f32 %v851_v26, %v842_v30  ;;  %v545_v27 = vadd.f32 %v541_v16, %v531_v31  ;;  %v859_v16 = vstv %s3602_s13  ;;  %v3651_v31 = vld [vmem:[%s3900_s3 + $0x20] sm:$0xff]  ;;  %s3858_s13 = scalar_lea.sflag [#allocation6], %s173_s26 }
 0x161   : > { %v553_v5 = vadd.f32 %v551_v24, %v545_v27 }
 0x162   : > { %v539_v44 = vpop.permute.xlu1 %538  ;;  %v1261_v47 = vpop.permute.xlu0 %1260 }
 0x163   : > { %v3563_v51 = vadd.f32 %v1261_v47, %v1252_v9  ;;  %v544_v12 = vadd.f32 %v539_v44, %v530_v36 }
 0x165   : > { %v552_v3 = vadd.f32 %v550_v17, %v544_v12 }
 0x166   : > { %v3565_v13 = vpop.permute.xlu1 %1282  ;;  %v3567_v40 = vpop.permute.xlu0 %872 }
 0x16a   : > { %v3569_v33 = vpop.permute.xlu1 %870  ;;  %v563_v52 = vpop.permute.xlu0 %562 }
 0x16b   : > { %v567_v60 = vadd.f32 %v563_v52, %v553_v5  ;;  %v2670_v5 = vld [vmem:[%s2858_s20 + $0x3a] sm:$0xff] }
 0x16c   : > { %v895_v17 = vmul.f32 %v2670_v5, %v893_v7 }
 0x16e   : > { %v3571_v41 = vpop.permute.xlu1 %1280  ;;  %v3573_v49 = vpop.permute.xlu0 %886 }
 0x172   : > { %v561_v50 = vpop.permute.xlu1 %560  ;;  %v3575_v53 = vpop.permute.xlu0 %1296 }
 0x173   : > { %v566_v21 = vadd.f32 %v561_v50, %v552_v3  ;;  %v2668_v50 = vld [vmem:[%s2858_s20 + $0x39] sm:$0xff]  ;;  %v927_v3 = vstv %s3632_s24 }
 0x174   : > { %v861_v28 = vmul.f32 %v2668_v50, %v859_v16 }
 0x176   : > { %v3580_v10 = vpop.permute.xlu1 %884  ;;  %v577_v37 = vpop.permute.xlu0 %576  ;;  %v863_v0 = vadd.f32 %v861_v28, %v3557_v59  ;;  %v2669_v59 = vld [vmem:[%s2858_s20 + $0x31] sm:$0xff] }
 0x177   : > { %v581_v8 = vadd.f32 %v577_v37, %v567_v60  ;;  %v1269_v37 = vstv %s3607_s14  ;;  %v860_v48 = vmul.f32 %v2669_v59, %v859_v16  ;;  %s3680_s14 = sld [smem:[#allocation3 + $0x42]] }
 0x178   : > { %v877_v22 = vadd.f32 %v3567_v40, %v863_v0  ;;  %v1270_v27 = vmul.f32 %v2669_v59, %v1269_v37  ;;  %v1303_v40 = vstv %s3617_s16  ;;  %s2702_s16 = sshll.u32 %s2766_s15, 4  ;;  %s2703_s16 = int_to_ptr.vmem [resolvable:$false] %s2702_s16 }
 0x179   : > { %v589_v32 = vadd.f32 %v587_v4, %v581_v8  ;;  %p2705_p10 = scmp.lt.s32.totalorder %s3846_s22, %s2703_s16 }
 0x17a   : > { %v575_v34 = vpop.permute.xlu1 %574  ;;  %v3586_v14 = vpop.permute.xlu0 %1294  ;;  %v891_v12 = vadd.f32 %v3573_v49, %v877_v22  ;;  %v1305_v49 = vmul.f32 %v2670_v5, %v1303_v40 }
 0x17b   : > { %v580_v30 = vadd.f32 %v575_v34, %v566_v21  ;;  %v1271_v34 = vmul.f32 %v2668_v50, %v1269_v37  ;;  %v862_v21 = vadd.f32 %v860_v48, %v3561_v15  ;;  %v2673_v48 = vld [vmem:[%s2858_s20 + $0x48] sm:$0xff] }
 0x17d   : > { %v588_v46 = vadd.f32 %v586_v43, %v580_v30  ;;  %v897_v30 = vadd.f32 %v895_v17, %v891_v12  ;;  %v876_v43 = vadd.f32 %v3569_v33, %v862_v21  ;;  %v995_v21 = vstv %s3711_s18 }
 0x17e   : > { %v3589_v11 = vpop.permute.xlu1 %1316  ;;  %v3591_v57 = vpop.permute.xlu0 %906 }
 0x17f   : > { %v890_v50 = vadd.f32 %v3580_v10, %v876_v43 }
 0x182   : > { %v3594_v2 = vpop.permute.xlu1 %904  ;;  %v599_v61 = vpop.permute.xlu0 %598 }
 0x183   : > { %v603_v1 = vadd.f32 %v599_v61, %v589_v32  ;;  %v1273_v61 = vadd.f32 %v1271_v34, %v3559_v6  ;;  %v3677_v6 = vld [vmem:[%s3900_s3 + $0x30] sm:$0xff]  ;;  %v3692_v32 = vld [vmem:[%s3900_s3 + $0x38] sm:$0xff]  ;;  %v961_v34 = vstv %s3680_s14  ;;  %s2698_s14 = scalar_lea.vmem %s3846_s22, 3072 }
 0x184   : > { %v963_v12 = vmul.f32 %v3302_v42, %v961_v34  ;;  %p2699_p7 = scmp.ne.s32.totalorder %s3846_s22, %s2698_s14 }
 0x185   : > { %v1287_v60 = vadd.f32 %v3565_v13, %v1273_v61  ;;  %v1371_v61 = vstv %s3700_s17  ;;  %s2704_s17 = scalar_lea.vmem %s2703_s16, 6144 }
 0x186   : > { %v3597_v55 = vpop.permute.xlu1 %1314  ;;  %v3599_v19 = vpop.permute.xlu0 %920  ;;  %p2700_p8 = pnand %p2699_p7, %p2843_p1  ;;  %p2706_p11 = scmp.lt.s32.totalorder %s2704_s17, %s2698_s14 }
 0x187   : > { %v1301_v13 = vadd.f32 %v3575_v53, %v1287_v60  ;;  %v1373_v60 = vmul.f32 %v3302_v42, %v1371_v61  ;;  %v997_v42 = vmul.f32 %v3385_v23, %v995_v21 }
 0x188   : > { %p2701_p9 = pneg %p2700_p8  ;;  %p2707_p12 = por %p2706_p11, %p2705_p10 }
 0x189   : > { %v1307_v33 = vadd.f32 %v1305_v49, %v1301_v13 }
 0x18a   : > { %v597_v25 = vpop.permute.xlu1 %596  ;;  %v3604_v29 = vpop.permute.xlu0 %1330  ;;  %p2708_p13 = pnand %p2707_p12, %p2701_p9 }
 0x18b   : > { %v602_v44 = vadd.f32 %v597_v25, %v588_v46  ;;  %v1272_v25 = vadd.f32 %v1270_v27, %v3563_v51  ;;  %v911_v51 = vadd.f32 %v3591_v57, %v897_v30  ;;  %v1337_v46 = vstv %s3654_s8  ;;  %s2617_s8 = smul.u32 3072, %s2826_s30 }
 0x18c   : > { %v1321_v57 = vadd.f32 %v3589_v11, %v1307_v33  ;;  %v928_v11 = vmul.f32 %v2673_v48, %v927_v3  ;;  %v1338_v27 = vmul.f32 %v2673_v48, %v1337_v46 }
 0x18d   : > { %v1286_v15 = vadd.f32 %v3571_v41, %v1272_v25  ;;  %v925_v41 = vadd.f32 %v3599_v19, %v911_v51  ;;  %s3844_s30 = scalar_lea.hbm %s3902_s5, %s2617_s8 }
 0x18e   : > { %v3609_v9 = vpop.permute.xlu1 %918  ;;  %v613_v35 = vpop.permute.xlu0 %612  ;;  %v1335_v19 = vadd.f32 %v3604_v29, %v1321_v57 }
 0x18f   : > { %v617_v26 = vadd.f32 %v613_v35, %v603_v1  ;;  %v2671_v1 = vld [vmem:[%s2858_s20 + $0x32] sm:$0xff]  ;;  %v1300_v28 = vadd.f32 %v3586_v14, %v1286_v15 }
 0x190   : > { %v894_v53 = vmul.f32 %v2671_v1, %v893_v7  ;;  %v1304_v35 = vmul.f32 %v2671_v1, %v1303_v40 }
 0x191   : > { %2519 = vmatprep.subr.mxu0 %v617_v26 }
 0x192   : > { %v611_v47 = vpop.permute.xlu1 %610  ;;  %2520 = vmatpush3.msra.mxu0 %v617_v26  ;;  %v3614_v52 = vpop.permute.xlu0 %1328  ;;  %v2672_v26 = vld [vmem:[%s2858_s20 + $0x50] sm:$0xff]  ;;  %v896_v10 = vadd.f32 %v894_v53, %v890_v50  ;;  %v1306_v14 = vadd.f32 %v1304_v35, %v1300_v28  ;;  %v1405_v53 = vstv %s3720_s19 }
 0x193   : > { %v616_v18 = vadd.f32 %v611_v47, %v602_v44  ;;  %v929_v16 = vmul.f32 %v2672_v26, %v927_v3  ;;  %v1407_v50 = vmul.f32 %v3385_v23, %v1405_v53 }
 0x194   : > { %v910_v22 = vadd.f32 %v3594_v2, %v896_v10  ;;  %v1320_v59 = vadd.f32 %v3597_v55, %v1306_v14  ;;  %v996_v10 = vmul.f32 %v3407_v39, %v995_v21 }
 0x195   : > { %2521 = vmatprep.subr.mxu0 %v616_v18  ;;  %v931_v7 = vadd.f32 %v929_v16, %v925_v41 }
 0x196   : > { %v3630_v63 = vpop.permute.xlu1 %1350  ;;  %v3634_v45 = vpop.permute.xlu0 %940  ;;  %2522 = vmatpush3.msra.mxu0 %v616_v18  ;;  %v1339_v18 = vmul.f32 %v2672_v26, %v1337_v46  ;;  %v924_v29 = vadd.f32 %v3609_v9, %v910_v22  ;;  %v1334_v17 = vadd.f32 %v3614_v52, %v1320_v59  ;;  %v962_v52 = vmul.f32 %v3336_v20, %v961_v34 }
 0x197   : > { %2524 = vmatmul.mubr.msk.f32.vlgmr.msra.gmra.mxu0 %vm1448_vm0, %v3623_v56 }
 0x198   : > { %2526 = vmatprep.mubr.msk.f32.mxu0 %vm1448_vm0, %v3628_v62  ;;  %v1341_v2 = vadd.f32 %v1339_v18, %v1335_v19  ;;  %v930_v25 = vadd.f32 %v928_v11, %v924_v29  ;;  %v1340_v30 = vadd.f32 %v1338_v27, %v1334_v17  ;;  %v1447_v29 = vld [vmem:[%s3901_s4 + $0x8] sm:$0xff] }
 0x19a   : > { %v3656_v24 = vpop.permute.xlu1 %954  ;;  %v3658_v36 = vpop.permute.xlu0 %938 }
 0x19b   : > { %2527 = vmatmul.mubr.msk.f32.gmra.mxu0 %vm1448_vm0, %v3645_v38  ;;  %v944_v15 = vadd.f32 %v3658_v36, %v930_v25 }
 0x19c   : > { %2529 = vmatprep.mubr.msk.f32.mxu0 %vm1448_vm0, %v3651_v31 }
 0x19e   : > { %v1365_v8 = vpop.permute.xlu1 %1364  ;;  %v1349_v4 = vpop.permute.xlu0 %1348 }
 0x19f   : > { %2530 = vmatmul.mubr.msk.f32.gmra.mxu0 %vm1448_vm0, %v3671_v54  ;;  %v1354_v9 = vadd.f32 %v1349_v4, %v1340_v30 }
 0x1a0   : > { %2532 = vmatprep.mubr.msk.f32.mxu0 %vm1448_vm0, %v3677_v6 }
 0x1a2   : > { %v1363_v44 = vpop.permute.xlu1 %1362  ;;  %v953_v47 = vpop.permute.xlu0 %952 }
 0x1a3   : > { %2533 = vmatmul.mubr.msk.f32.gmra.mxu0 %vm1448_vm0, %v3692_v32  ;;  %v1368_v35 = vadd.f32 %v1363_v44, %v1354_v9  ;;  %v958_v46 = vadd.f32 %v953_v47, %v944_v15  ;;  %v1406_v44 = vmul.f32 %v3407_v39, %v1405_v53 }
 0x1a4   : > { %2555 = vmatprep.mubr.msk.f32.mxu0 %vm1448_vm0, %v3487_v58  ;;  %v945_v58 = vadd.f32 %v3634_v45, %v931_v7  ;;  %v1355_v45 = vadd.f32 %v3630_v63, %v1341_v2 }
 0x1a5   : > { %v964_v4 = vadd.f32 %v962_v52, %v958_v46 }
 0x1a6   : > { %v1385_v37 = vpop.permute.xlu1 %1384  ;;  %v975_v0 = vpop.permute.xlu0 %974  ;;  %v959_v55 = vadd.f32 %v3656_v24, %v945_v58  ;;  %v1369_v13 = vadd.f32 %v1365_v8, %v1355_v45  ;;  %v1372_v24 = vmul.f32 %v3336_v20, %v1371_v61 }
 0x1a8   : > { %v965_v43 = vadd.f32 %v963_v12, %v959_v55  ;;  %v1375_v26 = vadd.f32 %v1373_v60, %v1369_v13  ;;  %v1374_v41 = vadd.f32 %v1372_v24, %v1368_v35 }
 0x1aa   : > { %v989_v40 = vpop.permute.xlu1 %988  ;;  %v973_v5 = vpop.permute.xlu0 %972  ;;  %v979_v51 = vadd.f32 %v975_v0, %v965_v43  ;;  %v1389_v8 = vadd.f32 %v1385_v37, %v1375_v26 }
 0x1ab   : > { %v978_v18 = vadd.f32 %v973_v5, %v964_v4 }
 0x1ac   : > { %v993_v16 = vadd.f32 %v989_v40, %v979_v51 }
 0x1ae   : > { %v1399_v49 = vpop.permute.xlu1 %1398  ;;  %v1383_v3 = vpop.permute.xlu0 %1382  ;;  %v999_v57 = vadd.f32 %v997_v42, %v993_v16 }
 0x1af   : > { %v1403_v33 = vadd.f32 %v1399_v49, %v1389_v8  ;;  %v1388_v20 = vadd.f32 %v1383_v3, %v1374_v41 }
 0x1b1   : > { %v1409_v37 = vadd.f32 %v1407_v50, %v1403_v33 }
 0x1b2   : > { %v1397_v1 = vpop.permute.xlu1 %1396  ;;  %v987_v63 = vpop.permute.xlu0 %986 }
 0x1b3   : > { %v1402_v47 = vadd.f32 %v1397_v1, %v1388_v20  ;;  %v992_v19 = vadd.f32 %v987_v63, %v978_v18 }
 0x1b5   : > { %v998_v58 = vadd.f32 %v996_v10, %v992_v19  ;;  %v1408_v11 = vadd.f32 %v1406_v44, %v1402_v47 }
 0x1b6   : > { %v1419_v28 = vpop.permute.xlu1 %1418  ;;  %v1009_v36 = vpop.permute.xlu0 %1008 }
 0x1b7   : > { %v1013_v34 = vadd.f32 %v1009_v36, %v999_v57  ;;  %v1423_v23 = vadd.f32 %v1419_v28, %v1409_v37 }
 0x1ba   : > { %v1023_v0 = vpop.permute.xlu1 %1022  ;;  %v1007_v14 = vpop.permute.xlu0 %1006 }
 0x1bb   : > { %v1027_v7 = vadd.f32 %v1023_v0, %v1013_v34  ;;  %v1012_v27 = vadd.f32 %v1007_v14, %v998_v58 }
 0x1bd   : > { %2535 = vmatprep.subr.mxu1 %v1027_v7 }
 0x1be   : > { %v1433_v22 = vpop.permute.xlu1 %1432  ;;  %2536 = vmatpush3.msra.mxu1 %v1027_v7  ;;  %v1417_v59 = vpop.permute.xlu0 %1416 }
 0x1bf   : > { %v1437_v48 = vadd.f32 %v1433_v22, %v1423_v23  ;;  %v1422_v61 = vadd.f32 %v1417_v59, %v1408_v11 }
 0x1c1   : > { %2551 = vmatprep.subr.mxu0 %v1437_v48 }
 0x1c2   : > { %v1431_v12 = vpop.permute.xlu1 %1430  ;;  %v1021_v40 = vpop.permute.xlu0 %1020  ;;  %2552 = vmatpush3.msra.mxu0 %v1437_v48 }
 0x1c3   : > { %v1436_v5 = vadd.f32 %v1431_v12, %v1422_v61  ;;  %v1026_v39 = vadd.f32 %v1021_v40, %v1012_v27 }
 0x1c5   : > { %2537 = vmatprep.subr.mxu1 %v1026_v39  ;;  %2553 = vmatprep.subr.mxu0 %v1436_v5 }
 0x1c6   : > { %2538 = vmatpush3.msra.mxu1 %v1026_v39  ;;  %2554 = vmatpush3.msra.mxu0 %v1436_v5 }
 0x1c7   : > { %2540 = vmatmul.mubr.msk.f32.vlgmr.msra.gmra.mxu1 %vm1448_vm0, %v3623_v56  ;;  %2556 = vmatmul.mubr.msk.f32.vlgmr.msra.gmra.mxu0 %vm1448_vm0, %v3623_v56  ;;  %v1446_v56 = vld [vmem:[%s3901_s4] sm:$0xff] }
 0x1c8   : > { %2542 = vmatprep.mubr.msk.f32.mxu1 %vm1448_vm0, %v3628_v62  ;;  %2558 = vmatprep.mubr.msk.f32.mxu0 %vm1448_vm0, %v3628_v62 }
 0x1c9   : > { %2567 = vmatprep.subr.mxu1 %v1447_v29  ;;  %2583 = vmatprep.subr.mxu0 %v1447_v29 }
 0x1ca   : > { %2568 = vmatpush3.msra.mxu1 %v1447_v29  ;;  %2584 = vmatpush3.msra.mxu0 %v1447_v29 }
 0x1cb   : > { %2543 = vmatmul.mubr.msk.f32.gmra.mxu1 %vm1448_vm0, %v3645_v38  ;;  %2559 = vmatmul.mubr.msk.f32.gmra.mxu0 %vm1448_vm0, %v3645_v38 }
 0x1cc   : > { %2545 = vmatprep.mubr.msk.f32.mxu1 %vm1448_vm0, %v3651_v31  ;;  %2561 = vmatprep.mubr.msk.f32.mxu0 %vm1448_vm0, %v3651_v31 }
 0x1cd   : > { %2569 = vmatprep.subr.mxu1 %v1446_v56  ;;  %2585 = vmatprep.subr.mxu0 %v1446_v56 }
 0x1ce   : > { %2570 = vmatpush3.msra.mxu1 %v1446_v56  ;;  %2586 = vmatpush3.msra.mxu0 %v1446_v56 }
 0x1cf   : > { %2546 = vmatmul.mubr.msk.f32.gmra.mxu1 %vm1448_vm0, %v3671_v54  ;;  %2562 = vmatmul.mubr.msk.f32.gmra.mxu0 %vm1448_vm0, %v3671_v54 }
 0x1d0   : > { %2548 = vmatprep.mubr.msk.f32.mxu1 %vm1448_vm0, %v3677_v6  ;;  %2564 = vmatprep.mubr.msk.f32.mxu0 %vm1448_vm0, %v3677_v6 }
 0x1d1   : > { %2599 = vmatprep.subr.mxu1 %v1447_v29 }
 0x1d3   : > { %2549 = vmatmul.mubr.msk.f32.gmra.mxu1 %vm1448_vm0, %v3692_v32  ;;  %2565 = vmatmul.mubr.msk.f32.gmra.mxu0 %vm1448_vm0, %v3692_v32 }
 0x257   : > { %v2525_v62 = vpop.f32.mrf.mxu0 }
 0x259   : > { %v1539_v38 = vpop.f32.mrf.mxu0 }
 0x25a   : > { %2571 = vmatprep.mubr.msk.f32.mxu1 %vm1448_vm0, %v1539_v38 }
 0x25b   : > { %v2528_v31 = vpop.f32.mrf.mxu0  ;;  %2572 = vmatmul.mubr.msk.f32.vlgmr.msra.gmra.mxu1 %vm1448_vm0, %v2525_v62 }
 0x25c   : > { %2600 = vmatpush3.msra.mxu1 %v1447_v29 }
 0x25d   : > { %v1549_v54 = vpop.f32.mrf.mxu0  ;;  %2601 = vmatprep.subr.mxu1 %v1446_v56 }
 0x25e   : > { %2574 = vmatprep.mubr.msk.f32.mxu1 %vm1448_vm0, %v1549_v54  ;;  %2602 = vmatpush3.msra.mxu1 %v1446_v56 }
 0x25f   : > { %v2531_v6 = vpop.f32.mrf.mxu0  ;;  %2575 = vmatmul.mubr.msk.f32.gmra.mxu1 %vm1448_vm0, %v2528_v31 }
 0x261   : > { %v1559_v32 = vpop.f32.mrf.mxu0 }
 0x262   : > { %2577 = vmatprep.mubr.msk.f32.mxu1 %vm1448_vm0, %v1559_v32 }
 0x263   : > { %v2534_v17 = vpop.f32.mrf.mxu0  ;;  %2578 = vmatmul.mubr.msk.f32.gmra.mxu1 %vm1448_vm0, %v2531_v6 }
 0x265   : > { %v1569_v2 = vpop.f32.mrf.mxu0 }
 0x266   : > { %2580 = vmatprep.mubr.msk.f32.mxu1 %vm1448_vm0, %v1569_v2 }
 0x267   : > { %2581 = vmatmul.mubr.msk.f32.gmra.mxu1 %vm1448_vm0, %v2534_v17 }
 0x287   : > { %v2541_v55 = vpop.f32.mrf.mxu1  ;;  %v2557_v45 = vpop.f32.mrf.mxu0 }
 0x289   : > { %v1644_v60 = vpop.f32.mrf.mxu1  ;;  %v1749_v49 = vpop.f32.mrf.mxu0 }
 0x28a   : > { %2587 = vmatprep.mubr.msk.f32.mxu0 %vm1448_vm0, %v1644_v60  ;;  %2603 = vmatprep.mubr.msk.f32.mxu1 %vm1448_vm0, %v1749_v49 }
 0x28b   : > { %v2544_v3 = vpop.f32.mrf.mxu1  ;;  %v2560_v21 = vpop.f32.mrf.mxu0  ;;  %2588 = vmatmul.mubr.msk.f32.vlgmr.msra.gmra.mxu0 %vm1448_vm0, %v2541_v55  ;;  %2604 = vmatmul.mubr.msk.f32.vlgmr.msra.gmra.mxu1 %vm1448_vm0, %v2557_v45 }
 0x28d   : > { %v1654_v25 = vpop.f32.mrf.mxu1  ;;  %v1759_v13 = vpop.f32.mrf.mxu0 }
 0x28e   : > { %2590 = vmatprep.mubr.msk.f32.mxu0 %vm1448_vm0, %v1654_v25  ;;  %2606 = vmatprep.mubr.msk.f32.mxu1 %vm1448_vm0, %v1759_v13 }
 0x28f   : > { %v2547_v30 = vpop.f32.mrf.mxu1  ;;  %v2563_v43 = vpop.f32.mrf.mxu0  ;;  %2591 = vmatmul.mubr.msk.f32.gmra.mxu0 %vm1448_vm0, %v2544_v3  ;;  %2607 = vmatmul.mubr.msk.f32.gmra.mxu1 %vm1448_vm0, %v2560_v21 }
 0x291   : > { %v1664_v15 = vpop.f32.mrf.mxu1  ;;  %v1769_v9 = vpop.f32.mrf.mxu0 }
 0x292   : > { %2593 = vmatprep.mubr.msk.f32.mxu0 %vm1448_vm0, %v1664_v15  ;;  %2609 = vmatprep.mubr.msk.f32.mxu1 %vm1448_vm0, %v1769_v9 }
 0x293   : > { %v2550_v51 = vpop.f32.mrf.mxu1  ;;  %v2566_v52 = vpop.f32.mrf.mxu0  ;;  %2594 = vmatmul.mubr.msk.f32.gmra.mxu0 %vm1448_vm0, %v2547_v30  ;;  %2610 = vmatmul.mubr.msk.f32.gmra.mxu1 %vm1448_vm0, %v2563_v43 }
 0x295   : > { %v1674_v24 = vpop.f32.mrf.mxu1  ;;  %v1779_v1 = vpop.f32.mrf.mxu0 }
 0x296   : > { %2596 = vmatprep.mubr.msk.f32.mxu0 %vm1448_vm0, %v1674_v24  ;;  %2612 = vmatprep.mubr.msk.f32.mxu1 %vm1448_vm0, %v1779_v1 }
 0x297   : > { %2597 = vmatmul.mubr.msk.f32.gmra.mxu0 %vm1448_vm0, %v2550_v51  ;;  %2613 = vmatmul.mubr.msk.f32.gmra.mxu1 %vm1448_vm0, %v2566_v52 }
 0x31b   : > { %v2573_v63 = vpop.f32.mrf.mxu1 }
 0x31c   : > { %2177 = vst.msk [vmem:[%s3797_s6 + $0x8] sm:$0xff] %vm2175_vm1, %v2573_v63 }
 0x31d   : > { %v1878_v53 = vpop.f32.mrf.mxu1 }
 0x31e   : > { %2176 = vst.msk [vmem:[%s3797_s6] sm:$0xff] %vm2175_vm1, %v1878_v53 }
 0x31f   : > { %v2576_v42 = vpop.f32.mrf.mxu1 }
 0x320   : > { %2179 = vst.msk [vmem:[%s3797_s6 + $0x18] sm:$0xff] %vm2175_vm1, %v2576_v42 }
 0x321   : > { %v1888_v35 = vpop.f32.mrf.mxu1 }
 0x322   : > { %2178 = vst.msk [vmem:[%s3797_s6 + $0x10] sm:$0xff] %vm2175_vm1, %v1888_v35 }
 0x323   : > { %v2579_v46 = vpop.f32.mrf.mxu1 }
 0x324   : > { %2181 = vst.msk [vmem:[%s3797_s6 + $0x28] sm:$0xff] %vm2175_vm1, %v2579_v46 }
 0x325   : > { %v1898_v26 = vpop.f32.mrf.mxu1 }
 0x326   : > { %2180 = vst.msk [vmem:[%s3797_s6 + $0x20] sm:$0xff] %vm2175_vm1, %v1898_v26 }
 0x327   : > { %v2582_v16 = vpop.f32.mrf.mxu1 }
 0x328   : > { %2183 = vst.msk [vmem:[%s3797_s6 + $0x38] sm:$0xff] %vm2175_vm1, %v2582_v16 }
 0x329   : > { %v1908_v8 = vpop.f32.mrf.mxu1 }
 0x32a   : > { %2182 = vst.msk [vmem:[%s3797_s6 + $0x30] sm:$0xff] %vm2175_vm1, %v1908_v8 }
 0x34b   : > { %v2589_v50 = vpop.f32.mrf.mxu0  ;;  %v2605_v28 = vpop.f32.mrf.mxu1 }
 0x34c   : > { %2185 = vst.msk [vmem:[%s3797_s6 + $0x48] sm:$0xff] %vm2175_vm1, %v2589_v50  ;;  %2193 = vst.msk [vmem:[%s3797_s6 + $0x88] sm:$0xff] %vm2175_vm1, %v2605_v28 }
 0x34d   : > { %v2007_v36 = vpop.f32.mrf.mxu0  ;;  %v2136_v4 = vpop.f32.mrf.mxu1 }
 0x34e   : > { %2184 = vst.msk [vmem:[%s3797_s6 + $0x40] sm:$0xff] %vm2175_vm1, %v2007_v36  ;;  %2192 = vst.msk [vmem:[%s3797_s6 + $0x80] sm:$0xff] %vm2175_vm1, %v2136_v4 }
 0x34f   : > { %v2592_v33 = vpop.f32.mrf.mxu0  ;;  %v2608_v41 = vpop.f32.mrf.mxu1 }
 0x350   : > { %2187 = vst.msk [vmem:[%s3797_s6 + $0x58] sm:$0xff] %vm2175_vm1, %v2592_v33  ;;  %2195 = vst.msk [vmem:[%s3797_s6 + $0x98] sm:$0xff] %vm2175_vm1, %v2608_v41 }
 0x351   : > { %v2017_v57 = vpop.f32.mrf.mxu0  ;;  %v2146_v18 = vpop.f32.mrf.mxu1 }
 0x352   : > { %2186 = vst.msk [vmem:[%s3797_s6 + $0x50] sm:$0xff] %vm2175_vm1, %v2017_v57  ;;  %2194 = vst.msk [vmem:[%s3797_s6 + $0x90] sm:$0xff] %vm2175_vm1, %v2146_v18 }
 0x353   : > { %v2595_v20 = vpop.f32.mrf.mxu0  ;;  %v2611_v34 = vpop.f32.mrf.mxu1 }
 0x354   : > { %2189 = vst.msk [vmem:[%s3797_s6 + $0x68] sm:$0xff] %vm2175_vm1, %v2595_v20  ;;  %2197 = vst.msk [vmem:[%s3797_s6 + $0xa8] sm:$0xff] %vm2175_vm1, %v2611_v34 }
 0x355   : > { %v2027_v0 = vpop.f32.mrf.mxu0  ;;  %v2156_v10 = vpop.f32.mrf.mxu1 }
 0x356   : > { %2188 = vst.msk [vmem:[%s3797_s6 + $0x60] sm:$0xff] %vm2175_vm1, %v2027_v0  ;;  %2196 = vst.msk [vmem:[%s3797_s6 + $0xa0] sm:$0xff] %vm2175_vm1, %v2156_v10 }
 0x357   : > { %v2598_v14 = vpop.f32.mrf.mxu0  ;;  %v2614_v44 = vpop.f32.mrf.mxu1 }
 0x358   : > { %2191 = vst.msk [vmem:[%s3797_s6 + $0x78] sm:$0xff] %vm2175_vm1, %v2598_v14  ;;  %2199 = vst.msk [vmem:[%s3797_s6 + $0xb8] sm:$0xff] %vm2175_vm1, %v2614_v44 }
 0x359   : > { %v2037_v47 = vpop.f32.mrf.mxu0  ;;  %v2166_v19 = vpop.f32.mrf.mxu1 }
 0x35a   : > { %2190 = vst.msk [vmem:[%s3797_s6 + $0x70] sm:$0xff] %vm2175_vm1, %v2037_v47  ;;  %2198 = vst.msk [vmem:[%s3797_s6 + $0xb0] sm:$0xff] %vm2175_vm1, %v2166_v19 }
 0x35b   : > { %2711 = shalt.err (!%p2708_p13)
}
 0x35c   : > { %s2712_s18 = scalar_lea.hbm %s3844_s30, 3072  ;;  %s2716_s21 = scalar_lea.hbm %s3902_s5, 6144 }
 0x35d   : > { %p2713_p0 = scmp.ne.s32.totalorder %s3844_s30, %s2712_s18  ;;  %p2717_p5 = scmp.lt.s32.totalorder %s3844_s30, %s3902_s5 }
 0x35e   : > { %p2718_p6 = scmp.lt.s32.totalorder %s2716_s21, %s2712_s18 }
 0x35f   : > { %p2714_p3 = pnand %p2713_p0, %p2843_p1 }
 0x360   : > { %p2719_p7 = por %p2718_p6, %p2717_p5 }
 0x361   : > { %p2715_p4 = pneg %p2714_p3 }
 0x363   : > { %p2720_p8 = pnand %p2719_p7, %p2715_p4 }
 0x365   : > { %2723 = shalt.err (!%p2720_p8)
}
 0x366   : > { %s2767_s26 = smov 128   ;;  %s2768_s0 = smov 8  }
 0x367   : > { %2618 = dma.vmem_to_hbm [thread:$0]  (%p2843_p1), %s3846_s22, 3072, %s3844_s30, %s3858_s13, %s2767_s26, %s2767_s26, %s2768_s0  }
 0x368 PF: > { %p2624_p9 = scmp.ge.s32.totalorder %s2760_s29, 2  ;;  %s2229_s6 = sand.u32 1, %s2748_s1  }
 0x369   : > { %s2230_s8 = scalar_lea.sflag [#allocation6], %s2229_s6 }
 0x36a   : > { %p2621_p10 = pnand %p2624_p9, %p2847_p2 }
 0x36c   : > { %p2622_p11 = pneg %p2621_p10 }
 0x36e   : > { %2743 = dma.done.wait (%p2622_p11), %s2230_s8, 3072  }
 0x36f   : > { %2745 = vsyncadd (%p2622_p11), %s2230_s8, 4294964224  ;;  %p25_p12 = scmp.ge.s32.totalorder %s2830_s7, 4   ;;  %s3906_s1 = smov %s2752_s27 }
 0x370   : > { %s3907_s27 = smov %s2756_s28  ;;  %s3908_s28 = smov %s2841_s10 }
 0x371   : > { %s3909_s29 = smov %s2830_s7  ;;  %27 = sbr.rel (!%p25_p12) target bundleno = 28 (0x1c), region = 70 }
 0x376   :  { %2235 = vsyncpa [#allocation6], 1 }
 0x377   :  { %2237 = vsyncpa [#allocation6 + $0x1], 1 }

</bundles_post_ra>
